<compile_context>
chip_gen: v7x
topology: tpu7x:2x2x1
jax: 0.10.0
libtpu: 0.0.40
codegen_flags: <defaults>
</compile_context>

<pallas_src>
import math

import numpy as np

import jax
import jax.numpy as jnp
from jax.experimental import pallas as pl
from jax.experimental.pallas import tpu as pltpu

LEAKY_SLOPE = 0.2
PIXEL_NORM_EPS = 1e-8  # standard PixelNorm eps (Pixel_norm class not shown in the spec)


# --------------------------------------------------------------------------------------
# Kernels
# --------------------------------------------------------------------------------------
def _initial_conv_kernel(x_ref, w1_ref, b1_ref, o_ref):
    # x_ref : (1, 1, C_in)        latent for one sample
    # w1_ref: (C_in, C_out*HW)    flipped + equalized-LR-scaled 4x4 conv weight
    # b1_ref: (1, C_out*HW)       bias repeated per spatial position
    # o_ref : (1, 1, C_out*HW)    flat index o*HW + p  (== NCHW order)
    y = jnp.dot(x_ref[0], w1_ref[...], preferred_element_type=jnp.float32)
    y = y + b1_ref[...]
    o_ref[0] = jnp.maximum(y, LEAKY_SLOPE * y).astype(o_ref.dtype)


def _gblock_torgb_kernel(h_ref, w2_ref, b2_ref, s_ref, wrgb_ref, brgb_ref, o_ref):
    # h_ref   : (1, C, HW)   conv1 + LeakyReLU output, native NCHW per sample
    # w2_ref  : (9, C, C)    equalized-LR-scaled 3x3 taps (tap index = ki*3 + kj)
    # b2_ref  : (C, 1)
    # s_ref   : (9, HW, HW)  0/1 spatial shift matrices (zero padding folded in)
    # wrgb_ref: (3, C)       equalized-LR-scaled 1x1 ToRGB weight
    # brgb_ref: (3, 1)
    # o_ref   : (1, 3, HW)
    h = h_ref[0]                                                              # (C, HW)
    # PixelNorm over channels (axis 0).
    h = h * jax.lax.rsqrt(jnp.mean(h * h, axis=0, keepdims=True) + PIXEL_NORM_EPS)

    # 3x3 conv, pad 1:  y = sum_t  W2[t] @ (h @ S[t])
    hs = jnp.dot(h, s_ref[0], preferred_element_type=jnp.float32)
    acc = jnp.dot(w2_ref[0], hs, preferred_element_type=jnp.float32)
    for t in range(1, 9):
        hs = jnp.dot(h, s_ref[t], preferred_element_type=jnp.float32)
        acc = acc + jnp.dot(w2_ref[t], hs, preferred_element_type=jnp.float32)

    y = acc + b2_ref[...]
    y = jnp.maximum(y, LEAKY_SLOPE * y)
    y = y * jax.lax.rsqrt(jnp.mean(y * y, axis=0, keepdims=True) + PIXEL_NORM_EPS)

    # ToRGB: 1x1 conv in native NCHW layout -> output last dim is H*W.
    rgb = jnp.dot(wrgb_ref[...], y, preferred_element_type=jnp.float32) + brgb_ref[...]
    o_ref[0] = rgb.astype(o_ref.dtype)


# --------------------------------------------------------------------------------------
# Wrapper
# --------------------------------------------------------------------------------------
def _shift_matrices(hh, ww):
    """S[t, q_in, p_out] = 1 iff output pixel p_out reads input pixel q_in for tap t."""
    hw = hh * ww
    s = np.zeros((9, hw, hw), dtype=np.float32)
    t = 0
    for di in (-1, 0, 1):          # di = ki - 1
        for dj in (-1, 0, 1):      # dj = kj - 1
            for i in range(hh):
                for j in range(ww):
                    ii, jj = i + di, j + dj
                    if 0 <= ii < hh and 0 <= jj < ww:
                        s[t, ii * ww + jj, i * ww + j] = 1.0
            t += 1
    return jnp.asarray(s)


@jax.jit
def generator_forward(x, w1, b1, w2, b2, wrgb, brgb):
    """Generator forward at depth=1, alpha=1.

    x    : (N, C, 1, 1) latent (NCHW)
    w1   : (C, C, 4, 4) initial conv weight (OIHW), b1: (C,)
    w2   : (C, C, 3, 3) second conv weight,          b2: (C,)
    wrgb : (3, C, 1, 1) ToRGB conv weight,           brgb: (3,)
    returns (N, 3, 4, 4)
    """
    n, c, h_in, w_in = x.shape
    assert h_in == 1 and w_in == 1
    c_out = w1.shape[0]
    hh, ww = 4, 4
    hw = hh * ww

    # Equalized-LR scales: sqrt(2 / (in_ch * kH * kW)).
    s1 = math.sqrt(2.0 / (c * 4 * 4))
    s2 = math.sqrt(2.0 / (c_out * 3 * 3))
    s3 = math.sqrt(2.0 / (c_out * 1 * 1))

    # ---- weight-only preprocessing (tiny; no activation work in the wrapper) ----
    # A 4x4 conv with pad 3 on a 1x1 input hits weight tap (3-i, 3-j) at output (i, j).
    w1_flip = jnp.flip(w1, axis=(2, 3)) * s1                                   # (Co, Ci, 4, 4)
    w1_mat = jnp.transpose(w1_flip.reshape(c_out, c, hw), (1, 0, 2)).reshape(c, c_out * hw)
    b1_rep = jnp.repeat(b1, hw).reshape(1, c_out * hw)

    w2_taps = jnp.transpose((w2 * s2).reshape(c_out, c_out, 9), (2, 0, 1))     # (9, Co, Ci)
    b2_col = b2.reshape(c_out, 1)
    s_mats = _shift_matrices(hh, ww)                                           # (9, HW, HW)

    wrgb_mat = wrgb[:, :, 0, 0] * s3                                           # (3, C)
    brgb_col = brgb.reshape(3, 1)

    # ---- kernel 1: initial 4x4 conv (latent -> C x 4 x 4) + bias + LeakyReLU ----
    x_lat = x.reshape(n, 1, c)        # contiguous reshape of the NCHW latent, no transpose
    h1_flat = pl.pallas_call(
        _initial_conv_kernel,
        out_shape=jax.ShapeDtypeStruct((n, 1, c_out * hw), jnp.float32),
        grid_spec=pltpu.PrefetchScalarGridSpec(
            num_scalar_prefetch=0,
            grid=(n,),
            in_specs=[
                pl.BlockSpec((1, 1, c), lambda i: (i, 0, 0)),
                pl.BlockSpec((c, c_out * hw), lambda i: (0, 0)),
                pl.BlockSpec((1, c_out * hw), lambda i: (0, 0)),
            ],
            out_specs=pl.BlockSpec((1, 1, c_out * hw), lambda i: (i, 0, 0)),
        ),
        compiler_params=pltpu.CompilerParams(dimension_semantics=("parallel",)),
    )(x_lat, w1_mat, b1_rep)

    # Flat index o*HW + p is already NCHW order -> contiguous (free) reshape.
    h1 = h1_flat.reshape(n, c_out, hw)

    # ---- kernel 2: PixelNorm -> 3x3 conv -> bias -> LeakyReLU -> PixelNorm -> ToRGB ----
    rgb_flat = pl.pallas_call(
        _gblock_torgb_kernel,
        out_shape=jax.ShapeDtypeStruct((n, 3, hw), jnp.float32),
        grid_spec=pltpu.PrefetchScalarGridSpec(
            num_scalar_prefetch=0,
            grid=(n,),
            in_specs=[
                pl.BlockSpec((1, c_out, hw), lambda i: (i, 0, 0)),
                pl.BlockSpec((9, c_out, c_out), lambda i: (0, 0, 0)),
                pl.BlockSpec((c_out, 1), lambda i: (0, 0)),
                pl.BlockSpec((9, hw, hw), lambda i: (0, 0, 0)),
                pl.BlockSpec((3, c_out), lambda i: (0, 0)),
                pl.BlockSpec((3, 1), lambda i: (0, 0)),
            ],
            out_specs=pl.BlockSpec((1, 3, hw), lambda i: (i, 0, 0)),
        ),
        compiler_params=pltpu.CompilerParams(dimension_semantics=("parallel",)),
    )(h1, w2_taps, b2_col, s_mats, wrgb_mat, brgb_col)

    # Contiguous reshape back to NCHW image layout (no transpose).
    return rgb_flat.reshape(n, 3, hh, ww)


# --------------------------------------------------------------------------------------
# Pure-JAX reference (same math, via lax.conv)
# --------------------------------------------------------------------------------------
def _reference_forward(x, w1, b1, w2, b2, wrgb, brgb):
    c = x.shape[1]
    s1 = math.sqrt(2.0 / (c * 16))
    s2 = math.sqrt(2.0 / (c * 9))
    s3 = math.sqrt(2.0 / c)

    def conv(v, w, b, pad):
        y = jax.lax.conv_general_dilated(
            v, w, window_strides=(1, 1), padding=[(pad, pad), (pad, pad)],
            dimension_numbers=("NCHW", "OIHW", "NCHW"),
            precision=jax.lax.Precision.HIGHEST)
        return y + b[None, :, None, None]

    def lrelu(v):
        return jnp.where(v > 0, v, LEAKY_SLOPE * v)

    def pnorm(v):
        return v * jax.lax.rsqrt(jnp.mean(v * v, axis=1, keepdims=True) + PIXEL_NORM_EPS)

    h = pnorm(lrelu(conv(x, w1 * s1, b1, 3)))
    h = pnorm(lrelu(conv(h, w2 * s2, b2, 1)))
    return conv(h, wrgb * s3, brgb, 0)


# --------------------------------------------------------------------------------------
# Main
# --------------------------------------------------------------------------------------
if __name__ == "__main__":
    key = jax.random.PRNGKey(0)
    k1, k2, k3, kx = jax.random.split(key, 4)

    N, LATENT = 2, 128  # small but representative (real model uses latent=512)

    x = jax.random.normal(kx, (N, LATENT, 1, 1), dtype=jnp.float32)
    # EqualizedLR_Conv2d init: weight ~ N(0, 1), bias = 0.
    w1 = jax.random.normal(k1, (LATENT, LATENT, 4, 4), dtype=jnp.float32)
    w2 = jax.random.normal(k2, (LATENT, LATENT, 3, 3), dtype=jnp.float32)
    wrgb = jax.random.normal(k3, (3, LATENT, 1, 1), dtype=jnp.float32)
    b1 = jnp.zeros((LATENT,), dtype=jnp.float32)
    b2 = jnp.zeros((LATENT,), dtype=jnp.float32)
    brgb = jnp.zeros((3,), dtype=jnp.float32)

    out = generator_forward(x, w1, b1, w2, b2, wrgb, brgb)
    jax.block_until_ready(out)

    ref = _reference_forward(x, w1, b1, w2, b2, wrgb, brgb)
    assert out.shape == (N, 3, 4, 4)
    assert jnp.allclose(out, ref, atol=2e-2, rtol=2e-2), float(jnp.max(jnp.abs(out - ref)))

    print("KERNEL_OK")
</pallas_src>

<mosaic_0001>
module attributes {stable_mosaic.version = 11 : i64} {
  func.func @_initial_conv_kernel(%arg0: i32, %arg1: memref<1x1x128xf32, #tpu.memory_space<vmem>>, %arg2: memref<128x2048xf32, #tpu.memory_space<vmem>>, %arg3: memref<1x2048xf32, #tpu.memory_space<vmem>>, %arg4: memref<1x1x2048xf32, #tpu.memory_space<vmem>>) attributes {dimension_semantics = [#tpu.dimension_semantics<parallel>], iteration_bounds = array<i64: 2>, scalar_prefetch = 0 : i64, scratch_operands = 0 : i64, tpu.core_type = #tpu.core_type<tc>, window_params = [{transform_indices = @transform_0, window_bounds = array<i64: 1, 1, 128>}, {pipeline_mode = #tpu.pipeline_mode<synchronous>, transform_indices = @transform_1, window_bounds = array<i64: 128, 2048>}, {pipeline_mode = #tpu.pipeline_mode<synchronous>, transform_indices = @transform_2, window_bounds = array<i64: 1, 2048>}, {transform_indices = @transform_3, window_bounds = array<i64: 1, 1, 2048>}]} {
    %c0 = arith.constant 0 : index
    %c0_0 = arith.constant 0 : index
    %c0_1 = arith.constant 0 : index
    %0 = vector.load %arg1[%c0, %c0_0, %c0_1] : memref<1x1x128xf32, #tpu.memory_space<vmem>>, vector<1x1x128xf32>
    %1 = vector.shape_cast %0 : vector<1x1x128xf32> to vector<1x128xf32>
    %c0_2 = arith.constant 0 : index
    %c0_3 = arith.constant 0 : index
    %2 = vector.load %arg2[%c0_2, %c0_3] : memref<128x2048xf32, #tpu.memory_space<vmem>>, vector<128x2048xf32>
    %cst = arith.constant dense<0.000000e+00> : vector<1x2048xf32>
    %3 = tpu.matmul %1, %2, %cst {dimension_numbers = #tpu.dot_dimension_numbers<[1], [0], [0], [1], [0, 0, 1, 1], [], []>} : vector<1x128xf32>, vector<128x2048xf32>, vector<1x2048xf32> -> vector<1x2048xf32>
    %c0_4 = arith.constant 0 : index
    %c0_5 = arith.constant 0 : index
    %4 = vector.load %arg3[%c0_4, %c0_5] : memref<1x2048xf32, #tpu.memory_space<vmem>>, vector<1x2048xf32>
    %5 = arith.addf %3, %4 : vector<1x2048xf32>
    %cst_6 = arith.constant 2.000000e-01 : f32
    %6 = vector.broadcast %cst_6 : f32 to vector<1x2048xf32>
    %7 = arith.mulf %6, %5 : vector<1x2048xf32>
    %8 = arith.maximumf %5, %7 : vector<1x2048xf32>
    %c0_7 = arith.constant 0 : index
    %c0_8 = arith.constant 0 : index
    %c0_9 = arith.constant 0 : index
    %9 = vector.load %arg4[%c0_7, %c0_8, %c0_9] : memref<1x1x2048xf32, #tpu.memory_space<vmem>>, vector<1x1x2048xf32>
    %10 = vector.shape_cast %9 : vector<1x1x2048xf32> to vector<1x2048xf32>
    %11 = vector.shape_cast %8 : vector<1x2048xf32> to vector<1x1x2048xf32>
    tpu.vector_store %arg4[%c0_7, %c0_8, %c0_9], %11 {strides = array<i32>} : memref<1x1x2048xf32, #tpu.memory_space<vmem>>, vector<1x1x2048xf32>,
    return
  }
  func.func @transform_0(%arg0: i32) -> (i32, i32, i32) {
    %c0_i32 = arith.constant 0 : i32
    %c0_i32_0 = arith.constant 0 : i32
    %c0_i32_1 = arith.constant 0 : i32
    return %arg0, %c0_i32, %c0_i32_0 : i32, i32, i32
  }
  func.func @transform_1(%arg0: i32) -> (i32, i32) {
    %c0_i32 = arith.constant 0 : i32
    %c0_i32_0 = arith.constant 0 : i32
    %c0_i32_1 = arith.constant 0 : i32
    return %c0_i32, %c0_i32_0 : i32, i32
  }
  func.func @transform_2(%arg0: i32) -> (i32, i32) {
    %c0_i32 = arith.constant 0 : i32
    %c0_i32_0 = arith.constant 0 : i32
    %c0_i32_1 = arith.constant 0 : i32
    return %c0_i32, %c0_i32_0 : i32, i32
  }
  func.func @transform_3(%arg0: i32) -> (i32, i32, i32) {
    %c0_i32 = arith.constant 0 : i32
    %c0_i32_0 = arith.constant 0 : i32
    %c0_i32_1 = arith.constant 0 : i32
    return %arg0, %c0_i32, %c0_i32_0 : i32, i32, i32
  }
}

module attributes {stable_mosaic.version = 11 : i64} {
  func.func @_gblock_torgb_kernel(%arg0: i32, %arg1: memref<1x128x16xf32, #tpu.memory_space<vmem>>, %arg2: memref<9x128x128xf32, #tpu.memory_space<vmem>>, %arg3: memref<128x1xf32, #tpu.memory_space<vmem>>, %arg4: memref<9x16x16xf32, #tpu.memory_space<vmem>>, %arg5: memref<3x128xf32, #tpu.memory_space<vmem>>, %arg6: memref<3x1xf32, #tpu.memory_space<vmem>>, %arg7: memref<1x3x16xf32, #tpu.memory_space<vmem>>) attributes {dimension_semantics = [#tpu.dimension_semantics<parallel>], iteration_bounds = array<i64: 2>, scalar_prefetch = 0 : i64, scratch_operands = 0 : i64, tpu.core_type = #tpu.core_type<tc>, window_params = [{transform_indices = @transform_0, window_bounds = array<i64: 1, 128, 16>}, {pipeline_mode = #tpu.pipeline_mode<synchronous>, transform_indices = @transform_1, window_bounds = array<i64: 9, 128, 128>}, {pipeline_mode = #tpu.pipeline_mode<synchronous>, transform_indices = @transform_2, window_bounds = array<i64: 128, 1>}, {pipeline_mode = #tpu.pipeline_mode<synchronous>, transform_indices = @transform_3, window_bounds = array<i64: 9, 16, 16>}, {pipeline_mode = #tpu.pipeline_mode<synchronous>, transform_indices = @transform_4, window_bounds = array<i64: 3, 128>}, {pipeline_mode = #tpu.pipeline_mode<synchronous>, transform_indices = @transform_5, window_bounds = array<i64: 3, 1>}, {transform_indices = @transform_6, window_bounds = array<i64: 1, 3, 16>}]} {
    %c0 = arith.constant 0 : index
    %c0_0 = arith.constant 0 : index
    %c0_1 = arith.constant 0 : index
    %0 = vector.load %arg1[%c0, %c0_0, %c0_1] : memref<1x128x16xf32, #tpu.memory_space<vmem>>, vector<1x128x16xf32>
    %1 = vector.shape_cast %0 : vector<1x128x16xf32> to vector<128x16xf32>
    %2 = arith.mulf %1, %1 : vector<128x16xf32>
    %cst = arith.constant dense<0.000000e+00> : vector<16xf32>
    %3 = vector.multi_reduction <add>, %2, %cst [0] : vector<128x16xf32> to vector<16xf32>
    %4 = vector.shape_cast %3 : vector<16xf32> to vector<1x16xf32>
    %cst_2 = arith.constant 1.280000e+02 : f32
    %5 = vector.broadcast %cst_2 : f32 to vector<1x16xf32>
    %6 = arith.divf %4, %5 : vector<1x16xf32>
    %cst_3 = arith.constant 9.99999993E-9 : f32
    %7 = vector.broadcast %cst_3 : f32 to vector<1x16xf32>
    %8 = arith.addf %6, %7 : vector<1x16xf32>
    %9 = math.rsqrt %8 : vector<1x16xf32>
    %10 = vector.broadcast %9 : vector<1x16xf32> to vector<128x16xf32>
    %11 = arith.mulf %1, %10 : vector<128x16xf32>
    %c0_4 = arith.constant 0 : index
    %c0_5 = arith.constant 0 : index
    %c0_6 = arith.constant 0 : index
    %12 = vector.load %arg4[%c0_4, %c0_5, %c0_6] : memref<9x16x16xf32, #tpu.memory_space<vmem>>, vector<1x16x16xf32>
    %13 = vector.shape_cast %12 : vector<1x16x16xf32> to vector<16x16xf32>
    %cst_7 = arith.constant dense<0.000000e+00> : vector<128x16xf32>
    %14 = tpu.matmul %11, %13, %cst_7 {dimension_numbers = #tpu.dot_dimension_numbers<[1], [0], [0], [1], [0, 0, 1, 1], [], []>} : vector<128x16xf32>, vector<16x16xf32>, vector<128x16xf32> -> vector<128x16xf32>
    %c0_8 = arith.constant 0 : index
    %c0_9 = arith.constant 0 : index
    %c0_10 = arith.constant 0 : index
    %15 = vector.load %arg2[%c0_8, %c0_9, %c0_10] : memref<9x128x128xf32, #tpu.memory_space<vmem>>, vector<1x128x128xf32>
    %16 = vector.shape_cast %15 : vector<1x128x128xf32> to vector<128x128xf32>
    %cst_11 = arith.constant dense<0.000000e+00> : vector<128x16xf32>
    %17 = tpu.matmul %16, %14, %cst_11 {dimension_numbers = #tpu.dot_dimension_numbers<[1], [0], [0], [1], [0, 0, 1, 1], [], []>} : vector<128x128xf32>, vector<128x16xf32>, vector<128x16xf32> -> vector<128x16xf32>
    %c1 = arith.constant 1 : index
    %c0_12 = arith.constant 0 : index
    %c0_13 = arith.constant 0 : index
    %18 = vector.load %arg4[%c1, %c0_12, %c0_13] : memref<9x16x16xf32, #tpu.memory_space<vmem>>, vector<1x16x16xf32>
    %19 = vector.shape_cast %18 : vector<1x16x16xf32> to vector<16x16xf32>
    %cst_14 = arith.constant dense<0.000000e+00> : vector<128x16xf32>
    %20 = tpu.matmul %11, %19, %cst_14 {dimension_numbers = #tpu.dot_dimension_numbers<[1], [0], [0], [1], [0, 0, 1, 1], [], []>} : vector<128x16xf32>, vector<16x16xf32>, vector<128x16xf32> -> vector<128x16xf32>
    %c1_15 = arith.constant 1 : index
    %c0_16 = arith.constant 0 : index
    %c0_17 = arith.constant 0 : index
    %21 = vector.load %arg2[%c1_15, %c0_16, %c0_17] : memref<9x128x128xf32, #tpu.memory_space<vmem>>, vector<1x128x128xf32>
    %22 = vector.shape_cast %21 : vector<1x128x128xf32> to vector<128x128xf32>
    %cst_18 = arith.constant dense<0.000000e+00> : vector<128x16xf32>
    %23 = tpu.matmul %22, %20, %cst_18 {dimension_numbers = #tpu.dot_dimension_numbers<[1], [0], [0], [1], [0, 0, 1, 1], [], []>} : vector<128x128xf32>, vector<128x16xf32>, vector<128x16xf32> -> vector<128x16xf32>
    %24 = arith.addf %17, %23 : vector<128x16xf32>
    %c2 = arith.constant 2 : index
    %c0_19 = arith.constant 0 : index
    %c0_20 = arith.constant 0 : index
    %25 = vector.load %arg4[%c2, %c0_19, %c0_20] : memref<9x16x16xf32, #tpu.memory_space<vmem>>, vector<1x16x16xf32>
    %26 = vector.shape_cast %25 : vector<1x16x16xf32> to vector<16x16xf32>
    %cst_21 = arith.constant dense<0.000000e+00> : vector<128x16xf32>
    %27 = tpu.matmul %11, %26, %cst_21 {dimension_numbers = #tpu.dot_dimension_numbers<[1], [0], [0], [1], [0, 0, 1, 1], [], []>} : vector<128x16xf32>, vector<16x16xf32>, vector<128x16xf32> -> vector<128x16xf32>
    %c2_22 = arith.constant 2 : index
    %c0_23 = arith.constant 0 : index
    %c0_24 = arith.constant 0 : index
    %28 = vector.load %arg2[%c2_22, %c0_23, %c0_24] : memref<9x128x128xf32, #tpu.memory_space<vmem>>, vector<1x128x128xf32>
    %29 = vector.shape_cast %28 : vector<1x128x128xf32> to vector<128x128xf32>
    %cst_25 = arith.constant dense<0.000000e+00> : vector<128x16xf32>
    %30 = tpu.matmul %29, %27, %cst_25 {dimension_numbers = #tpu.dot_dimension_numbers<[1], [0], [0], [1], [0, 0, 1, 1], [], []>} : vector<128x128xf32>, vector<128x16xf32>, vector<128x16xf32> -> vector<128x16xf32>
    %31 = arith.addf %24, %30 : vector<128x16xf32>
    %c3 = arith.constant 3 : index
    %c0_26 = arith.constant 0 : index
    %c0_27 = arith.constant 0 : index
    %32 = vector.load %arg4[%c3, %c0_26, %c0_27] : memref<9x16x16xf32, #tpu.memory_space<vmem>>, vector<1x16x16xf32>
    %33 = vector.shape_cast %32 : vector<1x16x16xf32> to vector<16x16xf32>
    %cst_28 = arith.constant dense<0.000000e+00> : vector<128x16xf32>
    %34 = tpu.matmul %11, %33, %cst_28 {dimension_numbers = #tpu.dot_dimension_numbers<[1], [0], [0], [1], [0, 0, 1, 1], [], []>} : vector<128x16xf32>, vector<16x16xf32>, vector<128x16xf32> -> vector<128x16xf32>
    %c3_29 = arith.constant 3 : index
    %c0_30 = arith.constant 0 : index
    %c0_31 = arith.constant 0 : index
    %35 = vector.load %arg2[%c3_29, %c0_30, %c0_31] : memref<9x128x128xf32, #tpu.memory_space<vmem>>, vector<1x128x128xf32>
    %36 = vector.shape_cast %35 : vector<1x128x128xf32> to vector<128x128xf32>
    %cst_32 = arith.constant dense<0.000000e+00> : vector<128x16xf32>
    %37 = tpu.matmul %36, %34, %cst_32 {dimension_numbers = #tpu.dot_dimension_numbers<[1], [0], [0], [1], [0, 0, 1, 1], [], []>} : vector<128x128xf32>, vector<128x16xf32>, vector<128x16xf32> -> vector<128x16xf32>
    %38 = arith.addf %31, %37 : vector<128x16xf32>
    %c4 = arith.constant 4 : index
    %c0_33 = arith.constant 0 : index
    %c0_34 = arith.constant 0 : index
    %39 = vector.load %arg4[%c4, %c0_33, %c0_34] : memref<9x16x16xf32, #tpu.memory_space<vmem>>, vector<1x16x16xf32>
    %40 = vector.shape_cast %39 : vector<1x16x16xf32> to vector<16x16xf32>
    %cst_35 = arith.constant dense<0.000000e+00> : vector<128x16xf32>
    %41 = tpu.matmul %11, %40, %cst_35 {dimension_numbers = #tpu.dot_dimension_numbers<[1], [0], [0], [1], [0, 0, 1, 1], [], []>} : vector<128x16xf32>, vector<16x16xf32>, vector<128x16xf32> -> vector<128x16xf32>
    %c4_36 = arith.constant 4 : index
    %c0_37 = arith.constant 0 : index
    %c0_38 = arith.constant 0 : index
    %42 = vector.load %arg2[%c4_36, %c0_37, %c0_38] : memref<9x128x128xf32, #tpu.memory_space<vmem>>, vector<1x128x128xf32>
    %43 = vector.shape_cast %42 : vector<1x128x128xf32> to vector<128x128xf32>
    %cst_39 = arith.constant dense<0.000000e+00> : vector<128x16xf32>
    %44 = tpu.matmul %43, %41, %cst_39 {dimension_numbers = #tpu.dot_dimension_numbers<[1], [0], [0], [1], [0, 0, 1, 1], [], []>} : vector<128x128xf32>, vector<128x16xf32>, vector<128x16xf32> -> vector<128x16xf32>
    %45 = arith.addf %38, %44 : vector<128x16xf32>
    %c5 = arith.constant 5 : index
    %c0_40 = arith.constant 0 : index
    %c0_41 = arith.constant 0 : index
    %46 = vector.load %arg4[%c5, %c0_40, %c0_41] : memref<9x16x16xf32, #tpu.memory_space<vmem>>, vector<1x16x16xf32>
    %47 = vector.shape_cast %46 : vector<1x16x16xf32> to vector<16x16xf32>
    %cst_42 = arith.constant dense<0.000000e+00> : vector<128x16xf32>
    %48 = tpu.matmul %11, %47, %cst_42 {dimension_numbers = #tpu.dot_dimension_numbers<[1], [0], [0], [1], [0, 0, 1, 1], [], []>} : vector<128x16xf32>, vector<16x16xf32>, vector<128x16xf32> -> vector<128x16xf32>
    %c5_43 = arith.constant 5 : index
    %c0_44 = arith.constant 0 : index
    %c0_45 = arith.constant 0 : index
    %49 = vector.load %arg2[%c5_43, %c0_44, %c0_45] : memref<9x128x128xf32, #tpu.memory_space<vmem>>, vector<1x128x128xf32>
    %50 = vector.shape_cast %49 : vector<1x128x128xf32> to vector<128x128xf32>
    %cst_46 = arith.constant dense<0.000000e+00> : vector<128x16xf32>
    %51 = tpu.matmul %50, %48, %cst_46 {dimension_numbers = #tpu.dot_dimension_numbers<[1], [0], [0], [1], [0, 0, 1, 1], [], []>} : vector<128x128xf32>, vector<128x16xf32>, vector<128x16xf32> -> vector<128x16xf32>
    %52 = arith.addf %45, %51 : vector<128x16xf32>
    %c6 = arith.constant 6 : index
    %c0_47 = arith.constant 0 : index
    %c0_48 = arith.constant 0 : index
    %53 = vector.load %arg4[%c6, %c0_47, %c0_48] : memref<9x16x16xf32, #tpu.memory_space<vmem>>, vector<1x16x16xf32>
    %54 = vector.shape_cast %53 : vector<1x16x16xf32> to vector<16x16xf32>
    %cst_49 = arith.constant dense<0.000000e+00> : vector<128x16xf32>
    %55 = tpu.matmul %11, %54, %cst_49 {dimension_numbers = #tpu.dot_dimension_numbers<[1], [0], [0], [1], [0, 0, 1, 1], [], []>} : vector<128x16xf32>, vector<16x16xf32>, vector<128x16xf32> -> vector<128x16xf32>
    %c6_50 = arith.constant 6 : index
    %c0_51 = arith.constant 0 : index
    %c0_52 = arith.constant 0 : index
    %56 = vector.load %arg2[%c6_50, %c0_51, %c0_52] : memref<9x128x128xf32, #tpu.memory_space<vmem>>, vector<1x128x128xf32>
    %57 = vector.shape_cast %56 : vector<1x128x128xf32> to vector<128x128xf32>
    %cst_53 = arith.constant dense<0.000000e+00> : vector<128x16xf32>
    %58 = tpu.matmul %57, %55, %cst_53 {dimension_numbers = #tpu.dot_dimension_numbers<[1], [0], [0], [1], [0, 0, 1, 1], [], []>} : vector<128x128xf32>, vector<128x16xf32>, vector<128x16xf32> -> vector<128x16xf32>
    %59 = arith.addf %52, %58 : vector<128x16xf32>
    %c7 = arith.constant 7 : index
    %c0_54 = arith.constant 0 : index
    %c0_55 = arith.constant 0 : index
    %60 = vector.load %arg4[%c7, %c0_54, %c0_55] : memref<9x16x16xf32, #tpu.memory_space<vmem>>, vector<1x16x16xf32>
    %61 = vector.shape_cast %60 : vector<1x16x16xf32> to vector<16x16xf32>
    %cst_56 = arith.constant dense<0.000000e+00> : vector<128x16xf32>
    %62 = tpu.matmul %11, %61, %cst_56 {dimension_numbers = #tpu.dot_dimension_numbers<[1], [0], [0], [1], [0, 0, 1, 1], [], []>} : vector<128x16xf32>, vector<16x16xf32>, vector<128x16xf32> -> vector<128x16xf32>
    %c7_57 = arith.constant 7 : index
    %c0_58 = arith.constant 0 : index
    %c0_59 = arith.constant 0 : index
    %63 = vector.load %arg2[%c7_57, %c0_58, %c0_59] : memref<9x128x128xf32, #tpu.memory_space<vmem>>, vector<1x128x128xf32>
    %64 = vector.shape_cast %63 : vector<1x128x128xf32> to vector<128x128xf32>
    %cst_60 = arith.constant dense<0.000000e+00> : vector<128x16xf32>
    %65 = tpu.matmul %64, %62, %cst_60 {dimension_numbers = #tpu.dot_dimension_numbers<[1], [0], [0], [1], [0, 0, 1, 1], [], []>} : vector<128x128xf32>, vector<128x16xf32>, vector<128x16xf32> -> vector<128x16xf32>
    %66 = arith.addf %59, %65 : vector<128x16xf32>
    %c8 = arith.constant 8 : index
    %c0_61 = arith.constant 0 : index
    %c0_62 = arith.constant 0 : index
    %67 = vector.load %arg4[%c8, %c0_61, %c0_62] : memref<9x16x16xf32, #tpu.memory_space<vmem>>, vector<1x16x16xf32>
    %68 = vector.shape_cast %67 : vector<1x16x16xf32> to vector<16x16xf32>
    %cst_63 = arith.constant dense<0.000000e+00> : vector<128x16xf32>
    %69 = tpu.matmul %11, %68, %cst_63 {dimension_numbers = #tpu.dot_dimension_numbers<[1], [0], [0], [1], [0, 0, 1, 1], [], []>} : vector<128x16xf32>, vector<16x16xf32>, vector<128x16xf32> -> vector<128x16xf32>
    %c8_64 = arith.constant 8 : index
    %c0_65 = arith.constant 0 : index
    %c0_66 = arith.constant 0 : index
    %70 = vector.load %arg2[%c8_64, %c0_65, %c0_66] : memref<9x128x128xf32, #tpu.memory_space<vmem>>, vector<1x128x128xf32>
    %71 = vector.shape_cast %70 : vector<1x128x128xf32> to vector<128x128xf32>
    %cst_67 = arith.constant dense<0.000000e+00> : vector<128x16xf32>
    %72 = tpu.matmul %71, %69, %cst_67 {dimension_numbers = #tpu.dot_dimension_numbers<[1], [0], [0], [1], [0, 0, 1, 1], [], []>} : vector<128x128xf32>, vector<128x16xf32>, vector<128x16xf32> -> vector<128x16xf32>
    %73 = arith.addf %66, %72 : vector<128x16xf32>
    %c0_68 = arith.constant 0 : index
    %c0_69 = arith.constant 0 : index
    %74 = vector.load %arg3[%c0_68, %c0_69] : memref<128x1xf32, #tpu.memory_space<vmem>>, vector<128x1xf32>
    %75 = vector.broadcast %74 : vector<128x1xf32> to vector<128x16xf32>
    %76 = arith.addf %73, %75 : vector<128x16xf32>
    %cst_70 = arith.constant 2.000000e-01 : f32
    %77 = vector.broadcast %cst_70 : f32 to vector<128x16xf32>
    %78 = arith.mulf %77, %76 : vector<128x16xf32>
    %79 = arith.maximumf %76, %78 : vector<128x16xf32>
    %80 = arith.mulf %79, %79 : vector<128x16xf32>
    %cst_71 = arith.constant dense<0.000000e+00> : vector<16xf32>
    %81 = vector.multi_reduction <add>, %80, %cst_71 [0] : vector<128x16xf32> to vector<16xf32>
    %82 = vector.shape_cast %81 : vector<16xf32> to vector<1x16xf32>
    %cst_72 = arith.constant 1.280000e+02 : f32
    %83 = vector.broadcast %cst_72 : f32 to vector<1x16xf32>
    %84 = arith.divf %82, %83 : vector<1x16xf32>
    %cst_73 = arith.constant 9.99999993E-9 : f32
    %85 = vector.broadcast %cst_73 : f32 to vector<1x16xf32>
    %86 = arith.addf %84, %85 : vector<1x16xf32>
    %87 = math.rsqrt %86 : vector<1x16xf32>
    %88 = vector.broadcast %87 : vector<1x16xf32> to vector<128x16xf32>
    %89 = arith.mulf %79, %88 : vector<128x16xf32>
    %c0_74 = arith.constant 0 : index
    %c0_75 = arith.constant 0 : index
    %90 = vector.load %arg5[%c0_74, %c0_75] : memref<3x128xf32, #tpu.memory_space<vmem>>, vector<3x128xf32>
    %cst_76 = arith.constant dense<0.000000e+00> : vector<3x16xf32>
    %91 = tpu.matmul %90, %89, %cst_76 {dimension_numbers = #tpu.dot_dimension_numbers<[1], [0], [0], [1], [0, 0, 1, 1], [], []>} : vector<3x128xf32>, vector<128x16xf32>, vector<3x16xf32> -> vector<3x16xf32>
    %c0_77 = arith.constant 0 : index
    %c0_78 = arith.constant 0 : index
    %92 = vector.load %arg6[%c0_77, %c0_78] : memref<3x1xf32, #tpu.memory_space<vmem>>, vector<3x1xf32>
    %93 = vector.broadcast %92 : vector<3x1xf32> to vector<3x16xf32>
    %94 = arith.addf %91, %93 : vector<3x16xf32>
    %c0_79 = arith.constant 0 : index
    %c0_80 = arith.constant 0 : index
    %c0_81 = arith.constant 0 : index
    %95 = vector.load %arg7[%c0_79, %c0_80, %c0_81] : memref<1x3x16xf32, #tpu.memory_space<vmem>>, vector<1x3x16xf32>
    %96 = vector.shape_cast %95 : vector<1x3x16xf32> to vector<3x16xf32>
    %97 = vector.shape_cast %94 : vector<3x16xf32> to vector<1x3x16xf32>
    tpu.vector_store %arg7[%c0_79, %c0_80, %c0_81], %97 {strides = array<i32>} : memref<1x3x16xf32, #tpu.memory_space<vmem>>, vector<1x3x16xf32>,
    return
  }
  func.func @transform_0(%arg0: i32) -> (i32, i32, i32) {
    %c0_i32 = arith.constant 0 : i32
    %c0_i32_0 = arith.constant 0 : i32
    %c0_i32_1 = arith.constant 0 : i32
    return %arg0, %c0_i32, %c0_i32_0 : i32, i32, i32
  }
  func.func @transform_1(%arg0: i32) -> (i32, i32, i32) {
    %c0_i32 = arith.constant 0 : i32
    %c0_i32_0 = arith.constant 0 : i32
    %c0_i32_1 = arith.constant 0 : i32
    %c0_i32_2 = arith.constant 0 : i32
    return %c0_i32, %c0_i32_0, %c0_i32_1 : i32, i32, i32
  }
  func.func @transform_2(%arg0: i32) -> (i32, i32) {
    %c0_i32 = arith.constant 0 : i32
    %c0_i32_0 = arith.constant 0 : i32
    %c0_i32_1 = arith.constant 0 : i32
    return %c0_i32, %c0_i32_0 : i32, i32
  }
  func.func @transform_3(%arg0: i32) -> (i32, i32, i32) {
    %c0_i32 = arith.constant 0 : i32
    %c0_i32_0 = arith.constant 0 : i32
    %c0_i32_1 = arith.constant 0 : i32
    %c0_i32_2 = arith.constant 0 : i32
    return %c0_i32, %c0_i32_0, %c0_i32_1 : i32, i32, i32
  }
  func.func @transform_4(%arg0: i32) -> (i32, i32) {
    %c0_i32 = arith.constant 0 : i32
    %c0_i32_0 = arith.constant 0 : i32
    %c0_i32_1 = arith.constant 0 : i32
    return %c0_i32, %c0_i32_0 : i32, i32
  }
  func.func @transform_5(%arg0: i32) -> (i32, i32) {
    %c0_i32 = arith.constant 0 : i32
    %c0_i32_0 = arith.constant 0 : i32
    %c0_i32_1 = arith.constant 0 : i32
    return %c0_i32, %c0_i32_0 : i32, i32
  }
  func.func @transform_6(%arg0: i32) -> (i32, i32, i32) {
    %c0_i32 = arith.constant 0 : i32
    %c0_i32_0 = arith.constant 0 : i32
    %c0_i32_1 = arith.constant 0 : i32
    return %arg0, %c0_i32, %c0_i32_0 : i32, i32, i32
  }
}

</mosaic_0001>

<bundles_post_ra>
// kernel: generator_forward.2
= control target key start
LH: loop header
LB: loop body
LE: loop exit
PB: predicated region body
PF: predicated region fallthrough
CT: control target
= control target key end

     0   :  { %s1576_s12 = smov 0   ;;  %s2444_s0 = inlined_call_operand.vmem [shape: f32[2,1,128], index: 0, kind: input, shape index: {}]   ;;  %s2445_s1 = inlined_call_operand.vmem [shape: f32[128,2048], index: 1, kind: input, shape index: {}]   ;;  %s2446_s2 = inlined_call_operand.vmem [shape: f32[1,2048], index: 2, kind: input, shape index: {}]   ;;  %s2447_s3 = inlined_call_operand.vmem [shape: f32[2,1,2048], index: 3, kind: output, shape index: {}]  }
   0x1 LB: > { %s1272_s13 = sadd.s32 4294967295, %s1552_s12   ;;  %p1276_p0 = scmp.ge.s32.totalorder %s1552_s12, 1  ;;  %s1552_s12 = sphi %s1576_s12, %s13_s12  }
   0x2   : > { %p135_p1 = scmp.lt.s32.totalorder %s1552_s12, 3 }
   0x4   : > { %p136_p2 = pnand %p1276_p0, %p135_p1 }
   0x5   : > { %v165_v0 = vld [vmem:[%s2445_s1 + $0x8] sm:$0xff] (!%p136_p2)  ;;  %v167_v2 = vld [vmem:[%s2445_s1 + $0x18] sm:$0xff] (!%p136_p2)  ;;  %v164_v5 = vld [vmem:[%s2445_s1] sm:$0xff] (!%p136_p2)  ;;  %v1554_v7 = vmov (!%p136_p2), 0.0   ;;  %p1753_p3 = scmp.lt.s32.totalorder (!%p136_p2), %s1272_s13, 1 }
   0x6   : > { %139 = sbr.rel (%p136_p2) target bundleno = 368 (0x170), region = 32  ;;  %v181_v1 = vld [vmem:[%s2445_s1 + $0x88] sm:$0xff] (!%p136_p2)  ;;  %v183_v4 = vld [vmem:[%s2445_s1 + $0x98] sm:$0xff] (!%p136_p2)  ;;  %v180_v6 = vld [vmem:[%s2445_s1 + $0x80] sm:$0xff] (!%p136_p2)  ;;  %568 = vmatprep.mubr.f32.mxu0 (!%p136_p2), %v1554_v7  ;;  %639 = vmatprep.mubr.f32.mxu1 (!%p136_p2), %v1554_v7 }
   0x7   : > { %v1280_v3 = vpack.c.bf16 (!%p136_p2), %v181_v1, %v165_v0  ;;  %v1312_v8 = vpack.c.bf16 (!%p136_p2), %v183_v4, %v167_v2  ;;  %v1282_v9 = vpack.c.bf16 (!%p136_p2), %v180_v6, %v164_v5  ;;  %v166_v10 = vld [vmem:[%s2445_s1 + $0x10] sm:$0xff] (!%p136_p2)  ;;  %v197_v12 = vld [vmem:[%s2445_s1 + $0x108] sm:$0xff] (!%p136_p2)  ;;  %v199_v15 = vld [vmem:[%s2445_s1 + $0x118] sm:$0xff] (!%p136_p2) }
   0x8   : > { %v182_v11 = vld [vmem:[%s2445_s1 + $0x90] sm:$0xff] (!%p136_p2)  ;;  %v213_v14 = vld [vmem:[%s2445_s1 + $0x188] sm:$0xff] (!%p136_p2)  ;;  %v215_v16 = vld [vmem:[%s2445_s1 + $0x198] sm:$0xff] (!%p136_p2) }
   0x9   : > { %1281 = vmatprep.subr.bf16.mxu0 (!%p136_p2), %v1280_v3  ;;  %v1314_v13 = vpack.c.bf16 (!%p136_p2), %v182_v11, %v166_v10  ;;  %1313 = vmatprep.subr.bf16.mxu1 (!%p136_p2), %v1312_v8  ;;  %v1284_v17 = vpack.c.bf16 (!%p136_p2), %v213_v14, %v197_v12  ;;  %v1316_v18 = vpack.c.bf16 (!%p136_p2), %v215_v16, %v199_v15  ;;  %v196_v19 = vld [vmem:[%s2445_s1 + $0x100] sm:$0xff] (!%p136_p2)  ;;  %v198_v21 = vld [vmem:[%s2445_s1 + $0x110] sm:$0xff] (!%p136_p2)  ;;  %v229_v24 = vld [vmem:[%s2445_s1 + $0x208] sm:$0xff] (!%p136_p2) }
   0xa   : > { %1283 = vmatpush1.bf16.msra.mxu0 (!%p136_p2), %v1282_v9  ;;  %v212_v20 = vld [vmem:[%s2445_s1 + $0x180] sm:$0xff] (!%p136_p2)  ;;  %v214_v23 = vld [vmem:[%s2445_s1 + $0x190] sm:$0xff] (!%p136_p2)  ;;  %v245_v25 = vld [vmem:[%s2445_s1 + $0x288] sm:$0xff] (!%p136_p2) }
   0xb   : > { %1315 = vmatpush1.bf16.msra.mxu1 (!%p136_p2), %v1314_v13  ;;  %v1286_v22 = vpack.c.bf16 (!%p136_p2), %v212_v20, %v196_v19  ;;  %1285 = vmatprep.subr.bf16.mxu0 (!%p136_p2), %v1284_v17  ;;  %v1318_v26 = vpack.c.bf16 (!%p136_p2), %v214_v23, %v198_v21  ;;  %v1288_v27 = vpack.c.bf16 (!%p136_p2), %v245_v25, %v229_v24  ;;  %v231_v28 = vld [vmem:[%s2445_s1 + $0x218] sm:$0xff] (!%p136_p2)  ;;  %v228_v30 = vld [vmem:[%s2445_s1 + $0x200] sm:$0xff] (!%p136_p2)  ;;  %v230_v33 = vld [vmem:[%s2445_s1 + $0x210] sm:$0xff] (!%p136_p2) }
   0xc   : > { %1317 = vmatprep.subr.bf16.mxu1 (!%p136_p2), %v1316_v18  ;;  %v247_v29 = vld [vmem:[%s2445_s1 + $0x298] sm:$0xff] (!%p136_p2)  ;;  %v244_v32 = vld [vmem:[%s2445_s1 + $0x280] sm:$0xff] (!%p136_p2)  ;;  %v246_v34 = vld [vmem:[%s2445_s1 + $0x290] sm:$0xff] (!%p136_p2) }
   0xd   : > { %v1320_v31 = vpack.c.bf16 %v247_v29, %v231_v28  ;;  %v1290_v35 = vpack.c.bf16 %v244_v32, %v228_v30  ;;  %v261_v36 = vld [vmem:[%s2445_s1 + $0x308] sm:$0xff]  ;;  %v263_v38 = vld [vmem:[%s2445_s1 + $0x318] sm:$0xff]  ;;  %v1322_v39 = vpack.c.bf16 %v246_v34, %v230_v33  ;;  %v260_v42 = vld [vmem:[%s2445_s1 + $0x300] sm:$0xff]  ;;  %s2450_s13 = smov (!%p1753_p3, %s1272_s13), 1 }
   0xe   : > { %1287 = vmatpush1.bf16.msra.mxu0 %v1286_v22  ;;  %v277_v37 = vld [vmem:[%s2445_s1 + $0x388] sm:$0xff]  ;;  %v279_v41 = vld [vmem:[%s2445_s1 + $0x398] sm:$0xff]  ;;  %v276_v43 = vld [vmem:[%s2445_s1 + $0x380] sm:$0xff]  ;;  %s158_s28 = scalar_lea.vmem %s2444_s0, %s2450_s13  ;;  %s1277_s5 = sshll.u32 %s2450_s13, 4 }
   0xf   : > { %1319 = vmatpush1.bf16.msra.mxu1 %v1318_v26  ;;  %1289 = vmatprep.subr.bf16.mxu0 %v1288_v27  ;;  %v1292_v40 = vpack.c.bf16 %v277_v37, %v261_v36  ;;  %v1324_v44 = vpack.c.bf16 %v279_v41, %v263_v38  ;;  %v262_v45 = vld [vmem:[%s2445_s1 + $0x310] sm:$0xff]  ;;  %v293_v47 = vld [vmem:[%s2445_s1 + $0x408] sm:$0xff]  ;;  %v295_v49 = vld [vmem:[%s2445_s1 + $0x418] sm:$0xff]  ;;  %v1294_v51 = vpack.c.bf16 %v276_v43, %v260_v42  ;;  %s2420_s8 = scalar_lea.vmem %s2447_s3, %s1277_s5 }
  0x10   : > { %1321 = vmatprep.subr.bf16.mxu1 %v1320_v31  ;;  %v278_v46 = vld [vmem:[%s2445_s1 + $0x390] sm:$0xff]  ;;  %v309_v48 = vld [vmem:[%s2445_s1 + $0x488] sm:$0xff]  ;;  %v311_v50 = vld [vmem:[%s2445_s1 + $0x498] sm:$0xff] }
  0x11   : > { %v1326_v52 = vpack.c.bf16 %v278_v46, %v262_v45  ;;  %v1296_v53 = vpack.c.bf16 %v309_v48, %v293_v47  ;;  %v292_v54 = vld [vmem:[%s2445_s1 + $0x400] sm:$0xff]  ;;  %v294_v56 = vld [vmem:[%s2445_s1 + $0x410] sm:$0xff]  ;;  %v1328_v57 = vpack.c.bf16 %v311_v50, %v295_v49  ;;  %v325_v59 = vld [vmem:[%s2445_s1 + $0x508] sm:$0xff] }
  0x12   : > { %1291 = vmatpush1.bf16.msra.mxu0 %v1290_v35  ;;  %v308_v55 = vld [vmem:[%s2445_s1 + $0x480] sm:$0xff]  ;;  %v310_v58 = vld [vmem:[%s2445_s1 + $0x490] sm:$0xff]  ;;  %v341_v60 = vld [vmem:[%s2445_s1 + $0x588] sm:$0xff] }
  0x13   : > { %1323 = vmatpush1.bf16.msra.mxu1 %v1322_v39  ;;  %1293 = vmatprep.subr.bf16.mxu0 %v1292_v40  ;;  %v327_v61 = vld [vmem:[%s2445_s1 + $0x518] sm:$0xff]  ;;  %v1298_v63 = vpack.c.bf16 %v308_v55, %v292_v54  ;;  %v1330_v0 = vpack.c.bf16 %v310_v58, %v294_v56  ;;  %v1300_v1 = vpack.c.bf16 %v341_v60, %v325_v59  ;;  %v324_v2 = vld [vmem:[%s2445_s1 + $0x500] sm:$0xff]  ;;  %v326_v4 = vld [vmem:[%s2445_s1 + $0x510] sm:$0xff] }
  0x14   : > { %1325 = vmatprep.subr.bf16.mxu1 %v1324_v44  ;;  %v343_v62 = vld [vmem:[%s2445_s1 + $0x598] sm:$0xff]  ;;  %v340_v3 = vld [vmem:[%s2445_s1 + $0x580] sm:$0xff]  ;;  %v342_v6 = vld [vmem:[%s2445_s1 + $0x590] sm:$0xff] }
  0x15   : > { %v1332_v5 = vpack.c.bf16 %v343_v62, %v327_v61  ;;  %v357_v8 = vld [vmem:[%s2445_s1 + $0x608] sm:$0xff]  ;;  %v359_v10 = vld [vmem:[%s2445_s1 + $0x618] sm:$0xff]  ;;  %v1302_v12 = vpack.c.bf16 %v340_v3, %v324_v2  ;;  %v1334_v13 = vpack.c.bf16 %v342_v6, %v326_v4  ;;  %v356_v15 = vld [vmem:[%s2445_s1 + $0x600] sm:$0xff] }
  0x16   : > { %1295 = vmatpush1.bf16.msra.mxu0 %v1294_v51  ;;  %v373_v9 = vld [vmem:[%s2445_s1 + $0x688] sm:$0xff]  ;;  %v375_v11 = vld [vmem:[%s2445_s1 + $0x698] sm:$0xff]  ;;  %v372_v16 = vld [vmem:[%s2445_s1 + $0x680] sm:$0xff] }
  0x17   : > { %1327 = vmatpush1.bf16.msra.mxu1 %v1326_v52  ;;  %1297 = vmatprep.subr.bf16.mxu0 %v1296_v53  ;;  %v1304_v14 = vpack.c.bf16 %v373_v9, %v357_v8  ;;  %v358_v17 = vld [vmem:[%s2445_s1 + $0x610] sm:$0xff]  ;;  %v1336_v18 = vpack.c.bf16 %v375_v11, %v359_v10  ;;  %v389_v20 = vld [vmem:[%s2445_s1 + $0x708] sm:$0xff]  ;;  %v391_v22 = vld [vmem:[%s2445_s1 + $0x718] sm:$0xff]  ;;  %v1306_v24 = vpack.c.bf16 %v372_v16, %v356_v15 }
  0x18   : > { %1329 = vmatprep.subr.bf16.mxu1 %v1328_v57  ;;  %v374_v19 = vld [vmem:[%s2445_s1 + $0x690] sm:$0xff]  ;;  %v405_v21 = vld [vmem:[%s2445_s1 + $0x788] sm:$0xff]  ;;  %v407_v23 = vld [vmem:[%s2445_s1 + $0x798] sm:$0xff] }
  0x19   : > { %v1338_v25 = vpack.c.bf16 %v374_v19, %v358_v17  ;;  %v1308_v26 = vpack.c.bf16 %v405_v21, %v389_v20  ;;  %v388_v27 = vld [vmem:[%s2445_s1 + $0x700] sm:$0xff]  ;;  %v390_v29 = vld [vmem:[%s2445_s1 + $0x710] sm:$0xff]  ;;  %v1340_v30 = vpack.c.bf16 %v407_v23, %v391_v22  ;;  %v169_v32 = vld [vmem:[%s2445_s1 + $0x28] sm:$0xff] }
  0x1a   : > { %1299 = vmatpush1.bf16.msra.mxu0 %v1298_v63  ;;  %v404_v28 = vld [vmem:[%s2445_s1 + $0x780] sm:$0xff]  ;;  %v406_v31 = vld [vmem:[%s2445_s1 + $0x790] sm:$0xff]  ;;  %v185_v33 = vld [vmem:[%s2445_s1 + $0xa8] sm:$0xff] }
  0x1b   : > { %1331 = vmatpush1.bf16.msra.mxu1 %v1330_v0  ;;  %1301 = vmatprep.subr.bf16.mxu0 %v1300_v1  ;;  %v171_v34 = vld [vmem:[%s2445_s1 + $0x38] sm:$0xff]  ;;  %v1310_v36 = vpack.c.bf16 %v404_v28, %v388_v27  ;;  %v1342_v37 = vpack.c.bf16 %v406_v31, %v390_v29  ;;  %v1344_v38 = vpack.c.bf16 %v185_v33, %v169_v32  ;;  %v168_v39 = vld [vmem:[%s2445_s1 + $0x20] sm:$0xff]  ;;  %v170_v41 = vld [vmem:[%s2445_s1 + $0x30] sm:$0xff] }
  0x1c   : > { %1333 = vmatprep.subr.bf16.mxu1 %v1332_v5  ;;  %v187_v35 = vld [vmem:[%s2445_s1 + $0xb8] sm:$0xff]  ;;  %v184_v40 = vld [vmem:[%s2445_s1 + $0xa0] sm:$0xff]  ;;  %v186_v43 = vld [vmem:[%s2445_s1 + $0xb0] sm:$0xff] }
  0x1d   : > { %v1376_v42 = vpack.c.bf16 %v187_v35, %v171_v34  ;;  %v201_v44 = vld [vmem:[%s2445_s1 + $0x128] sm:$0xff]  ;;  %v203_v46 = vld [vmem:[%s2445_s1 + $0x138] sm:$0xff]  ;;  %v1830_v48 = vld [vmem:[%s158_s28] sm:$0x1]  ;;  %v1346_v49 = vpack.c.bf16 %v184_v40, %v168_v39  ;;  %v1378_v50 = vpack.c.bf16 %v186_v43, %v170_v41 }
  0x1e   : > { %1303 = vmatpush1.bf16.msra.mxu0 %v1302_v12  ;;  %v217_v45 = vld [vmem:[%s2445_s1 + $0x1a8] sm:$0xff]  ;;  %v219_v47 = vld [vmem:[%s2445_s1 + $0x1b8] sm:$0xff]  ;;  %v200_v52 = vld [vmem:[%s2445_s1 + $0x120] sm:$0xff] }
  0x1f   : > { %1335 = vmatpush1.bf16.msra.mxu1 %v1334_v13  ;;  %1305 = vmatprep.subr.bf16.mxu0 %v1304_v14  ;;  %v1348_v51 = vpack.c.bf16 %v217_v45, %v201_v44  ;;  %v216_v53 = vld [vmem:[%s2445_s1 + $0x1a0] sm:$0xff]  ;;  %v202_v54 = vld [vmem:[%s2445_s1 + $0x130] sm:$0xff]  ;;  %v1380_v55 = vpack.c.bf16 %v219_v47, %v203_v46  ;;  %v233_v57 = vld [vmem:[%s2445_s1 + $0x228] sm:$0xff] }
  0x20   : > { %1337 = vmatprep.subr.bf16.mxu1 %v1336_v18  ;;  %v218_v56 = vld [vmem:[%s2445_s1 + $0x1b0] sm:$0xff]  ;;  %v249_v58 = vld [vmem:[%s2445_s1 + $0x2a8] sm:$0xff]  ;;  %v235_v59 = vld [vmem:[%s2445_s1 + $0x238] sm:$0xff]  ;;  %v1350_v61 = vpack.c.bf16 %v216_v53, %v200_v52 }
  0x21   : > { %v251_v60 = vld [vmem:[%s2445_s1 + $0x2b8] sm:$0xff]  ;;  %v1382_v62 = vpack.c.bf16 %v218_v56, %v202_v54  ;;  %v1352_v63 = vpack.c.bf16 %v249_v58, %v233_v57  ;;  %v232_v0 = vld [vmem:[%s2445_s1 + $0x220] sm:$0xff]  ;;  %v234_v2 = vld [vmem:[%s2445_s1 + $0x230] sm:$0xff] }
  0x22   : > { %1307 = vmatpush1.bf16.msra.mxu0 %v1306_v24  ;;  %v248_v1 = vld [vmem:[%s2445_s1 + $0x2a0] sm:$0xff]  ;;  %v1384_v3 = vpack.c.bf16 %v251_v60, %v235_v59  ;;  %v250_v4 = vld [vmem:[%s2445_s1 + $0x2b0] sm:$0xff]  ;;  %v265_v5 = vld [vmem:[%s2445_s1 + $0x328] sm:$0xff] }
  0x23   : > { %1339 = vmatpush1.bf16.msra.mxu1 %v1338_v25  ;;  %1309 = vmatprep.subr.bf16.mxu0 %v1308_v26  ;;  %v281_v6 = vld [vmem:[%s2445_s1 + $0x3a8] sm:$0xff]  ;;  %v267_v8 = vld [vmem:[%s2445_s1 + $0x338] sm:$0xff]  ;;  %v1354_v10 = vpack.c.bf16 %v248_v1, %v232_v0  ;;  %v1386_v11 = vpack.c.bf16 %v250_v4, %v234_v2  ;;  %v264_v13 = vld [vmem:[%s2445_s1 + $0x320] sm:$0xff] }
  0x24   : > { %1341 = vmatprep.subr.bf16.mxu1 %v1340_v30  ;;  %v283_v9 = vld [vmem:[%s2445_s1 + $0x3b8] sm:$0xff]  ;;  %v1356_v12 = vpack.c.bf16 %v281_v6, %v265_v5  ;;  %v280_v14 = vld [vmem:[%s2445_s1 + $0x3a0] sm:$0xff]  ;;  %v266_v15 = vld [vmem:[%s2445_s1 + $0x330] sm:$0xff] }
  0x25   : > { %v1388_v16 = vpack.c.bf16 %v283_v9, %v267_v8  ;;  %v282_v17 = vld [vmem:[%s2445_s1 + $0x3b0] sm:$0xff]  ;;  %v297_v18 = vld [vmem:[%s2445_s1 + $0x428] sm:$0xff]  ;;  %v299_v20 = vld [vmem:[%s2445_s1 + $0x438] sm:$0xff]  ;;  %v1358_v22 = vpack.c.bf16 %v280_v14, %v264_v13 }
  0x26   : > { %1311 = vmatpush1.bf16.msra.mxu0 %v1310_v36  ;;  %v313_v19 = vld [vmem:[%s2445_s1 + $0x4a8] sm:$0xff]  ;;  %v315_v21 = vld [vmem:[%s2445_s1 + $0x4b8] sm:$0xff]  ;;  %v1390_v23 = vpack.c.bf16 %v282_v17, %v266_v15  ;;  %v296_v25 = vld [vmem:[%s2445_s1 + $0x420] sm:$0xff] }
  0x27   : > { %1343 = vmatpush1.bf16.msra.mxu1 %v1342_v37  ;;  %1345 = vmatprep.subr.bf16.mxu0 %v1344_v38  ;;  %v1360_v24 = vpack.c.bf16 %v313_v19, %v297_v18  ;;  %v312_v26 = vld [vmem:[%s2445_s1 + $0x4a0] sm:$0xff]  ;;  %v298_v27 = vld [vmem:[%s2445_s1 + $0x430] sm:$0xff]  ;;  %v1392_v28 = vpack.c.bf16 %v315_v21, %v299_v20  ;;  %v329_v30 = vld [vmem:[%s2445_s1 + $0x528] sm:$0xff] }
  0x28   : > { %1377 = vmatprep.subr.bf16.mxu1 %v1376_v42  ;;  %v314_v29 = vld [vmem:[%s2445_s1 + $0x4b0] sm:$0xff]  ;;  %v345_v31 = vld [vmem:[%s2445_s1 + $0x5a8] sm:$0xff]  ;;  %v331_v32 = vld [vmem:[%s2445_s1 + $0x538] sm:$0xff]  ;;  %v1362_v34 = vpack.c.bf16 %v312_v26, %v296_v25 }
  0x29   : > { %569 = vmatmul.mubr.f32.vlgmr.msra.gmra.mrb[0].mxu0 %v1830_v48  ;;  %v347_v33 = vld [vmem:[%s2445_s1 + $0x5b8] sm:$0xff]  ;;  %v1394_v35 = vpack.c.bf16 %v314_v29, %v298_v27  ;;  %v1364_v36 = vpack.c.bf16 %v345_v31, %v329_v30  ;;  %v328_v37 = vld [vmem:[%s2445_s1 + $0x520] sm:$0xff]  ;;  %v330_v39 = vld [vmem:[%s2445_s1 + $0x530] sm:$0xff] }
  0x2a   : > { %640 = vmatmul.mubr.f32.vlgmr.msra.gmra.mrb[0].mxu1 %v1830_v48  ;;  %1347 = vmatpush1.bf16.msra.mxu0 %v1346_v49  ;;  %v344_v38 = vld [vmem:[%s2445_s1 + $0x5a0] sm:$0xff]  ;;  %v1396_v40 = vpack.c.bf16 %v347_v33, %v331_v32  ;;  %v346_v41 = vld [vmem:[%s2445_s1 + $0x5b0] sm:$0xff]  ;;  %v361_v42 = vld [vmem:[%s2445_s1 + $0x628] sm:$0xff] }
  0x2b   : > { %1379 = vmatpush1.bf16.msra.mxu1 %v1378_v50  ;;  %1349 = vmatprep.subr.bf16.mxu0 %v1348_v51  ;;  %v377_v43 = vld [vmem:[%s2445_s1 + $0x6a8] sm:$0xff]  ;;  %v363_v44 = vld [vmem:[%s2445_s1 + $0x638] sm:$0xff]  ;;  %v1366_v46 = vpack.c.bf16 %v344_v38, %v328_v37  ;;  %v1398_v47 = vpack.c.bf16 %v346_v41, %v330_v39  ;;  %v360_v50 = vld [vmem:[%s2445_s1 + $0x620] sm:$0xff] }
  0x2c   : > { %1381 = vmatprep.subr.bf16.mxu1 %v1380_v55  ;;  %710 = vmatprep.mubr.f32.mxu0 %v1554_v7  ;;  %v379_v45 = vld [vmem:[%s2445_s1 + $0x6b8] sm:$0xff]  ;;  %v1368_v49 = vpack.c.bf16 %v377_v43, %v361_v42  ;;  %v376_v51 = vld [vmem:[%s2445_s1 + $0x6a0] sm:$0xff]  ;;  %v362_v52 = vld [vmem:[%s2445_s1 + $0x630] sm:$0xff] }
  0x2d   : > { %781 = vmatprep.mubr.f32.mxu1 %v1554_v7  ;;  %v1400_v53 = vpack.c.bf16 %v379_v45, %v363_v44  ;;  %v378_v54 = vld [vmem:[%s2445_s1 + $0x6b0] sm:$0xff]  ;;  %v393_v55 = vld [vmem:[%s2445_s1 + $0x728] sm:$0xff]  ;;  %v395_v57 = vld [vmem:[%s2445_s1 + $0x738] sm:$0xff]  ;;  %v1370_v59 = vpack.c.bf16 %v376_v51, %v360_v50 }
  0x2e   : > { %1351 = vmatpush1.bf16.msra.mxu0 %v1350_v61  ;;  %v409_v56 = vld [vmem:[%s2445_s1 + $0x7a8] sm:$0xff]  ;;  %v411_v58 = vld [vmem:[%s2445_s1 + $0x7b8] sm:$0xff]  ;;  %v1402_v60 = vpack.c.bf16 %v378_v54, %v362_v52  ;;  %v394_v0 = vld [vmem:[%s2445_s1 + $0x730] sm:$0xff] }
  0x2f   : > { %1383 = vmatpush1.bf16.msra.mxu1 %v1382_v62  ;;  %1353 = vmatprep.subr.bf16.mxu0 %v1352_v63  ;;  %v1372_v61 = vpack.c.bf16 %v409_v56, %v393_v55  ;;  %v392_v62 = vld [vmem:[%s2445_s1 + $0x720] sm:$0xff]  ;;  %v1404_v1 = vpack.c.bf16 %v411_v58, %v395_v57  ;;  %v410_v2 = vld [vmem:[%s2445_s1 + $0x7b0] sm:$0xff]  ;;  %v189_v4 = vld [vmem:[%s2445_s1 + $0xc8] sm:$0xff] }
  0x30   : > { %1385 = vmatprep.subr.bf16.mxu1 %v1384_v3  ;;  %v408_v63 = vld [vmem:[%s2445_s1 + $0x7a0] sm:$0xff]  ;;  %v173_v3 = vld [vmem:[%s2445_s1 + $0x48] sm:$0xff]  ;;  %v175_v5 = vld [vmem:[%s2445_s1 + $0x58] sm:$0xff]  ;;  %v1406_v9 = vpack.c.bf16 %v410_v2, %v394_v0 }
  0x31   : > { %v191_v6 = vld [vmem:[%s2445_s1 + $0xd8] sm:$0xff]  ;;  %v1374_v8 = vpack.c.bf16 %v408_v63, %v392_v62  ;;  %v174_v13 = vld [vmem:[%s2445_s1 + $0x50] sm:$0xff]  ;;  %v221_v17 = vld [vmem:[%s2445_s1 + $0x1c8] sm:$0xff] }
  0x32   : > { %1355 = vmatpush1.bf16.msra.mxu0 %v1354_v10  ;;  %v1408_v10 = vpack.c.bf16 %v189_v4, %v173_v3  ;;  %v1440_v14 = vpack.c.bf16 %v191_v6, %v175_v5  ;;  %v190_v15 = vld [vmem:[%s2445_s1 + $0xd0] sm:$0xff]  ;;  %v207_v18 = vld [vmem:[%s2445_s1 + $0x158] sm:$0xff]  ;;  %v253_v29 = vld [vmem:[%s2445_s1 + $0x2c8] sm:$0xff] }
  0x33   : > { %1387 = vmatpush1.bf16.msra.mxu1 %v1386_v11  ;;  %1357 = vmatprep.subr.bf16.mxu0 %v1356_v12  ;;  %v172_v11 = vld [vmem:[%s2445_s1 + $0x40] sm:$0xff]  ;;  %v223_v19 = vld [vmem:[%s2445_s1 + $0x1d8] sm:$0xff]  ;;  %v1442_v21 = vpack.c.bf16 %v190_v15, %v174_v13  ;;  %v206_v25 = vld [vmem:[%s2445_s1 + $0x150] sm:$0xff] }
  0x34   : > { %1389 = vmatprep.subr.bf16.mxu1 %v1388_v16  ;;  %v188_v12 = vld [vmem:[%s2445_s1 + $0xc0] sm:$0xff]  ;;  %v205_v16 = vld [vmem:[%s2445_s1 + $0x148] sm:$0xff]  ;;  %v1444_v26 = vpack.c.bf16 %v223_v19, %v207_v18  ;;  %v222_v27 = vld [vmem:[%s2445_s1 + $0x1d0] sm:$0xff] }
  0x35   : > { %v1410_v20 = vpack.c.bf16 %v188_v12, %v172_v11  ;;  %v239_v30 = vld [vmem:[%s2445_s1 + $0x258] sm:$0xff]  ;;  %v1446_v33 = vpack.c.bf16 %v222_v27, %v206_v25  ;;  %v238_v37 = vld [vmem:[%s2445_s1 + $0x250] sm:$0xff]  ;;  %v285_v41 = vld [vmem:[%s2445_s1 + $0x3c8] sm:$0xff] }
  0x36   : > { %1359 = vmatpush1.bf16.msra.mxu0 %v1358_v22  ;;  %v1412_v22 = vpack.c.bf16 %v221_v17, %v205_v16  ;;  %v255_v31 = vld [vmem:[%s2445_s1 + $0x2d8] sm:$0xff]  ;;  %v254_v39 = vld [vmem:[%s2445_s1 + $0x2d0] sm:$0xff]  ;;  %v317_v54 = vld [vmem:[%s2445_s1 + $0x4c8] sm:$0xff] }
  0x37   : > { %1391 = vmatpush1.bf16.msra.mxu1 %v1390_v23  ;;  %1361 = vmatprep.subr.bf16.mxu0 %v1360_v24  ;;  %v204_v23 = vld [vmem:[%s2445_s1 + $0x140] sm:$0xff]  ;;  %v1448_v38 = vpack.c.bf16 %v255_v31, %v239_v30  ;;  %v271_v42 = vld [vmem:[%s2445_s1 + $0x358] sm:$0xff]  ;;  %v1450_v45 = vpack.c.bf16 %v254_v39, %v238_v37  ;;  %v270_v50 = vld [vmem:[%s2445_s1 + $0x350] sm:$0xff] }
  0x38   : > { %1393 = vmatprep.subr.bf16.mxu1 %v1392_v28  ;;  %v220_v24 = vld [vmem:[%s2445_s1 + $0x1c0] sm:$0xff]  ;;  %v237_v28 = vld [vmem:[%s2445_s1 + $0x248] sm:$0xff]  ;;  %v287_v43 = vld [vmem:[%s2445_s1 + $0x3d8] sm:$0xff] }
  0x39   : > { %v1414_v32 = vpack.c.bf16 %v220_v24, %v204_v23  ;;  %v1452_v51 = vpack.c.bf16 %v287_v43, %v271_v42  ;;  %v286_v52 = vld [vmem:[%s2445_s1 + $0x3d0] sm:$0xff]  ;;  %v303_v55 = vld [vmem:[%s2445_s1 + $0x458] sm:$0xff]  ;;  %v349_v2 = vld [vmem:[%s2445_s1 + $0x5c8] sm:$0xff] }
  0x3a   : > { %1363 = vmatpush1.bf16.msra.mxu0 %v1362_v34  ;;  %v1416_v34 = vpack.c.bf16 %v253_v29, %v237_v28  ;;  %v319_v56 = vld [vmem:[%s2445_s1 + $0x4d8] sm:$0xff]  ;;  %v1454_v58 = vpack.c.bf16 %v286_v52, %v270_v50  ;;  %v302_v62 = vld [vmem:[%s2445_s1 + $0x450] sm:$0xff]  ;;  %v381_v15 = vld [vmem:[%s2445_s1 + $0x6c8] sm:$0xff] }
  0x3b   : > { %1395 = vmatpush1.bf16.msra.mxu1 %v1394_v35  ;;  %1365 = vmatprep.subr.bf16.mxu0 %v1364_v36  ;;  %v236_v35 = vld [vmem:[%s2445_s1 + $0x240] sm:$0xff]  ;;  %v1456_v63 = vpack.c.bf16 %v319_v56, %v303_v55  ;;  %v318_v0 = vld [vmem:[%s2445_s1 + $0x4d0] sm:$0xff]  ;;  %v335_v3 = vld [vmem:[%s2445_s1 + $0x558] sm:$0xff] }
  0x3c   : > { %1397 = vmatprep.subr.bf16.mxu1 %v1396_v40  ;;  %v252_v36 = vld [vmem:[%s2445_s1 + $0x2c0] sm:$0xff]  ;;  %v269_v40 = vld [vmem:[%s2445_s1 + $0x348] sm:$0xff]  ;;  %v351_v4 = vld [vmem:[%s2445_s1 + $0x5d8] sm:$0xff]  ;;  %v1458_v6 = vpack.c.bf16 %v318_v0, %v302_v62 }
  0x3d   : > { %v1418_v44 = vpack.c.bf16 %v252_v36, %v236_v35  ;;  %v334_v11 = vld [vmem:[%s2445_s1 + $0x550] sm:$0xff]  ;;  %v1460_v12 = vpack.c.bf16 %v351_v4, %v335_v3  ;;  %v367_v16 = vld [vmem:[%s2445_s1 + $0x658] sm:$0xff]  ;;  %v413_v27 = vld [vmem:[%s2445_s1 + $0x7c8] sm:$0xff] }
  0x3e   : > { %1367 = vmatpush1.bf16.msra.mxu0 %v1366_v46  ;;  %v1420_v46 = vpack.c.bf16 %v285_v41, %v269_v40  ;;  %v350_v13 = vld [vmem:[%s2445_s1 + $0x5d0] sm:$0xff]  ;;  %v383_v17 = vld [vmem:[%s2445_s1 + $0x6d8] sm:$0xff]  ;;  %v193_v39 = vld [vmem:[%s2445_s1 + $0xe8] sm:$0xff] }
  0x3f   : > { %1399 = vmatpush1.bf16.msra.mxu1 %v1398_v47  ;;  %1369 = vmatprep.subr.bf16.mxu0 %v1368_v49  ;;  %v268_v47 = vld [vmem:[%s2445_s1 + $0x340] sm:$0xff]  ;;  %v1462_v19 = vpack.c.bf16 %v350_v13, %v334_v11  ;;  %v366_v23 = vld [vmem:[%s2445_s1 + $0x650] sm:$0xff]  ;;  %v1464_v24 = vpack.c.bf16 %v383_v17, %v367_v16  ;;  %v399_v28 = vld [vmem:[%s2445_s1 + $0x758] sm:$0xff] }
  0x40   : > { %1401 = vmatprep.subr.bf16.mxu1 %v1400_v53  ;;  %v284_v49 = vld [vmem:[%s2445_s1 + $0x3c0] sm:$0xff]  ;;  %v301_v53 = vld [vmem:[%s2445_s1 + $0x448] sm:$0xff]  ;;  %v382_v25 = vld [vmem:[%s2445_s1 + $0x6d0] sm:$0xff] }
  0x41   : > { %v1422_v57 = vpack.c.bf16 %v284_v49, %v268_v47  ;;  %v415_v29 = vld [vmem:[%s2445_s1 + $0x7d8] sm:$0xff]  ;;  %v1466_v31 = vpack.c.bf16 %v382_v25, %v366_v23  ;;  %v398_v35 = vld [vmem:[%s2445_s1 + $0x750] sm:$0xff]  ;;  %v225_v52 = vld [vmem:[%s2445_s1 + $0x1e8] sm:$0xff] }
  0x42   : > { %1371 = vmatpush1.bf16.msra.mxu0 %v1370_v59  ;;  %v1424_v59 = vpack.c.bf16 %v317_v54, %v301_v53  ;;  %v1468_v36 = vpack.c.bf16 %v415_v29, %v399_v28  ;;  %v414_v37 = vld [vmem:[%s2445_s1 + $0x7d0] sm:$0xff]  ;;  %v179_v40 = vld [vmem:[%s2445_s1 + $0x78] sm:$0xff]  ;;  %v257_v0 = vld [vmem:[%s2445_s1 + $0x2e8] sm:$0xff] }
  0x43   : > { %1403 = vmatpush1.bf16.msra.mxu1 %v1402_v60  ;;  %1373 = vmatprep.subr.bf16.mxu0 %v1372_v61  ;;  %v300_v60 = vld [vmem:[%s2445_s1 + $0x440] sm:$0xff]  ;;  %v195_v41 = vld [vmem:[%s2445_s1 + $0xf8] sm:$0xff]  ;;  %v1470_v43 = vpack.c.bf16 %v414_v37, %v398_v35  ;;  %v178_v47 = vld [vmem:[%s2445_s1 + $0x70] sm:$0xff] }
  0x44   : > { %1405 = vmatprep.subr.bf16.mxu1 %v1404_v1  ;;  %v316_v61 = vld [vmem:[%s2445_s1 + $0x4c0] sm:$0xff]  ;;  %v333_v1 = vld [vmem:[%s2445_s1 + $0x548] sm:$0xff]  ;;  %v1504_v49 = vpack.c.bf16 %v195_v41, %v179_v40  ;;  %v194_v50 = vld [vmem:[%s2445_s1 + $0xf0] sm:$0xff] }
  0x45   : > { %v1426_v5 = vpack.c.bf16 %v316_v61, %v300_v60  ;;  %v211_v53 = vld [vmem:[%s2445_s1 + $0x178] sm:$0xff]  ;;  %v1506_v56 = vpack.c.bf16 %v194_v50, %v178_v47  ;;  %v210_v60 = vld [vmem:[%s2445_s1 + $0x170] sm:$0xff]  ;;  %v289_v13 = vld [vmem:[%s2445_s1 + $0x3e8] sm:$0xff] }
  0x46   : > { %1375 = vmatpush1.bf16.msra.mxu0 %v1374_v8  ;;  %v1428_v8 = vpack.c.bf16 %v349_v2, %v333_v1  ;;  %v227_v54 = vld [vmem:[%s2445_s1 + $0x1f8] sm:$0xff]  ;;  %v226_v62 = vld [vmem:[%s2445_s1 + $0x1f0] sm:$0xff]  ;;  %v305_v23 = vld [vmem:[%s2445_s1 + $0x468] sm:$0xff] }
  0x47   : > { %1407 = vmatpush1.bf16.msra.mxu1 %v1406_v9  ;;  %1409 = vmatprep.subr.bf16.mxu0 %v1408_v10  ;;  %v332_v9 = vld [vmem:[%s2445_s1 + $0x540] sm:$0xff]  ;;  %v1508_v61 = vpack.c.bf16 %v227_v54, %v211_v53  ;;  %v243_v1 = vld [vmem:[%s2445_s1 + $0x278] sm:$0xff]  ;;  %v1510_v4 = vpack.c.bf16 %v226_v62, %v210_v60  ;;  %v258_v11 = vld [vmem:[%s2445_s1 + $0x2f0] sm:$0xff] }
  0x48   : > { %1441 = vmatprep.subr.bf16.mxu1 %v1440_v14  ;;  %v348_v10 = vld [vmem:[%s2445_s1 + $0x5c0] sm:$0xff]  ;;  %v365_v14 = vld [vmem:[%s2445_s1 + $0x648] sm:$0xff]  ;;  %v259_v2 = vld [vmem:[%s2445_s1 + $0x2f8] sm:$0xff] }
  0x49   : > { %711 = vmatmul.mubr.f32.vlgmr.msra.gmra.mrb[2].mxu0 %v1830_v48  ;;  %v1430_v18 = vpack.c.bf16 %v348_v10, %v332_v9  ;;  %v242_v9 = vld [vmem:[%s2445_s1 + $0x270] sm:$0xff]  ;;  %v1512_v10 = vpack.c.bf16 %v259_v2, %v243_v1  ;;  %v307_v25 = vld [vmem:[%s2445_s1 + $0x478] sm:$0xff]  ;;  %v337_v35 = vld [vmem:[%s2445_s1 + $0x568] sm:$0xff] }
  0x4a   : > { %782 = vmatmul.mubr.f32.vlgmr.msra.gmra.mrb[2].mxu1 %v1830_v48  ;;  %1411 = vmatpush1.bf16.msra.mxu0 %v1410_v20  ;;  %v1432_v20 = vpack.c.bf16 %v381_v15, %v365_v14  ;;  %v275_v14 = vld [vmem:[%s2445_s1 + $0x378] sm:$0xff]  ;;  %v1514_v17 = vpack.c.bf16 %v258_v11, %v242_v9  ;;  %v369_v47 = vld [vmem:[%s2445_s1 + $0x668] sm:$0xff]  ;;  %v424_v11 = vlaneseq }
  0x4b   : > { %1443 = vmatpush1.bf16.msra.mxu1 %v1442_v21  ;;  %1413 = vmatprep.subr.bf16.mxu0 %v1412_v22  ;;  %v364_v21 = vld [vmem:[%s2445_s1 + $0x640] sm:$0xff]  ;;  %v291_v15 = vld [vmem:[%s2445_s1 + $0x3f8] sm:$0xff]  ;;  %v401_v60 = vld [vmem:[%s2445_s1 + $0x768] sm:$0xff] }
  0x4c   : > { %1445 = vmatprep.subr.bf16.mxu1 %v1444_v26  ;;  %852 = vmatprep.mubr.f32.mxu0 %v1554_v7  ;;  %v380_v22 = vld [vmem:[%s2445_s1 + $0x6c0] sm:$0xff]  ;;  %v397_v26 = vld [vmem:[%s2445_s1 + $0x748] sm:$0xff]  ;;  %v339_v37 = vld [vmem:[%s2445_s1 + $0x578] sm:$0xff] }
  0x4d   : > { %923 = vmatprep.mubr.f32.mxu1 %v1554_v7  ;;  %v1434_v30 = vpack.c.bf16 %v380_v22, %v364_v21  ;;  %v274_v21 = vld [vmem:[%s2445_s1 + $0x370] sm:$0xff]  ;;  %v371_v50 = vld [vmem:[%s2445_s1 + $0x678] sm:$0xff] }
  0x4e   : > { %1415 = vmatpush1.bf16.msra.mxu0 %v1414_v32  ;;  %v1436_v32 = vpack.c.bf16 %v413_v27, %v397_v26  ;;  %v290_v22 = vld [vmem:[%s2445_s1 + $0x3f0] sm:$0xff]  ;;  %v323_v26 = vld [vmem:[%s2445_s1 + $0x4f8] sm:$0xff] }
  0x4f   : > { %1447 = vmatpush1.bf16.msra.mxu1 %v1446_v33  ;;  %1417 = vmatprep.subr.bf16.mxu0 %v1416_v34  ;;  %v396_v33 = vld [vmem:[%s2445_s1 + $0x740] sm:$0xff]  ;;  %v1518_v28 = vpack.c.bf16 %v290_v22, %v274_v21  ;;  %v403_v62 = vld [vmem:[%s2445_s1 + $0x778] sm:$0xff] }
  0x50   : > { %1449 = vmatprep.subr.bf16.mxu1 %v1448_v38  ;;  %v412_v34 = vld [vmem:[%s2445_s1 + $0x7c0] sm:$0xff]  ;;  %v177_v38 = vld [vmem:[%s2445_s1 + $0x68] sm:$0xff] }
  0x51   : > { %v1438_v42 = vpack.c.bf16 %v412_v34, %v396_v33  ;;  %v1520_v33 = vpack.c.bf16 %v323_v26, %v307_v25  ;;  %v322_v34 = vld [vmem:[%s2445_s1 + $0x4f0] sm:$0xff] }
  0x52   : > { %1419 = vmatpush1.bf16.msra.mxu0 %v1418_v44  ;;  %v1472_v44 = vpack.c.bf16 %v193_v39, %v177_v38  ;;  %v355_v38 = vld [vmem:[%s2445_s1 + $0x5f8] sm:$0xff] }
  0x53   : > { %1451 = vmatpush1.bf16.msra.mxu1 %v1450_v45  ;;  %1421 = vmatprep.subr.bf16.mxu0 %v1420_v46  ;;  %v176_v45 = vld [vmem:[%s2445_s1 + $0x60] sm:$0xff] }
  0x54   : > { %1453 = vmatprep.subr.bf16.mxu1 %v1452_v51  ;;  %v192_v46 = vld [vmem:[%s2445_s1 + $0xe0] sm:$0xff]  ;;  %v209_v51 = vld [vmem:[%s2445_s1 + $0x168] sm:$0xff] }
  0x55   : > { %v1474_v55 = vpack.c.bf16 %v192_v46, %v176_v45  ;;  %v1524_v45 = vpack.c.bf16 %v355_v38, %v339_v37  ;;  %v354_v46 = vld [vmem:[%s2445_s1 + $0x5f0] sm:$0xff] }
  0x56   : > { %1423 = vmatpush1.bf16.msra.mxu0 %v1422_v57  ;;  %v1476_v57 = vpack.c.bf16 %v225_v52, %v209_v51  ;;  %v387_v51 = vld [vmem:[%s2445_s1 + $0x6f8] sm:$0xff] }
  0x57   : > { %1455 = vmatpush1.bf16.msra.mxu1 %v1454_v58  ;;  %1425 = vmatprep.subr.bf16.mxu0 %v1424_v59  ;;  %v208_v58 = vld [vmem:[%s2445_s1 + $0x160] sm:$0xff] }
  0x58   : > { %1457 = vmatprep.subr.bf16.mxu1 %v1456_v63  ;;  %v224_v59 = vld [vmem:[%s2445_s1 + $0x1e0] sm:$0xff]  ;;  %v241_v63 = vld [vmem:[%s2445_s1 + $0x268] sm:$0xff] }
  0x59   : > { %v1478_v3 = vpack.c.bf16 %v224_v59, %v208_v58  ;;  %v1528_v58 = vpack.c.bf16 %v387_v51, %v371_v50  ;;  %v386_v59 = vld [vmem:[%s2445_s1 + $0x6f0] sm:$0xff] }
  0x5a   : > { %1427 = vmatpush1.bf16.msra.mxu0 %v1426_v5  ;;  %v1480_v5 = vpack.c.bf16 %v257_v0, %v241_v63  ;;  %v419_v63 = vld [vmem:[%s2445_s1 + $0x7f8] sm:$0xff] }
  0x5b   : > { %1459 = vmatpush1.bf16.msra.mxu1 %v1458_v6  ;;  %1429 = vmatprep.subr.bf16.mxu0 %v1428_v8  ;;  %v240_v6 = vld [vmem:[%s2445_s1 + $0x260] sm:$0xff] }
  0x5c   : > { %1461 = vmatprep.subr.bf16.mxu1 %v1460_v12  ;;  %v256_v8 = vld [vmem:[%s2445_s1 + $0x2e0] sm:$0xff]  ;;  %v273_v12 = vld [vmem:[%s2445_s1 + $0x368] sm:$0xff] }
  0x5d   : > { %v1482_v16 = vpack.c.bf16 %v256_v8, %v240_v6  ;;  %v402_v6 = vld [vmem:[%s2445_s1 + $0x770] sm:$0xff] }
  0x5e   : > { %1431 = vmatpush1.bf16.msra.mxu0 %v1430_v18  ;;  %v1484_v18 = vpack.c.bf16 %v289_v13, %v273_v12  ;;  %v418_v8 = vld [vmem:[%s2445_s1 + $0x7f0] sm:$0xff]  ;;  %v2386_v12 = vshrl.u32 %v424_v11, 7 }
  0x5f   : > { %1463 = vmatpush1.bf16.msra.mxu1 %v1462_v19  ;;  %1433 = vmatprep.subr.bf16.mxu0 %v1432_v20  ;;  %v272_v19 = vld [vmem:[%s2445_s1 + $0x360] sm:$0xff] }
  0x60   : > { %1465 = vmatprep.subr.bf16.mxu1 %v1464_v24  ;;  %v288_v20 = vld [vmem:[%s2445_s1 + $0x3e0] sm:$0xff]  ;;  %v321_v24 = vld [vmem:[%s2445_s1 + $0x4e8] sm:$0xff]  ;;  %v426_v13 = vsub.s32 0, %v2386_v12 }
  0x61   : > { %v1486_v27 = vpack.c.bf16 %v288_v20, %v272_v19  ;;  %v1488_v29 = vpack.c.bf16 %v321_v24, %v305_v23  ;;  %v1555_v20 = vmov 1966171168  }
  0x62   : > { %1435 = vmatpush1.bf16.msra.mxu0 %v1434_v30  ;;  %v304_v30 = vld [vmem:[%s2445_s1 + $0x460] sm:$0xff]  ;;  %v1125_v21 = vunpack.c.l.s4 %v1555_v20 }
  0x63   : > { %1467 = vmatpush1.bf16.msra.mxu1 %v1466_v31  ;;  %1437 = vmatprep.subr.bf16.mxu0 %v1436_v32  ;;  %v320_v31 = vld [vmem:[%s2445_s1 + $0x4e0] sm:$0xff]  ;;  %v306_v32 = vld [vmem:[%s2445_s1 + $0x470] sm:$0xff] }
  0x64   : > { %1469 = vmatprep.subr.bf16.mxu1 %v1468_v36  ;;  %v353_v36 = vld [vmem:[%s2445_s1 + $0x5e8] sm:$0xff]  ;;  %v1490_v39 = vpack.c.bf16 %v320_v31, %v304_v30  ;;  %v1522_v40 = vpack.c.bf16 %v322_v34, %v306_v32 }
  0x65   : > { %v1492_v41 = vpack.c.bf16 %v353_v36, %v337_v35 }
  0x66   : > { %1439 = vmatpush1.bf16.msra.mxu0 %v1438_v42  ;;  %v336_v42 = vld [vmem:[%s2445_s1 + $0x560] sm:$0xff] }
  0x67   : > { %1471 = vmatpush1.bf16.msra.mxu1 %v1470_v43  ;;  %1473 = vmatprep.subr.bf16.mxu0 %v1472_v44  ;;  %v352_v43 = vld [vmem:[%s2445_s1 + $0x5e0] sm:$0xff]  ;;  %v338_v44 = vld [vmem:[%s2445_s1 + $0x570] sm:$0xff] }
  0x68   : > { %1505 = vmatprep.subr.bf16.mxu1 %v1504_v49  ;;  %v385_v49 = vld [vmem:[%s2445_s1 + $0x6e8] sm:$0xff]  ;;  %v1494_v52 = vpack.c.bf16 %v352_v43, %v336_v42  ;;  %v1526_v53 = vpack.c.bf16 %v354_v46, %v338_v44  ;;  %v450_v46 = vsub.s32 6, %v2386_v12 }
  0x69   : > { %853 = vmatmul.mubr.f32.vlgmr.msra.gmra.mrb[4].mxu0 %v1830_v48  ;;  %v1496_v54 = vpack.c.bf16 %v385_v49, %v369_v47  ;;  %v446_v47 = vsub.s32 5, %v2386_v12  ;;  %v454_v49 = vsub.s32 7, %v2386_v12 }
  0x6a   : > { %924 = vmatmul.mubr.f32.vlgmr.msra.gmra.mrb[4].mxu1 %v1830_v48  ;;  %1475 = vmatpush1.bf16.msra.mxu0 %v1474_v55  ;;  %v368_v55 = vld [vmem:[%s2445_s1 + $0x660] sm:$0xff] }
  0x6b   : > { %1507 = vmatpush1.bf16.msra.mxu1 %v1506_v56  ;;  %1477 = vmatprep.subr.bf16.mxu0 %v1476_v57  ;;  %v384_v56 = vld [vmem:[%s2445_s1 + $0x6e0] sm:$0xff]  ;;  %v370_v57 = vld [vmem:[%s2445_s1 + $0x670] sm:$0xff] }
  0x6c   : > { %1509 = vmatprep.subr.bf16.mxu1 %v1508_v61  ;;  %994 = vmatprep.mubr.f32.mxu0 %v1554_v7  ;;  %v417_v61 = vld [vmem:[%s2445_s1 + $0x7e8] sm:$0xff]  ;;  %v1498_v0 = vpack.c.bf16 %v384_v56, %v368_v55  ;;  %v1530_v1 = vpack.c.bf16 %v386_v59, %v370_v57 }
  0x6d   : > { %1065 = vmatprep.mubr.f32.mxu1 %v1554_v7  ;;  %v1516_v7 = vpack.c.bf16 %v291_v15, %v275_v14  ;;  %v1500_v2 = vpack.c.bf16 %v417_v61, %v401_v60  ;;  %v420_v14 = vld [vmem:[%s2446_s2] sm:$0xff]  ;;  %v434_v15 = vsub.s32 2, %v2386_v12 }
  0x6e   : > { %1479 = vmatpush1.bf16.msra.mxu0 %v1478_v3  ;;  %v400_v3 = vld [vmem:[%s2445_s1 + $0x760] sm:$0xff]  ;;  %v451_v51 = vrot.slane %v420_v14, %v450_v46 }
  0x6f   : > { %1511 = vmatpush1.bf16.msra.mxu1 %v1510_v4  ;;  %1481 = vmatprep.subr.bf16.mxu0 %v1480_v5  ;;  %v416_v4 = vld [vmem:[%s2445_s1 + $0x7e0] sm:$0xff]  ;;  %v1532_v5 = vpack.c.bf16 %v419_v63, %v403_v62 }
  0x70   : > { %1513 = vmatprep.subr.bf16.mxu1 %v1512_v10  ;;  %v1502_v9 = vpack.c.bf16 %v416_v4, %v400_v3  ;;  %v1534_v10 = vpack.c.bf16 %v418_v8, %v402_v6 }
  0x72   : > { %1483 = vmatpush1.bf16.msra.mxu0 %v1482_v16  ;;  %v430_v16 = vsub.s32 1, %v2386_v12 }
  0x73   : > { %1515 = vmatpush1.bf16.msra.mxu1 %v1514_v17  ;;  %1485 = vmatprep.subr.bf16.mxu0 %v1484_v18  ;;  %v438_v17 = vsub.s32 3, %v2386_v12  ;;  %v427_v18 = vrot.slane %v420_v14, %v426_v13 }
  0x74   : > { %1517 = vmatprep.subr.bf16.mxu1 %v1516_v7  ;;  %v431_v19 = vrot.slane %v420_v14, %v430_v16 }
  0x75   : > { %v439_v7 = vrot.slane %v420_v14, %v438_v17 }
  0x76   : > { %1487 = vmatpush1.bf16.msra.mxu0 %v1486_v27 }
  0x77   : > { %1519 = vmatpush1.bf16.msra.mxu1 %v1518_v28  ;;  %1489 = vmatprep.subr.bf16.mxu0 %v1488_v29  ;;  %v1126_v28 = vunpack.c.0.s8 %v1125_v21 }
  0x78   : > { %1521 = vmatprep.subr.bf16.mxu1 %v1520_v33 }
  0x79   : > { %v2404_v38 = vsub.s32 %v1126_v28, %v2386_v12 }
  0x7a   : > { %1491 = vmatpush1.bf16.msra.mxu0 %v1490_v39 }
  0x7b   : > { %1523 = vmatpush1.bf16.msra.mxu1 %v1522_v40  ;;  %1493 = vmatprep.subr.bf16.mxu0 %v1492_v41 }
  0x7c   : > { %1525 = vmatprep.subr.bf16.mxu1 %v1524_v45  ;;  %v442_v45 = vsub.s32 4, %v2386_v12 }
  0x7e   : > { %1495 = vmatpush1.bf16.msra.mxu0 %v1494_v52  ;;  %v443_v50 = vrot.slane %v420_v14, %v442_v45  ;;  %v447_v52 = vrot.slane %v420_v14, %v446_v47 }
  0x7f   : > { %1527 = vmatpush1.bf16.msra.mxu1 %v1526_v53  ;;  %1497 = vmatprep.subr.bf16.mxu0 %v1496_v54  ;;  %v455_v53 = vrot.slane %v420_v14, %v454_v49 }
  0x80   : > { %1529 = vmatprep.subr.bf16.mxu1 %v1528_v58 }
  0x82   : > { %1499 = vmatpush1.bf16.msra.mxu0 %v1498_v0 }
  0x83   : > { %1531 = vmatpush1.bf16.msra.mxu1 %v1530_v1  ;;  %1501 = vmatprep.subr.bf16.mxu0 %v1500_v2 }
  0x84   : > { %1533 = vmatprep.subr.bf16.mxu1 %v1532_v5 }
  0x86   : > { %1503 = vmatpush1.bf16.msra.mxu0 %v1502_v9 }
  0x87   : > { %1535 = vmatpush1.bf16.msra.mxu1 %v1534_v10 }
  0x89   : > { %995 = vmatmul.mubr.f32.vlgmr.msra.gmra.mrb[6].mxu0 %v1830_v48 }
  0x8a   : > { %1066 = vmatmul.mubr.f32.vlgmr.msra.gmra.mrb[6].mxu1 %v1830_v48  ;;  %v435_v48 = vrot.slane %v420_v14, %v434_v15 }
  0xfc   : > { %v570_v22 = vpop.f32.mrb[0].mxu0 }
  0xfd   : > { %v571_v23 = vadd.f32 %v570_v22, %v427_v18  ;;  %v641_v24 = vpop.f32.mrb[0].mxu1  ;;  %v572_v25 = vpop.f32.mrb[1].mxu0 }
  0xfe   : > { %v642_v26 = vadd.f32 %v641_v24, %v435_v48  ;;  %v573_v27 = vadd.f32 %v572_v25, %v431_v19  ;;  %v643_v29 = vpop.f32.mrb[1].mxu1  ;;  %v421_v19 = vld [vmem:[%s2446_s2 + $0x8] sm:$0xff] }
  0xff   : > { %v1072_v30 = vmul.f32 0.2, %v571_v23  ;;  %v644_v31 = vadd.f32 %v643_v29, %v439_v7  ;;  %v459_v20 = vrot.slane %v421_v19, %v426_v13  ;;  %v467_v21 = vrot.slane %v421_v19, %v434_v15 }
 0x100   : > { %v1074_v32 = vmul.f32 0.2, %v642_v26  ;;  %v1073_v33 = vmul.f32 0.2, %v573_v27  ;;  %v463_v7 = vrot.slane %v421_v19, %v430_v16  ;;  %v471_v22 = vrot.slane %v421_v19, %v438_v17 }
 0x101   : > { %v1088_v34 = vmax.f32 %v571_v23, %v1072_v30  ;;  %v1075_v35 = vmul.f32 0.2, %v644_v31 }
 0x102   : > { %v1090_v36 = vmax.f32 %v642_v26, %v1074_v32  ;;  %v1089_v37 = vmax.f32 %v573_v27, %v1073_v33 }
 0x103   : > { %v1091_v39 = vmax.f32 %v644_v31, %v1075_v35 }
 0x104   : > { %v1120_v40 = vcombine.low %v1088_v34, %v1089_v37 }
 0x105   : > { %v1121_v41 = vcombine.low %v1090_v36, %v1091_v39 }
 0x106   : > { %v1130_v42 = vrot.slane %v1120_v40, %v2404_v38  ;;  %v475_v40 = vrot.slane %v421_v19, %v442_v45 }
 0x107   : > { %v1137_v43 = vrot.slane %v1121_v41, %v2404_v38  ;;  %v483_v41 = vrot.slane %v421_v19, %v450_v46 }
 0x109   : > { %v1152_v44 = vcombine.low %v1130_v42, %v1137_v43  ;;  %v479_v42 = vrot.slane %v421_v19, %v446_v47  ;;  %v487_v43 = vrot.slane %v421_v19, %v454_v49 }
 0x10b   : > { %v1160_v14 = vrot.slane %v1152_v44, %v2404_v38 }
 0x11c   : > { %v712_v54 = vpop.f32.mrb[2].mxu0 }
 0x11d   : > { %v713_v55 = vadd.f32 %v712_v54, %v443_v50  ;;  %v783_v56 = vpop.f32.mrb[2].mxu1  ;;  %v714_v57 = vpop.f32.mrb[3].mxu0 }
 0x11e   : > { %v784_v58 = vadd.f32 %v783_v56, %v451_v51  ;;  %v715_v59 = vadd.f32 %v714_v57, %v447_v52  ;;  %v785_v60 = vpop.f32.mrb[3].mxu1 }
 0x11f   : > { %v1076_v61 = vmul.f32 0.2, %v713_v55  ;;  %v786_v62 = vadd.f32 %v785_v60, %v455_v53 }
 0x120   : > { %v1078_v63 = vmul.f32 0.2, %v784_v58  ;;  %v1077_v0 = vmul.f32 0.2, %v715_v59 }
 0x121   : > { %v1092_v1 = vmax.f32 %v713_v55, %v1076_v61  ;;  %v1079_v2 = vmul.f32 0.2, %v786_v62 }
 0x122   : > { %v1094_v3 = vmax.f32 %v784_v58, %v1078_v63  ;;  %v1093_v4 = vmax.f32 %v715_v59, %v1077_v0 }
 0x123   : > { %v1095_v5 = vmax.f32 %v786_v62, %v1079_v2 }
 0x124   : > { %v1122_v6 = vcombine.low %v1092_v1, %v1093_v4 }
 0x125   : > { %v1123_v8 = vcombine.low %v1094_v3, %v1095_v5 }
 0x126   : > { %v1144_v9 = vrot.slane %v1122_v6, %v2404_v38 }
 0x127   : > { %v1151_v10 = vrot.slane %v1123_v8, %v2404_v38 }
 0x129   : > { %v1153_v11 = vcombine.low %v1144_v9, %v1151_v10 }
 0x12b   : > { %v1167_v18 = vrot.slane %v1153_v11, %v2404_v38 }
 0x12d   : > { %v1168_v48 = vcombine.low %v1160_v14, %v1167_v18 }
 0x12f   : > { %1220 = vst [vmem:[%s2420_s8] sm:$0xff] %v1168_v48 }
 0x13c   : > { %v854_v23 = vpop.f32.mrb[4].mxu0 }
 0x13d   : > { %v855_v24 = vadd.f32 %v854_v23, %v459_v20  ;;  %v925_v25 = vpop.f32.mrb[4].mxu1  ;;  %v856_v26 = vpop.f32.mrb[5].mxu0 }
 0x13e   : > { %v926_v27 = vadd.f32 %v925_v25, %v467_v21  ;;  %v857_v28 = vadd.f32 %v856_v26, %v463_v7  ;;  %v927_v29 = vpop.f32.mrb[5].mxu1 }
 0x13f   : > { %v1080_v30 = vmul.f32 0.2, %v855_v24  ;;  %v928_v31 = vadd.f32 %v927_v29, %v471_v22 }
 0x140   : > { %v1082_v32 = vmul.f32 0.2, %v926_v27  ;;  %v1081_v13 = vmul.f32 0.2, %v857_v28 }
 0x141   : > { %v1096_v33 = vmax.f32 %v855_v24, %v1080_v30  ;;  %v1083_v34 = vmul.f32 0.2, %v928_v31 }
 0x142   : > { %v1098_v15 = vmax.f32 %v926_v27, %v1082_v32  ;;  %v1097_v35 = vmax.f32 %v857_v28, %v1081_v13 }
 0x143   : > { %v1099_v36 = vmax.f32 %v928_v31, %v1083_v34 }
 0x144   : > { %v1169_v16 = vcombine.low %v1096_v33, %v1097_v35 }
 0x145   : > { %v1170_v37 = vcombine.low %v1098_v15, %v1099_v36 }
 0x146   : > { %v1179_v12 = vrot.slane %v1169_v16, %v2404_v38 }
 0x147   : > { %v1186_v17 = vrot.slane %v1170_v37, %v2404_v38 }
 0x149   : > { %v1201_v39 = vcombine.low %v1179_v12, %v1186_v17 }
 0x14b   : > { %v1209_v2 = vrot.slane %v1201_v39, %v2404_v38 }
 0x15c   : > { %v996_v44 = vpop.f32.mrb[6].mxu0 }
 0x15d   : > { %v997_v50 = vadd.f32 %v996_v44, %v475_v40  ;;  %v1067_v51 = vpop.f32.mrb[6].mxu1  ;;  %v998_v52 = vpop.f32.mrb[7].mxu0 }
 0x15e   : > { %v1068_v53 = vadd.f32 %v1067_v51, %v483_v41  ;;  %v999_v54 = vadd.f32 %v998_v52, %v479_v42  ;;  %v1069_v55 = vpop.f32.mrb[7].mxu1 }
 0x15f   : > { %v1084_v56 = vmul.f32 0.2, %v997_v50  ;;  %v1070_v57 = vadd.f32 %v1069_v55, %v487_v43 }
 0x160   : > { %v1086_v58 = vmul.f32 0.2, %v1068_v53  ;;  %v1085_v59 = vmul.f32 0.2, %v999_v54 }
 0x161   : > { %v1100_v60 = vmax.f32 %v997_v50, %v1084_v56  ;;  %v1087_v61 = vmul.f32 0.2, %v1070_v57 }
 0x162   : > { %v1102_v62 = vmax.f32 %v1068_v53, %v1086_v58  ;;  %v1101_v63 = vmax.f32 %v999_v54, %v1085_v59 }
 0x163   : > { %v1103_v45 = vmax.f32 %v1070_v57, %v1087_v61 }
 0x164   : > { %v1171_v46 = vcombine.low %v1100_v60, %v1101_v63 }
 0x165   : > { %v1172_v47 = vcombine.low %v1102_v62, %v1103_v45 }
 0x166   : > { %v1193_v49 = vrot.slane %v1171_v46, %v2404_v38 }
 0x167   : > { %v1200_v0 = vrot.slane %v1172_v47, %v2404_v38 }
 0x169   : > { %v1202_v1 = vcombine.low %v1193_v49, %v1200_v0 }
 0x16b   : > { %v1216_v3 = vrot.slane %v1202_v1, %v2404_v38 }
 0x16d   : > { %v1217_v4 = vcombine.low %v1209_v2, %v1216_v3 }
 0x16f   : > { %1221 = vst [vmem:[%s2420_s8 + $0x8] sm:$0xff] %v1217_v4 }
 0x170 PF: > { %s13_s12 = sadd.s32 1, %s1552_s12  }
 0x171   : > { %p10_p4 = scmp.ge.s32.totalorder %s13_s12, 4  }
 0x173   :  { %12 = sbr.rel (!%p10_p4) target bundleno = 1 (0x1), region = 62 }

// kernel: generator_forward.3
= control target key start
LH: loop header
LB: loop body
LE: loop exit
PB: predicated region body
PF: predicated region fallthrough
CT: control target
= control target key end

     0   :  { %s5734_s21 = smov 0   ;;  %s6836_s0 = inlined_call_operand.vmem [shape: f32[2,128,16], index: 0, kind: input, shape index: {}]   ;;  %s6837_s1 = inlined_call_operand.vmem [shape: f32[9,128,128], index: 1, kind: input, shape index: {}]   ;;  %s6838_s2 = inlined_call_operand.vmem [shape: f32[128,1], index: 2, kind: input, shape index: {}]   ;;  %s6839_s3 = inlined_call_operand.vmem [shape: f32[9,16,16], index: 3, kind: input, shape index: {}]   ;;  %s6840_s4 = inlined_call_operand.vmem [shape: f32[3,128], index: 4, kind: input, shape index: {}]   ;;  %s6841_s5 = inlined_call_operand.vmem [shape: f32[3,1], index: 5, kind: input, shape index: {}]   ;;  %s6842_s6 = inlined_call_operand.vmem [shape: f32[2,3,16], index: 6, kind: output, shape index: {}]  }
   0x1 LB: > { %s3636_s22 = sadd.s32 4294967295, %s5693_s21   ;;  %p3640_p0 = scmp.ge.s32.totalorder %s5693_s21, 1  ;;  %s5693_s21 = sphi %s5734_s21, %s16_s21  }
   0x2   : > { %p212_p1 = scmp.lt.s32.totalorder %s5693_s21, 3 }
   0x4   : > { %p213_p2 = pnand %p3640_p0, %p212_p1 }
   0x5   : > { %v3660_v0 = vld [vmem:[%s6839_s3 + $0x10] sm:$0xff] (!%p213_p2)  ;;  %v3661_v1 = vld [vmem:[%s6839_s3 + $0x18] sm:$0xff] (!%p213_p2)  ;;  %p241_p3 = scmp.lt.s32.totalorder (!%p213_p2), %s3636_s22, 1  ;;  %vm282_vm0 = vcmask (!%p213_p2), 130048   ;;  %vm5697_vm1 = vmmov (!%p213_p2), 0   ;;  %vm3581_vm2 = vcmask (!%p213_p2), 124928  }
   0x6   : > { %216 = sbr.rel (%p213_p2) target bundleno = 1331 (0x533), region = 44  ;;  %v5197_v2 = vpack.c.bf16 (!%p213_p2), %v3661_v1, %v3660_v0 }
   0x8   : > { %5198 = vmatprep.subr.bf16.mxu1 (!%p213_p2), %v5197_v2 }
   0x9   : > { %5200 = vmatpush3.bf16.msra.mxu1 (!%p213_p2), %v5197_v2 }
   0xd   : > { %s6844_s22 = smov (!%p241_p3, %s3636_s22), 1 }
   0xe   : > { %s3934_s27 = sshll.u32 %s6844_s22, 7  ;;  %s3643_s11 = sshll.u32 %s6844_s22, 2 }
   0xf   : > { %s5754_s30 = scalar_lea.vmem %s6836_s0, %s3934_s27  ;;  %s249_s14 = scalar_lea.vmem %s6842_s6, %s3643_s11 }
  0x10   : > { %v5757_v3 = vld [vmem:[%s5754_s30] sm:$0xff]  ;;  %v5760_v4 = vld [vmem:[%s5754_s30 + $0x8] sm:$0xff]  ;;  %v5763_v5 = vld [vmem:[%s5754_s30 + $0x10] sm:$0xff] }
  0x11   : > { %v5766_v6 = vld [vmem:[%s5754_s30 + $0x18] sm:$0xff]  ;;  %v5769_v7 = vld [vmem:[%s5754_s30 + $0x20] sm:$0xff]  ;;  %v266_v8 = vmul.f32 %v5757_v3, %v5757_v3  ;;  %v267_v9 = vmul.f32 %v5760_v4, %v5760_v4  ;;  %v268_v10 = vmul.f32 %v5763_v5, %v5763_v5  ;;  %v5780_v12 = vld [vmem:[%s5754_s30 + $0x28] sm:$0xff] }
  0x12   : > { %v269_v11 = vmul.f32 %v5766_v6, %v5766_v6  ;;  %v270_v14 = vmul.f32 %v5769_v7, %v5769_v7  ;;  %v5787_v16 = vld [vmem:[%s5754_s30 + $0x30] sm:$0xff]  ;;  %v271_v18 = vmul.f32 %v5780_v12, %v5780_v12  ;;  %v5794_v21 = vld [vmem:[%s5754_s30 + $0x38] sm:$0xff]  ;;  %v5800_v25 = vld [vmem:[%s5754_s30 + $0x40] sm:$0xff] }
  0x13   : > { %v283_v13 = vsel %vm282_vm0, %v266_v8, 0.0  ;;  %v284_v15 = vsel %vm282_vm0, %v267_v9, 0.0  ;;  %v286_v19 = vsel %vm282_vm0, %v268_v10, 0.0  ;;  %v272_v23 = vmul.f32 %v5787_v16, %v5787_v16  ;;  %v5806_v29 = vld [vmem:[%s5754_s30 + $0x48] sm:$0xff]  ;;  %v5812_v33 = vld [vmem:[%s5754_s30 + $0x50] sm:$0xff]  ;;  %v261_v37 = vld [vmem:[%s5754_s30 + $0x58] sm:$0xff] }
  0x14   : > { %v285_v17 = vadd.f32 %v284_v15, %v283_v13  ;;  %v288_v20 = vsel %vm282_vm0, %v269_v11, 0.0  ;;  %v290_v24 = vsel %vm282_vm0, %v270_v14, 0.0  ;;  %v273_v27 = vmul.f32 %v5794_v21, %v5794_v21  ;;  %v262_v41 = vld [vmem:[%s5754_s30 + $0x60] sm:$0xff]  ;;  %v263_v45 = vld [vmem:[%s5754_s30 + $0x68] sm:$0xff]  ;;  %v264_v49 = vld [vmem:[%s5754_s30 + $0x70] sm:$0xff] }
  0x15   : > { %v292_v28 = vsel %vm282_vm0, %v271_v18, 0.0  ;;  %v274_v31 = vmul.f32 %v5800_v25, %v5800_v25  ;;  %v294_v32 = vsel %vm282_vm0, %v272_v23, 0.0  ;;  %v275_v35 = vmul.f32 %v5806_v29, %v5806_v29  ;;  %v265_v53 = vld [vmem:[%s5754_s30 + $0x78] sm:$0xff] }
  0x16   : > { %v287_v22 = vadd.f32 %v286_v19, %v285_v17  ;;  %v296_v36 = vsel %vm282_vm0, %v273_v27, 0.0  ;;  %v276_v39 = vmul.f32 %v5812_v33, %v5812_v33  ;;  %v277_v43 = vmul.f32 %v261_v37, %v261_v37  ;;  %v340_v27 = vld [vmem:[%s6839_s3] sm:$0xff] }
  0x17   : > { %v298_v40 = vsel %vm282_vm0, %v274_v31, 0.0  ;;  %v300_v44 = vsel %vm282_vm0, %v275_v35, 0.0  ;;  %v278_v47 = vmul.f32 %v262_v41, %v262_v41  ;;  %v279_v51 = vmul.f32 %v263_v45, %v263_v45 }
  0x18   : > { %v289_v26 = vadd.f32 %v288_v20, %v287_v22  ;;  %v302_v48 = vsel %vm282_vm0, %v276_v39, 0.0  ;;  %v304_v52 = vsel %vm282_vm0, %v277_v43, 0.0  ;;  %v280_v55 = vmul.f32 %v264_v49, %v264_v49 }
  0x19   : > { %v306_v56 = vsel %vm282_vm0, %v278_v47, 0.0  ;;  %v281_v58 = vmul.f32 %v265_v53, %v265_v53  ;;  %v308_v59 = vsel %vm282_vm0, %v279_v51, 0.0 }
  0x1a   : > { %v291_v30 = vadd.f32 %v290_v24, %v289_v26  ;;  %v310_v61 = vsel %vm282_vm0, %v280_v55, 0.0 }
  0x1b   : > { %v312_v63 = vsel %vm282_vm0, %v281_v58, 0.0  ;;  %v3728_v58 = vld [vmem:[%s6839_s3 + $0x30] sm:$0xff] }
  0x1c   : > { %v293_v34 = vadd.f32 %v292_v28, %v291_v30  ;;  %v341_v28 = vld [vmem:[%s6839_s3 + $0x8] sm:$0xff]  ;;  %v3678_v30 = vld [vmem:[%s6837_s1 + $0x80] sm:$0xff] }
  0x1e   : > { %v295_v38 = vadd.f32 %v294_v32, %v293_v34 }
  0x20   : > { %v297_v42 = vadd.f32 %v296_v36, %v295_v38 }
  0x22   : > { %v299_v46 = vadd.f32 %v298_v40, %v297_v42 }
  0x24   : > { %v301_v50 = vadd.f32 %v300_v44, %v299_v46 }
  0x26   : > { %v303_v54 = vadd.f32 %v302_v48, %v301_v50 }
  0x28   : > { %v305_v57 = vadd.f32 %v304_v52, %v303_v54  ;;  %v3694_v52 = vld [vmem:[%s6839_s3 + $0x20] sm:$0xff] }
  0x2a   : > { %v307_v60 = vadd.f32 %v306_v56, %v305_v57 }
  0x2c   : > { %v309_v62 = vadd.f32 %v308_v59, %v307_v60  ;;  %v3729_v59 = vld [vmem:[%s6839_s3 + $0x38] sm:$0xff]  ;;  %v3679_v60 = vld [vmem:[%s6837_s1 + $0x88] sm:$0xff] }
  0x2e   : > { %v311_v0 = vadd.f32 %v310_v61, %v309_v62  ;;  %v3680_v61 = vld [vmem:[%s6837_s1 + $0x90] sm:$0xff]  ;;  %v5301_v62 = vpack.c.bf16 %v3729_v59, %v3728_v58 }
  0x30   : > { %v313_v1 = vadd.f32 %v312_v63, %v311_v0  ;;  %v3681_v63 = vld [vmem:[%s6837_s1 + $0x98] sm:$0xff]  ;;  %v3682_v0 = vld [vmem:[%s6837_s1 + $0xa0] sm:$0xff] }
  0x32   : > { %v314_v2 = vrot.slane %v313_v1, 4 }
  0x34   : > { %v315_v8 = vadd.f32 %v314_v2, %v313_v1  ;;  %v3683_v1 = vld [vmem:[%s6837_s1 + $0xa8] sm:$0xff]  ;;  %v3684_v2 = vld [vmem:[%s6837_s1 + $0xb0] sm:$0xff] }
  0x36   : > { %v316_v9 = vrot.slane %v315_v8, 2 }
  0x38   : > { %v317_v10 = vadd.f32 %v316_v9, %v315_v8  ;;  %v3685_v8 = vld [vmem:[%s6837_s1 + $0xb8] sm:$0xff]  ;;  %v3686_v9 = vld [vmem:[%s6837_s1 + $0xc0] sm:$0xff] }
  0x3a   : > { %v318_v11 = vrot.slane %v317_v10, 1 }
  0x3c   : > { %v319_v13 = vadd.f32 %v318_v11, %v317_v10  ;;  %v3687_v10 = vld [vmem:[%s6837_s1 + $0xc8] sm:$0xff]  ;;  %v3688_v11 = vld [vmem:[%s6837_s1 + $0xd0] sm:$0xff] }
  0x3e   : > { %v321_v14 = vmul.f32 0.0078125, %v319_v13  ;;  %v3689_v13 = vld [vmem:[%s6837_s1 + $0xd8] sm:$0xff] }
  0x40   : > { %v322_v15 = vadd.f32 1e-08, %v321_v14  ;;  %v3690_v14 = vld [vmem:[%s6837_s1 + $0xe0] sm:$0xff] }
  0x42   : > { %5683 = vrsqrt.f32 %v322_v15  ;;  %v3691_v15 = vld [vmem:[%s6837_s1 + $0xe8] sm:$0xff] }
  0x4c   : > { %v5684_v17 = vpop.eup %5683 }
  0x4d   : > { %v5833_v18 = vmul.f32 %v5684_v17, %v5757_v3  ;;  %v5836_v19 = vmul.f32 %v5684_v17, %v5760_v4  ;;  %v5839_v20 = vmul.f32 %v5684_v17, %v5763_v5  ;;  %v5846_v22 = vmul.f32 %v5684_v17, %v5766_v6 }
  0x4e   : > { %v5851_v3 = vmul.f32 %v5684_v17, %v5769_v7  ;;  %v5858_v4 = vmul.f32 %v5684_v17, %v5780_v12  ;;  %v5863_v5 = vmul.f32 %v5684_v17, %v5787_v16  ;;  %v5868_v6 = vmul.f32 %v5684_v17, %v5794_v21 }
  0x4f   : > { %4434 = vmatprep.mubr.msk.f32.mxu1 %vm282_vm0, %v5833_v18  ;;  %4406 = vmatprep.mubr.msk.f32.mxu0 %vm282_vm0, %v5833_v18  ;;  %v5873_v7 = vmul.f32 %v5684_v17, %v5800_v25  ;;  %v5878_v12 = vmul.f32 %v5684_v17, %v5806_v29  ;;  %v5883_v16 = vmul.f32 %v5684_v17, %v5812_v33 }
  0x50   : > { %4435 = vmatmul.mubr.msk.f32.vlgmr.msra.gmra.mrb[0].mxu1 %vm282_vm0, %v5836_v19  ;;  %v5887_v21 = vmul.f32 %v5684_v17, %v261_v37  ;;  %v5891_v23 = vmul.f32 %v5684_v17, %v262_v41  ;;  %v5895_v24 = vmul.f32 %v5684_v17, %v263_v45  ;;  %v5899_v25 = vmul.f32 %v5684_v17, %v264_v49 }
  0x51   : > { %4437 = vmatprep.mubr.msk.f32.mxu1 %vm282_vm0, %v5839_v20  ;;  %v5903_v26 = vmul.f32 %v5684_v17, %v265_v53  ;;  %v5193_v29 = vpack.c.bf16 %v341_v28, %v340_v27  ;;  %v3695_v53 = vld [vmem:[%s6839_s3 + $0x28] sm:$0xff]  ;;  %v3692_v17 = vld [vmem:[%s6837_s1 + $0xf0] sm:$0xff]  ;;  %v3693_v27 = vld [vmem:[%s6837_s1 + $0xf8] sm:$0xff] }
  0x52   : > { %v5265_v57 = vpack.c.bf16 %v3695_v53, %v3694_v52  ;;  %v3762_v28 = vld [vmem:[%s6839_s3 + $0x40] sm:$0xff] }
  0x53   : > { %5194 = vmatprep.subr.bf16.mxu0 %v5193_v29 }
  0x54   : > { %4438 = vmatmul.mubr.msk.f32.gmra.mrb[2].mxu1 %vm282_vm0, %v5846_v22  ;;  %5196 = vmatpush3.bf16.msra.mxu0 %v5193_v29  ;;  %v3763_v29 = vld [vmem:[%s6839_s3 + $0x48] sm:$0xff] }
  0x55   : > { %4440 = vmatprep.mubr.msk.f32.mxu1 %vm282_vm0, %v5851_v3 }
  0x57   : > { %4407 = vmatmul.mubr.msk.f32.vlgmr.msra.gmra.mrb[0].mxu0 %vm282_vm0, %v5836_v19 }
  0x58   : > { %4441 = vmatmul.mubr.msk.f32.gmra.mrb[4].mxu1 %vm282_vm0, %v5858_v4  ;;  %4409 = vmatprep.mubr.msk.f32.mxu0 %vm282_vm0, %v5839_v20 }
  0x59   : > { %4443 = vmatprep.mubr.msk.f32.mxu1 %vm282_vm0, %v5863_v5 }
  0x5b   : > { %4410 = vmatmul.mubr.msk.f32.gmra.mrb[2].mxu0 %vm282_vm0, %v5846_v22 }
  0x5c   : > { %4444 = vmatmul.mubr.msk.f32.gmra.mrb[6].mxu1 %vm282_vm0, %v5868_v6  ;;  %4412 = vmatprep.mubr.msk.f32.mxu0 %vm282_vm0, %v5851_v3 }
  0x5d   : > { %4446 = vmatprep.mubr.msk.f32.mxu1 %vm282_vm0, %v5873_v7 }
  0x5f   : > { %4413 = vmatmul.mubr.msk.f32.gmra.mrb[4].mxu0 %vm282_vm0, %v5858_v4 }
  0x60   : > { %4447 = vmatmul.mubr.msk.f32.gmra.mrb[8].mxu1 %vm282_vm0, %v5878_v12  ;;  %4415 = vmatprep.mubr.msk.f32.mxu0 %vm282_vm0, %v5863_v5 }
  0x61   : > { %4449 = vmatprep.mubr.msk.f32.mxu1 %vm282_vm0, %v5883_v16 }
  0x63   : > { %4416 = vmatmul.mubr.msk.f32.gmra.mrb[6].mxu0 %vm282_vm0, %v5868_v6 }
  0x64   : > { %4450 = vmatmul.mubr.msk.f32.gmra.mrb[10].mxu1 %vm282_vm0, %v5887_v21  ;;  %4418 = vmatprep.mubr.msk.f32.mxu0 %vm282_vm0, %v5873_v7 }
  0x65   : > { %4452 = vmatprep.mubr.msk.f32.mxu1 %vm282_vm0, %v5891_v23 }
  0x67   : > { %4419 = vmatmul.mubr.msk.f32.gmra.mrb[8].mxu0 %vm282_vm0, %v5878_v12 }
  0x68   : > { %4453 = vmatmul.mubr.msk.f32.gmra.mrb[12].mxu1 %vm282_vm0, %v5895_v24  ;;  %4421 = vmatprep.mubr.msk.f32.mxu0 %vm282_vm0, %v5883_v16 }
  0x69   : > { %4455 = vmatprep.mubr.msk.f32.mxu1 %vm282_vm0, %v5899_v25 }
  0x6b   : > { %4422 = vmatmul.mubr.msk.f32.gmra.mrb[10].mxu0 %vm282_vm0, %v5887_v21 }
  0x6c   : > { %4456 = vmatmul.mubr.msk.f32.gmra.mrb[14].mxu1 %vm282_vm0, %v5903_v26  ;;  %4424 = vmatprep.mubr.msk.f32.mxu0 %vm282_vm0, %v5891_v23 }
  0x6d   : > { %4490 = vmatprep.mubr.f32.mxu1 %v3678_v30  ;;  %v5337_v30 = vpack.c.bf16 %v3763_v29, %v3762_v28  ;;  %v547_v28 = vld [vmem:[%s6837_s1 + $0x60] sm:$0xff]  ;;  %v548_v29 = vld [vmem:[%s6837_s1 + $0x68] sm:$0xff] }
  0x6f   : > { %4425 = vmatmul.mubr.msk.f32.gmra.mrb[12].mxu0 %vm282_vm0, %v5895_v24 }
  0x70   : > { %4427 = vmatprep.mubr.msk.f32.mxu0 %vm282_vm0, %v5899_v25 }
  0x73   : > { %4428 = vmatmul.mubr.msk.f32.gmra.mrb[14].mxu0 %vm282_vm0, %v5903_v26 }
 0x123   : > { %v4436_v31 = vpop.f32.mrb[0].mxu1 }
 0x124   : > { %v620_v32 = vpop.f32.mrb[1].mxu1 }
 0x125   : > { %v5201_v33 = vpack.c.bf16 %v4436_v31, %v620_v32  ;;  %v3796_v31 = vld [vmem:[%s6839_s3 + $0x50] sm:$0xff]  ;;  %v3797_v32 = vld [vmem:[%s6839_s3 + $0x58] sm:$0xff] }
 0x127   : > { %v4439_v34 = vpop.f32.mrb[2].mxu1  ;;  %5202 = vmatprep.subr.bf16.mxu1 %v5201_v33 }
 0x128   : > { %v630_v35 = vpop.f32.mrb[3].mxu1  ;;  %5204 = vmatpush3.bf16.msra.mxu1 %v5201_v33  ;;  %v5373_v33 = vpack.c.bf16 %v3797_v32, %v3796_v31  ;;  %v550_v31 = vld [vmem:[%s6837_s1 + $0x78] sm:$0xff]  ;;  %v3712_v32 = vld [vmem:[%s6837_s1 + $0x100] sm:$0xff] }
 0x129   : > { %v5205_v36 = vpack.c.bf16 %v4439_v34, %v630_v35 }
 0x12a   : > { %v4408_v34 = vpop.f32.mrb[0].mxu0 }
 0x12b   : > { %v4442_v37 = vpop.f32.mrb[4].mxu1  ;;  %5206 = vmatprep.subr.bf16.mxu1 %v5205_v36  ;;  %v456_v35 = vpop.f32.mrb[1].mxu0 }
 0x12c   : > { %v640_v38 = vpop.f32.mrb[5].mxu1  ;;  %5208 = vmatpush3.bf16.msra.mxu1 %v5205_v36  ;;  %v5233_v36 = vpack.c.bf16 %v4408_v34, %v456_v35  ;;  %v3899_v34 = vld [vmem:[%s6839_s3 + $0x88] sm:$0xff] }
 0x12d   : > { %v5209_v39 = vpack.c.bf16 %v4442_v37, %v640_v38 }
 0x12e   : > { %v4411_v37 = vpop.f32.mrb[2].mxu0  ;;  %5234 = vmatprep.subr.bf16.mxu0 %v5233_v36 }
 0x12f   : > { %v4445_v40 = vpop.f32.mrb[6].mxu1  ;;  %5210 = vmatprep.subr.bf16.mxu1 %v5209_v39  ;;  %v466_v38 = vpop.f32.mrb[3].mxu0  ;;  %5236 = vmatpush3.bf16.msra.mxu0 %v5233_v36 }
 0x130   : > { %v650_v41 = vpop.f32.mrb[7].mxu1  ;;  %5212 = vmatpush3.bf16.msra.mxu1 %v5209_v39  ;;  %v5237_v39 = vpack.c.bf16 %v4411_v37, %v466_v38 }
 0x131   : > { %v5213_v42 = vpack.c.bf16 %v4445_v40, %v650_v41 }
 0x132   : > { %v4414_v40 = vpop.f32.mrb[4].mxu0  ;;  %5238 = vmatprep.subr.bf16.mxu0 %v5237_v39 }
 0x133   : > { %v4448_v43 = vpop.f32.mrb[8].mxu1  ;;  %5214 = vmatprep.subr.bf16.mxu1 %v5213_v42  ;;  %v476_v41 = vpop.f32.mrb[5].mxu0  ;;  %5240 = vmatpush3.bf16.msra.mxu0 %v5237_v39 }
 0x134   : > { %v660_v44 = vpop.f32.mrb[9].mxu1  ;;  %5216 = vmatpush3.bf16.msra.mxu1 %v5213_v42  ;;  %v3830_v42 = vld [vmem:[%s6839_s3 + $0x60] sm:$0xff] }
 0x135   : > { %v5217_v45 = vpack.c.bf16 %v4448_v43, %v660_v44  ;;  %v3831_v43 = vld [vmem:[%s6839_s3 + $0x68] sm:$0xff]  ;;  %v5241_v44 = vpack.c.bf16 %v4414_v40, %v476_v41 }
 0x137   : > { %v4451_v46 = vpop.f32.mrb[10].mxu1  ;;  %5218 = vmatprep.subr.bf16.mxu1 %v5217_v45  ;;  %5242 = vmatprep.subr.bf16.mxu0 %v5241_v44 }
 0x138   : > { %v670_v47 = vpop.f32.mrb[11].mxu1  ;;  %5220 = vmatpush3.bf16.msra.mxu1 %v5217_v45  ;;  %v4417_v45 = vpop.f32.mrb[6].mxu0  ;;  %5244 = vmatpush3.bf16.msra.mxu0 %v5241_v44 }
 0x139   : > { %v5221_v48 = vpack.c.bf16 %v4451_v46, %v670_v47  ;;  %v5409_v46 = vpack.c.bf16 %v3831_v43, %v3830_v42  ;;  %v486_v47 = vpop.f32.mrb[7].mxu0 }
 0x13b   : > { %v4454_v49 = vpop.f32.mrb[12].mxu1  ;;  %5222 = vmatprep.subr.bf16.mxu1 %v5221_v48 }
 0x13c   : > { %v680_v50 = vpop.f32.mrb[13].mxu1  ;;  %5224 = vmatpush3.bf16.msra.mxu1 %v5221_v48  ;;  %v5245_v48 = vpack.c.bf16 %v4417_v45, %v486_v47 }
 0x13d   : > { %v5225_v51 = vpack.c.bf16 %v4454_v49, %v680_v50  ;;  %v4420_v49 = vpop.f32.mrb[8].mxu0 }
 0x13e   : > { %5246 = vmatprep.subr.bf16.mxu0 %v5245_v48  ;;  %v496_v50 = vpop.f32.mrb[9].mxu0 }
 0x13f   : > { %v4457_v54 = vpop.f32.mrb[14].mxu1  ;;  %5226 = vmatprep.subr.bf16.mxu1 %v5225_v51  ;;  %5248 = vmatpush3.bf16.msra.mxu0 %v5245_v48  ;;  %v4423_v52 = vpop.f32.mrb[10].mxu0 }
 0x140   : > { %v690_v55 = vpop.f32.mrb[15].mxu1  ;;  %5228 = vmatpush3.bf16.msra.mxu1 %v5225_v51  ;;  %v5249_v51 = vpack.c.bf16 %v4420_v49, %v496_v50  ;;  %v506_v53 = vpop.f32.mrb[11].mxu0 }
 0x141   : > { %v5229_v56 = vpack.c.bf16 %v4457_v54, %v690_v55  ;;  %v5253_v54 = vpack.c.bf16 %v4423_v52, %v506_v53 }
 0x142   : > { %5250 = vmatprep.subr.bf16.mxu0 %v5249_v51  ;;  %v4426_v55 = vpop.f32.mrb[12].mxu0 }
 0x143   : > { %5230 = vmatprep.subr.bf16.mxu1 %v5229_v56  ;;  %5252 = vmatpush3.bf16.msra.mxu0 %v5249_v51 }
 0x144   : > { %5232 = vmatpush3.bf16.msra.mxu1 %v5229_v56  ;;  %5254 = vmatprep.subr.bf16.mxu0 %v5253_v54  ;;  %v516_v56 = vpop.f32.mrb[13].mxu0 }
 0x145   : > { %5266 = vmatprep.subr.bf16.mxu1 %v5265_v57 }
 0x146   : > { %v4429_v58 = vpop.f32.mrb[14].mxu0 }
 0x147   : > { %4491 = vmatmul.mubr.f32.vlgmr.msra.gmra.mrb[16].mxu1 %v3679_v60  ;;  %5256 = vmatpush3.bf16.msra.mxu0 %v5253_v54  ;;  %v526_v59 = vpop.f32.mrb[15].mxu0 }
 0x148   : > { %5268 = vmatpush3.bf16.msra.mxu1 %v5265_v57  ;;  %4493 = vmatprep.mubr.f32.mxu1 %v3680_v61  ;;  %v5257_v57 = vpack.c.bf16 %v4426_v55, %v516_v56  ;;  %v5261_v60 = vpack.c.bf16 %v4429_v58, %v526_v59  ;;  %v535_v61 = vld [vmem:[%s6837_s1] sm:$0xff] }
 0x149   : > { %5302 = vmatprep.subr.bf16.mxu1 %v5301_v62  ;;  %4546 = vmatprep.mubr.f32.mxu0 %v535_v61 }
 0x14a   : > { %5258 = vmatprep.subr.bf16.mxu0 %v5257_v57 }
 0x14b   : > { %4494 = vmatmul.mubr.f32.gmra.mrb[18].mxu1 %v3681_v63  ;;  %5260 = vmatpush3.bf16.msra.mxu0 %v5257_v57  ;;  %v537_v63 = vld [vmem:[%s6837_s1 + $0x10] sm:$0xff] }
 0x14c   : > { %4496 = vmatprep.mubr.f32.mxu1 %v3682_v0  ;;  %5262 = vmatprep.subr.bf16.mxu0 %v5261_v60  ;;  %v538_v0 = vld [vmem:[%s6837_s1 + $0x18] sm:$0xff] }
 0x14f   : > { %4497 = vmatmul.mubr.f32.gmra.mrb[20].mxu1 %v3683_v1  ;;  %5264 = vmatpush3.bf16.msra.mxu0 %v5261_v60  ;;  %v3864_v1 = vld [vmem:[%s6839_s3 + $0x70] sm:$0xff] }
 0x150   : > { %4499 = vmatprep.mubr.f32.mxu1 %v3684_v2  ;;  %v3865_v2 = vld [vmem:[%s6839_s3 + $0x78] sm:$0xff] }
 0x153   : > { %4500 = vmatmul.mubr.f32.gmra.mrb[22].mxu1 %v3685_v8  ;;  %v539_v8 = vld [vmem:[%s6837_s1 + $0x20] sm:$0xff] }
 0x154   : > { %4502 = vmatprep.mubr.f32.mxu1 %v3686_v9  ;;  %v540_v9 = vld [vmem:[%s6837_s1 + $0x28] sm:$0xff] }
 0x157   : > { %4503 = vmatmul.mubr.f32.gmra.mrb[24].mxu1 %v3687_v10  ;;  %v5445_v10 = vpack.c.bf16 %v3865_v2, %v3864_v1 }
 0x158   : > { %4505 = vmatprep.mubr.f32.mxu1 %v3688_v11  ;;  %v541_v11 = vld [vmem:[%s6837_s1 + $0x30] sm:$0xff] }
 0x15b   : > { %4506 = vmatmul.mubr.f32.gmra.mrb[26].mxu1 %v3689_v13  ;;  %v542_v13 = vld [vmem:[%s6837_s1 + $0x38] sm:$0xff] }
 0x15c   : > { %4508 = vmatprep.mubr.f32.mxu1 %v3690_v14  ;;  %v543_v14 = vld [vmem:[%s6837_s1 + $0x40] sm:$0xff] }
 0x15f   : > { %4509 = vmatmul.mubr.f32.gmra.mrb[28].mxu1 %v3691_v15  ;;  %v544_v15 = vld [vmem:[%s6837_s1 + $0x48] sm:$0xff] }
 0x160   : > { %4511 = vmatprep.mubr.f32.mxu1 %v3692_v17  ;;  %v545_v17 = vld [vmem:[%s6837_s1 + $0x50] sm:$0xff] }
 0x163   : > { %4512 = vmatmul.mubr.f32.gmra.mrb[30].mxu1 %v3693_v27  ;;  %v546_v27 = vld [vmem:[%s6837_s1 + $0x58] sm:$0xff] }
 0x164   : > { %4574 = vmatprep.mubr.msk.f32.mxu1 %vm282_vm0, %v5833_v18 }
 0x167   : > { %4575 = vmatmul.mubr.msk.f32.vlgmr.msra.gmra.mrb[32].mxu1 %vm282_vm0, %v5836_v19 }
 0x168   : > { %5304 = vmatpush3.bf16.msra.mxu1 %v5301_v62  ;;  %4577 = vmatprep.mubr.msk.f32.mxu1 %vm282_vm0, %v5839_v20  ;;  %v536_v62 = vld [vmem:[%s6837_s1 + $0x8] sm:$0xff] }
 0x169   : > { %5338 = vmatprep.subr.bf16.mxu1 %v5337_v30  ;;  %4547 = vmatmul.mubr.f32.vlgmr.msra.gmra.mrb[16].mxu0 %v536_v62  ;;  %v3713_v62 = vld [vmem:[%s6837_s1 + $0x108] sm:$0xff] }
 0x16a   : > { %4549 = vmatprep.mubr.f32.mxu0 %v537_v63 }
 0x16b   : > { %4578 = vmatmul.mubr.msk.f32.gmra.mrb[34].mxu1 %vm282_vm0, %v5846_v22 }
 0x16c   : > { %4580 = vmatprep.mubr.msk.f32.mxu1 %vm282_vm0, %v5851_v3 }
 0x16d   : > { %4550 = vmatmul.mubr.f32.gmra.mrb[18].mxu0 %v538_v0  ;;  %v3714_v0 = vld [vmem:[%s6837_s1 + $0x110] sm:$0xff] }
 0x16e   : > { %4552 = vmatprep.mubr.f32.mxu0 %v539_v8  ;;  %v3715_v8 = vld [vmem:[%s6837_s1 + $0x118] sm:$0xff] }
 0x16f   : > { %4581 = vmatmul.mubr.msk.f32.gmra.mrb[36].mxu1 %vm282_vm0, %v5858_v4 }
 0x170   : > { %4583 = vmatprep.mubr.msk.f32.mxu1 %vm282_vm0, %v5863_v5 }
 0x171   : > { %4553 = vmatmul.mubr.f32.gmra.mrb[20].mxu0 %v540_v9 }
 0x172   : > { %4555 = vmatprep.mubr.f32.mxu0 %v541_v11 }
 0x173   : > { %4584 = vmatmul.mubr.msk.f32.gmra.mrb[38].mxu1 %vm282_vm0, %v5868_v6 }
 0x174   : > { %4586 = vmatprep.mubr.msk.f32.mxu1 %vm282_vm0, %v5873_v7 }
 0x175   : > { %4556 = vmatmul.mubr.f32.gmra.mrb[22].mxu0 %v542_v13 }
 0x176   : > { %4558 = vmatprep.mubr.f32.mxu0 %v543_v14  ;;  %v3717_v14 = vld [vmem:[%s6837_s1 + $0x128] sm:$0xff] }
 0x177   : > { %4587 = vmatmul.mubr.msk.f32.gmra.mrb[40].mxu1 %vm282_vm0, %v5878_v12 }
 0x178   : > { %4589 = vmatprep.mubr.msk.f32.mxu1 %vm282_vm0, %v5883_v16 }
 0x179   : > { %4559 = vmatmul.mubr.f32.gmra.mrb[24].mxu0 %v544_v15 }
 0x17a   : > { %4561 = vmatprep.mubr.f32.mxu0 %v545_v17  ;;  %v3718_v17 = vld [vmem:[%s6837_s1 + $0x130] sm:$0xff] }
 0x17b   : > { %4590 = vmatmul.mubr.msk.f32.gmra.mrb[42].mxu1 %vm282_vm0, %v5887_v21 }
 0x17c   : > { %4592 = vmatprep.mubr.msk.f32.mxu1 %vm282_vm0, %v5891_v23 }
 0x17d   : > { %4562 = vmatmul.mubr.f32.gmra.mrb[26].mxu0 %v546_v27 }
 0x17e   : > { %4564 = vmatprep.mubr.f32.mxu0 %v547_v28 }
 0x17f   : > { %4593 = vmatmul.mubr.msk.f32.gmra.mrb[44].mxu1 %vm282_vm0, %v5895_v24 }
 0x180   : > { %4595 = vmatprep.mubr.msk.f32.mxu1 %vm282_vm0, %v5899_v25 }
 0x181   : > { %4565 = vmatmul.mubr.f32.gmra.mrb[28].mxu0 %v548_v29  ;;  %v3719_v29 = vld [vmem:[%s6837_s1 + $0x138] sm:$0xff] }
 0x183   : > { %4596 = vmatmul.mubr.msk.f32.gmra.mrb[46].mxu1 %vm282_vm0, %v5903_v26 }
 0x184   : > { %4658 = vmatprep.mubr.msk.f32.mxu1 %vm282_vm0, %v5833_v18 }
 0x187   : > { %4659 = vmatmul.mubr.msk.f32.vlgmr.msra.gmra.mrb[48].mxu1 %vm282_vm0, %v5836_v19 }
 0x188   : > { %5340 = vmatpush3.bf16.msra.mxu1 %v5337_v30  ;;  %4661 = vmatprep.mubr.msk.f32.mxu1 %vm282_vm0, %v5839_v20  ;;  %v549_v30 = vld [vmem:[%s6837_s1 + $0x70] sm:$0xff] }
 0x189   : > { %5374 = vmatprep.subr.bf16.mxu1 %v5373_v33  ;;  %4567 = vmatprep.mubr.f32.mxu0 %v549_v30 }
 0x18a   : > { %4568 = vmatmul.mubr.f32.gmra.mrb[30].mxu0 %v550_v31  ;;  %v3720_v31 = vld [vmem:[%s6837_s1 + $0x140] sm:$0xff] }
 0x18b   : > { %4662 = vmatmul.mubr.msk.f32.gmra.mrb[50].mxu1 %vm282_vm0, %v5846_v22  ;;  %4630 = vmatprep.mubr.f32.mxu0 %v3712_v32 }
 0x18c   : > { %4664 = vmatprep.mubr.msk.f32.mxu1 %vm282_vm0, %v5851_v3 }
 0x18f   : > { %4665 = vmatmul.mubr.msk.f32.gmra.mrb[52].mxu1 %vm282_vm0, %v5858_v4 }
 0x190   : > { %4667 = vmatprep.mubr.msk.f32.mxu1 %vm282_vm0, %v5863_v5 }
 0x193   : > { %4668 = vmatmul.mubr.msk.f32.gmra.mrb[54].mxu1 %vm282_vm0, %v5868_v6 }
 0x194   : > { %4670 = vmatprep.mubr.msk.f32.mxu1 %vm282_vm0, %v5873_v7 }
 0x197   : > { %4671 = vmatmul.mubr.msk.f32.gmra.mrb[56].mxu1 %vm282_vm0, %v5878_v12 }
 0x198   : > { %4673 = vmatprep.mubr.msk.f32.mxu1 %vm282_vm0, %v5883_v16 }
 0x19b   : > { %4674 = vmatmul.mubr.msk.f32.gmra.mrb[58].mxu1 %vm282_vm0, %v5887_v21 }
 0x19c   : > { %4676 = vmatprep.mubr.msk.f32.mxu1 %vm282_vm0, %v5891_v23 }
 0x19f   : > { %4677 = vmatmul.mubr.msk.f32.gmra.mrb[60].mxu1 %vm282_vm0, %v5895_v24 }
 0x1a0   : > { %4679 = vmatprep.mubr.msk.f32.mxu1 %vm282_vm0, %v5899_v25 }
 0x1a3   : > { %4680 = vmatmul.mubr.msk.f32.gmra.mrb[62].mxu1 %vm282_vm0, %v5903_v26 }
 0x1a4   : > { %4742 = vmatprep.mubr.msk.f32.mxu1 %vm282_vm0, %v5833_v18 }
 0x1a7   : > { %4743 = vmatmul.mubr.msk.f32.vlgmr.msra.gmra.mrb[64].mxu1 %vm282_vm0, %v5836_v19 }
 0x1a8   : > { %5376 = vmatpush3.bf16.msra.mxu1 %v5373_v33  ;;  %4745 = vmatprep.mubr.msk.f32.mxu1 %vm282_vm0, %v5839_v20  ;;  %v3898_v33 = vld [vmem:[%s6839_s3 + $0x80] sm:$0xff] }
 0x1a9   : > { %5410 = vmatprep.subr.bf16.mxu1 %v5409_v46  ;;  %v5481_v35 = vpack.c.bf16 %v3899_v34, %v3898_v33  ;;  %v3721_v34 = vld [vmem:[%s6837_s1 + $0x148] sm:$0xff] }
 0x1ab   : > { %4746 = vmatmul.mubr.msk.f32.gmra.mrb[66].mxu1 %vm282_vm0, %v5846_v22 }
 0x1ac   : > { %4748 = vmatprep.mubr.msk.f32.mxu1 %vm282_vm0, %v5851_v3 }
 0x1af   : > { %4749 = vmatmul.mubr.msk.f32.gmra.mrb[68].mxu1 %vm282_vm0, %v5858_v4 }
 0x1b0   : > { %4751 = vmatprep.mubr.msk.f32.mxu1 %vm282_vm0, %v5863_v5 }
 0x1b3   : > { %4752 = vmatmul.mubr.msk.f32.gmra.mrb[70].mxu1 %vm282_vm0, %v5868_v6 }
 0x1b4   : > { %4754 = vmatprep.mubr.msk.f32.mxu1 %vm282_vm0, %v5873_v7 }
 0x1b7   : > { %4755 = vmatmul.mubr.msk.f32.gmra.mrb[72].mxu1 %vm282_vm0, %v5878_v12 }
 0x1b8   : > { %4757 = vmatprep.mubr.msk.f32.mxu1 %vm282_vm0, %v5883_v16 }
 0x1bb   : > { %4758 = vmatmul.mubr.msk.f32.gmra.mrb[74].mxu1 %vm282_vm0, %v5887_v21 }
 0x1bc   : > { %4760 = vmatprep.mubr.msk.f32.mxu1 %vm282_vm0, %v5891_v23 }
 0x1bf   : > { %4761 = vmatmul.mubr.msk.f32.gmra.mrb[76].mxu1 %vm282_vm0, %v5895_v24 }
 0x1c0   : > { %4763 = vmatprep.mubr.msk.f32.mxu1 %vm282_vm0, %v5899_v25 }
 0x1c3   : > { %4764 = vmatmul.mubr.msk.f32.gmra.mrb[78].mxu1 %vm282_vm0, %v5903_v26 }
 0x1c4   : > { %4826 = vmatprep.mubr.msk.f32.mxu1 %vm282_vm0, %v5833_v18 }
 0x1c7   : > { %4827 = vmatmul.mubr.msk.f32.vlgmr.msra.gmra.mrb[80].mxu1 %vm282_vm0, %v5836_v19 }
 0x1c8   : > { %5412 = vmatpush3.bf16.msra.mxu1 %v5409_v46  ;;  %4829 = vmatprep.mubr.msk.f32.mxu1 %vm282_vm0, %v5839_v20 }
 0x1c9   : > { %5446 = vmatprep.subr.bf16.mxu1 %v5445_v10 }
 0x1cb   : > { %4830 = vmatmul.mubr.msk.f32.gmra.mrb[82].mxu1 %vm282_vm0, %v5846_v22 }
 0x1cc   : > { %4832 = vmatprep.mubr.msk.f32.mxu1 %vm282_vm0, %v5851_v3 }
 0x1cf   : > { %4833 = vmatmul.mubr.msk.f32.gmra.mrb[84].mxu1 %vm282_vm0, %v5858_v4 }
 0x1d0   : > { %4835 = vmatprep.mubr.msk.f32.mxu1 %vm282_vm0, %v5863_v5 }
 0x1d3   : > { %4836 = vmatmul.mubr.msk.f32.gmra.mrb[86].mxu1 %vm282_vm0, %v5868_v6 }
 0x1d4   : > { %4838 = vmatprep.mubr.msk.f32.mxu1 %vm282_vm0, %v5873_v7 }
 0x1d7   : > { %4839 = vmatmul.mubr.msk.f32.gmra.mrb[88].mxu1 %vm282_vm0, %v5878_v12 }
 0x1d8   : > { %4841 = vmatprep.mubr.msk.f32.mxu1 %vm282_vm0, %v5883_v16 }
 0x1db   : > { %4842 = vmatmul.mubr.msk.f32.gmra.mrb[90].mxu1 %vm282_vm0, %v5887_v21 }
 0x1dc   : > { %4844 = vmatprep.mubr.msk.f32.mxu1 %vm282_vm0, %v5891_v23 }
 0x1df   : > { %4845 = vmatmul.mubr.msk.f32.gmra.mrb[92].mxu1 %vm282_vm0, %v5895_v24 }
 0x1e0   : > { %4847 = vmatprep.mubr.msk.f32.mxu1 %vm282_vm0, %v5899_v25 }
 0x1e3   : > { %4848 = vmatmul.mubr.msk.f32.gmra.mrb[94].mxu1 %vm282_vm0, %v5903_v26 }
 0x1e4   : > { %4910 = vmatprep.mubr.msk.f32.mxu1 %vm282_vm0, %v5833_v18 }
 0x1e7   : > { %4911 = vmatmul.mubr.msk.f32.vlgmr.msra.gmra.mrb[96].mxu1 %vm282_vm0, %v5836_v19 }
 0x1e8   : > { %5448 = vmatpush3.bf16.msra.mxu1 %v5445_v10  ;;  %4913 = vmatprep.mubr.msk.f32.mxu1 %vm282_vm0, %v5839_v20  ;;  %v3716_v10 = vld [vmem:[%s6837_s1 + $0x120] sm:$0xff] }
 0x1e9   : > { %5482 = vmatprep.subr.bf16.mxu1 %v5481_v35 }
 0x1eb   : > { %4914 = vmatmul.mubr.msk.f32.gmra.mrb[98].mxu1 %vm282_vm0, %v5846_v22 }
 0x1ec   : > { %4916 = vmatprep.mubr.msk.f32.mxu1 %vm282_vm0, %v5851_v3 }
 0x1ef   : > { %4917 = vmatmul.mubr.msk.f32.gmra.mrb[100].mxu1 %vm282_vm0, %v5858_v4 }
 0x1f0   : > { %4919 = vmatprep.mubr.msk.f32.mxu1 %vm282_vm0, %v5863_v5 }
 0x1f3   : > { %4920 = vmatmul.mubr.msk.f32.gmra.mrb[102].mxu1 %vm282_vm0, %v5868_v6 }
 0x1f4   : > { %4922 = vmatprep.mubr.msk.f32.mxu1 %vm282_vm0, %v5873_v7 }
 0x1f7   : > { %4923 = vmatmul.mubr.msk.f32.gmra.mrb[104].mxu1 %vm282_vm0, %v5878_v12 }
 0x1f8   : > { %4925 = vmatprep.mubr.msk.f32.mxu1 %vm282_vm0, %v5883_v16 }
 0x1fb   : > { %4926 = vmatmul.mubr.msk.f32.gmra.mrb[106].mxu1 %vm282_vm0, %v5887_v21 }
 0x1fc   : > { %4928 = vmatprep.mubr.msk.f32.mxu1 %vm282_vm0, %v5891_v23 }
 0x1ff   : > { %4929 = vmatmul.mubr.msk.f32.gmra.mrb[108].mxu1 %vm282_vm0, %v5895_v24 }
 0x200   : > { %4931 = vmatprep.mubr.msk.f32.mxu1 %vm282_vm0, %v5899_v25 }
 0x203   : > { %4932 = vmatmul.mubr.msk.f32.gmra.mrb[110].mxu1 %vm282_vm0, %v5903_v26 }
 0x204   : > { %4994 = vmatprep.mubr.msk.f32.mxu1 %vm282_vm0, %v5833_v18 }
 0x207   : > { %4995 = vmatmul.mubr.msk.f32.vlgmr.msra.gmra.mrb[112].mxu1 %vm282_vm0, %v5836_v19 }
 0x208   : > { %5484 = vmatpush3.bf16.msra.mxu1 %v5481_v35  ;;  %4997 = vmatprep.mubr.msk.f32.mxu1 %vm282_vm0, %v5839_v20 }
 0x20b   : > { %4998 = vmatmul.mubr.msk.f32.gmra.mrb[114].mxu1 %vm282_vm0, %v5846_v22 }
 0x20c   : > { %5000 = vmatprep.mubr.msk.f32.mxu1 %vm282_vm0, %v5851_v3 }
 0x20f   : > { %5001 = vmatmul.mubr.msk.f32.gmra.mrb[116].mxu1 %vm282_vm0, %v5858_v4 }
 0x210   : > { %5003 = vmatprep.mubr.msk.f32.mxu1 %vm282_vm0, %v5863_v5 }
 0x213   : > { %5004 = vmatmul.mubr.msk.f32.gmra.mrb[118].mxu1 %vm282_vm0, %v5868_v6 }
 0x214   : > { %5006 = vmatprep.mubr.msk.f32.mxu1 %vm282_vm0, %v5873_v7 }
 0x217   : > { %5007 = vmatmul.mubr.msk.f32.gmra.mrb[120].mxu1 %vm282_vm0, %v5878_v12 }
 0x218   : > { %5009 = vmatprep.mubr.msk.f32.mxu1 %vm282_vm0, %v5883_v16 }
 0x21a   : > { %v6268_v36 = vpop.f32.mrb[16].mxu1 }
 0x21b   : > { %v6270_v37 = vpop.f32.mrb[17].mxu1  ;;  %5010 = vmatmul.mubr.msk.f32.gmra.mrb[122].mxu1 %vm282_vm0, %v5887_v21 }
 0x21c   : > { %5012 = vmatprep.mubr.msk.f32.mxu1 %vm282_vm0, %v5891_v23 }
 0x21e   : > { %v6276_v38 = vpop.f32.mrb[18].mxu1 }
 0x21f   : > { %v6278_v39 = vpop.f32.mrb[19].mxu1  ;;  %5013 = vmatmul.mubr.msk.f32.gmra.mrb[124].mxu1 %vm282_vm0, %v5895_v24 }
 0x220   : > { %5015 = vmatprep.mubr.msk.f32.mxu1 %vm282_vm0, %v5899_v25 }
 0x222   : > { %v6284_v40 = vpop.f32.mrb[20].mxu1 }
 0x223   : > { %v6286_v41 = vpop.f32.mrb[21].mxu1  ;;  %5016 = vmatmul.mubr.msk.f32.gmra.mrb[126].mxu1 %vm282_vm0, %v5903_v26 }
 0x224   : > { %5078 = vmatprep.mubr.msk.f32.mxu1 %vm282_vm0, %v5833_v18 }
 0x226   : > { %v6292_v42 = vpop.f32.mrb[22].mxu1 }
 0x227   : > { %v6294_v43 = vpop.f32.mrb[23].mxu1  ;;  %5079 = vmatmul.mubr.msk.f32.vlgmr.msra.gmra.mrb[128].mxu1 %vm282_vm0, %v5836_v19 }
 0x228   : > { %5081 = vmatprep.mubr.msk.f32.mxu1 %vm282_vm0, %v5839_v20 }
 0x22a   : > { %v6300_v44 = vpop.f32.mrb[24].mxu1 }
 0x22b   : > { %v6302_v45 = vpop.f32.mrb[25].mxu1  ;;  %5082 = vmatmul.mubr.msk.f32.gmra.mrb[130].mxu1 %vm282_vm0, %v5846_v22 }
 0x22c   : > { %5084 = vmatprep.mubr.msk.f32.mxu1 %vm282_vm0, %v5851_v3 }
 0x22e   : > { %v6308_v18 = vpop.f32.mrb[26].mxu1 }
 0x22f   : > { %v6310_v46 = vpop.f32.mrb[27].mxu1  ;;  %5085 = vmatmul.mubr.msk.f32.gmra.mrb[132].mxu1 %vm282_vm0, %v5858_v4 }
 0x230   : > { %5087 = vmatprep.mubr.msk.f32.mxu1 %vm282_vm0, %v5863_v5 }
 0x232   : > { %v6316_v19 = vpop.f32.mrb[28].mxu1 }
 0x233   : > { %v6318_v20 = vpop.f32.mrb[29].mxu1  ;;  %5088 = vmatmul.mubr.msk.f32.gmra.mrb[134].mxu1 %vm282_vm0, %v5868_v6 }
 0x234   : > { %5090 = vmatprep.mubr.msk.f32.mxu1 %vm282_vm0, %v5873_v7 }
 0x236   : > { %v6324_v22 = vpop.f32.mrb[30].mxu1 }
 0x237   : > { %v6326_v3 = vpop.f32.mrb[31].mxu1  ;;  %5091 = vmatmul.mubr.msk.f32.gmra.mrb[136].mxu1 %vm282_vm0, %v5878_v12 }
 0x238   : > { %5093 = vmatprep.mubr.msk.f32.mxu1 %vm282_vm0, %v5883_v16 }
 0x23a   : > { %v4576_v4 = vpop.f32.mrb[32].mxu1 }
 0x23b   : > { %v1075_v5 = vpop.f32.mrb[33].mxu1  ;;  %5094 = vmatmul.mubr.msk.f32.gmra.mrb[138].mxu1 %vm282_vm0, %v5887_v21 }
 0x23c   : > { %v5269_v47 = vpack.c.bf16 %v4576_v4, %v1075_v5  ;;  %5096 = vmatprep.mubr.msk.f32.mxu1 %vm282_vm0, %v5891_v23  ;;  %v3722_v4 = vld [vmem:[%s6837_s1 + $0x150] sm:$0xff] }
 0x23e   : > { %v4579_v6 = vpop.f32.mrb[34].mxu1  ;;  %5270 = vmatprep.subr.bf16.mxu0 %v5269_v47 }
 0x23f   : > { %v1085_v7 = vpop.f32.mrb[35].mxu1  ;;  %5272 = vmatpush3.bf16.msra.mxu0 %v5269_v47  ;;  %5097 = vmatmul.mubr.msk.f32.gmra.mrb[140].mxu1 %vm282_vm0, %v5895_v24 }
 0x240   : > { %v5273_v12 = vpack.c.bf16 %v4579_v6, %v1085_v7  ;;  %5099 = vmatprep.mubr.msk.f32.mxu1 %vm282_vm0, %v5899_v25  ;;  %v3723_v6 = vld [vmem:[%s6837_s1 + $0x158] sm:$0xff] }
 0x242   : > { %v4582_v16 = vpop.f32.mrb[36].mxu1  ;;  %5274 = vmatprep.subr.bf16.mxu0 %v5273_v12 }
 0x243   : > { %v1095_v48 = vpop.f32.mrb[37].mxu1  ;;  %5276 = vmatpush3.bf16.msra.mxu0 %v5273_v12  ;;  %5100 = vmatmul.mubr.msk.f32.gmra.mrb[142].mxu1 %vm282_vm0, %v5903_v26  ;;  %v3724_v12 = vld [vmem:[%s6837_s1 + $0x160] sm:$0xff] }
 0x244   : > { %v5277_v21 = vpack.c.bf16 %v4582_v16, %v1095_v48 }
 0x246   : > { %v4585_v23 = vpop.f32.mrb[38].mxu1  ;;  %5278 = vmatprep.subr.bf16.mxu0 %v5277_v21 }
 0x247   : > { %v1105_v49 = vpop.f32.mrb[39].mxu1  ;;  %5280 = vmatpush3.bf16.msra.mxu0 %v5277_v21  ;;  %v3725_v21 = vld [vmem:[%s6837_s1 + $0x168] sm:$0xff] }
 0x248   : > { %v5281_v50 = vpack.c.bf16 %v4585_v23, %v1105_v49  ;;  %v3726_v49 = vld [vmem:[%s6837_s1 + $0x170] sm:$0xff] }
 0x24a   : > { %v4588_v51 = vpop.f32.mrb[40].mxu1  ;;  %5282 = vmatprep.subr.bf16.mxu0 %v5281_v50 }
 0x24b   : > { %v1115_v24 = vpop.f32.mrb[41].mxu1  ;;  %5284 = vmatpush3.bf16.msra.mxu0 %v5281_v50 }
 0x24c   : > { %v5285_v52 = vpack.c.bf16 %v4588_v51, %v1115_v24  ;;  %v3727_v24 = vld [vmem:[%s6837_s1 + $0x178] sm:$0xff] }
 0x24e   : > { %v4591_v53 = vpop.f32.mrb[42].mxu1  ;;  %5286 = vmatprep.subr.bf16.mxu0 %v5285_v52 }
 0x24f   : > { %v1125_v25 = vpop.f32.mrb[43].mxu1  ;;  %5288 = vmatpush3.bf16.msra.mxu0 %v5285_v52 }
 0x250   : > { %v5289_v54 = vpack.c.bf16 %v4591_v53, %v1125_v25  ;;  %v3746_v53 = vld [vmem:[%s6837_s1 + $0x180] sm:$0xff] }
 0x252   : > { %v4594_v55 = vpop.f32.mrb[44].mxu1  ;;  %5290 = vmatprep.subr.bf16.mxu0 %v5289_v54 }
 0x253   : > { %v1135_v56 = vpop.f32.mrb[45].mxu1  ;;  %5292 = vmatpush3.bf16.msra.mxu0 %v5289_v54 }
 0x254   : > { %v5293_v26 = vpack.c.bf16 %v4594_v55, %v1135_v56  ;;  %v3747_v55 = vld [vmem:[%s6837_s1 + $0x188] sm:$0xff] }
 0x256   : > { %v4597_v57 = vpop.f32.mrb[46].mxu1  ;;  %5294 = vmatprep.subr.bf16.mxu0 %v5293_v26 }
 0x257   : > { %v1145_v58 = vpop.f32.mrb[47].mxu1  ;;  %5296 = vmatpush3.bf16.msra.mxu0 %v5293_v26  ;;  %v3748_v26 = vld [vmem:[%s6837_s1 + $0x190] sm:$0xff] }
 0x258   : > { %v5297_v59 = vpack.c.bf16 %v4597_v57, %v1145_v58 }
 0x25a   : > { %5298 = vmatprep.subr.bf16.mxu0 %v5297_v59  ;;  %v4660_v60 = vpop.f32.mrb[48].mxu1 }
 0x25b   : > { %5300 = vmatpush3.bf16.msra.mxu0 %v5297_v59  ;;  %v1401_v61 = vpop.f32.mrb[49].mxu1  ;;  %v3749_v59 = vld [vmem:[%s6837_s1 + $0x198] sm:$0xff] }
 0x25c   : > { %v5305_v63 = vpack.c.bf16 %v4660_v60, %v1401_v61  ;;  %v3750_v61 = vld [vmem:[%s6837_s1 + $0x1a0] sm:$0xff] }
 0x25e   : > { %4631 = vmatmul.mubr.f32.vlgmr.msra.gmra.mrb[16].mxu0 %v3713_v62  ;;  %v4663_v1 = vpop.f32.mrb[50].mxu1  ;;  %5306 = vmatprep.subr.bf16.mxu0 %v5305_v63 }
 0x25f   : > { %v1411_v2 = vpop.f32.mrb[51].mxu1  ;;  %5308 = vmatpush3.bf16.msra.mxu0 %v5305_v63  ;;  %4633 = vmatprep.mubr.f32.mxu0 %v3714_v0  ;;  %v3751_v0 = vld [vmem:[%s6837_s1 + $0x1a8] sm:$0xff] }
 0x260   : > { %v5309_v9 = vpack.c.bf16 %v4663_v1, %v1411_v2  ;;  %v3752_v2 = vld [vmem:[%s6837_s1 + $0x1b0] sm:$0xff] }
 0x262   : > { %4634 = vmatmul.mubr.f32.gmra.mrb[18].mxu0 %v3715_v8  ;;  %v4666_v11 = vpop.f32.mrb[52].mxu1  ;;  %5310 = vmatprep.subr.bf16.mxu0 %v5309_v9 }
 0x263   : > { %v1421_v13 = vpop.f32.mrb[53].mxu1  ;;  %5312 = vmatpush3.bf16.msra.mxu0 %v5309_v9  ;;  %4636 = vmatprep.mubr.f32.mxu0 %v3716_v10  ;;  %v3753_v10 = vld [vmem:[%s6837_s1 + $0x1b8] sm:$0xff] }
 0x264   : > { %v5313_v15 = vpack.c.bf16 %v4666_v11, %v1421_v13  ;;  %v3754_v13 = vld [vmem:[%s6837_s1 + $0x1c0] sm:$0xff] }
 0x266   : > { %4637 = vmatmul.mubr.f32.gmra.mrb[20].mxu0 %v3717_v14  ;;  %v4669_v27 = vpop.f32.mrb[54].mxu1  ;;  %5314 = vmatprep.subr.bf16.mxu0 %v5313_v15 }
 0x267   : > { %v1431_v28 = vpop.f32.mrb[55].mxu1  ;;  %5316 = vmatpush3.bf16.msra.mxu0 %v5313_v15  ;;  %4639 = vmatprep.mubr.f32.mxu0 %v3718_v17  ;;  %v3755_v17 = vld [vmem:[%s6837_s1 + $0x1c8] sm:$0xff] }
 0x268   : > { %v5317_v30 = vpack.c.bf16 %v4669_v27, %v1431_v28  ;;  %v3756_v28 = vld [vmem:[%s6837_s1 + $0x1d0] sm:$0xff] }
 0x26a   : > { %4640 = vmatmul.mubr.f32.gmra.mrb[22].mxu0 %v3719_v29  ;;  %v4672_v32 = vpop.f32.mrb[56].mxu1  ;;  %5318 = vmatprep.subr.bf16.mxu0 %v5317_v30 }
 0x26b   : > { %v1441_v33 = vpop.f32.mrb[57].mxu1  ;;  %5320 = vmatpush3.bf16.msra.mxu0 %v5317_v30  ;;  %4642 = vmatprep.mubr.f32.mxu0 %v3720_v31  ;;  %v3757_v31 = vld [vmem:[%s6837_s1 + $0x1d8] sm:$0xff] }
 0x26c   : > { %v5321_v35 = vpack.c.bf16 %v4672_v32, %v1441_v33  ;;  %v3758_v33 = vld [vmem:[%s6837_s1 + $0x1e0] sm:$0xff] }
 0x26e   : > { %4643 = vmatmul.mubr.f32.gmra.mrb[24].mxu0 %v3721_v34  ;;  %v4675_v5 = vpop.f32.mrb[58].mxu1  ;;  %5322 = vmatprep.subr.bf16.mxu0 %v5321_v35 }
 0x26f   : > { %v1451_v47 = vpop.f32.mrb[59].mxu1  ;;  %5324 = vmatpush3.bf16.msra.mxu0 %v5321_v35  ;;  %4645 = vmatprep.mubr.f32.mxu0 %v3722_v4  ;;  %v3759_v4 = vld [vmem:[%s6837_s1 + $0x1e8] sm:$0xff] }
 0x270   : > { %v5325_v7 = vpack.c.bf16 %v4675_v5, %v1451_v47  ;;  %v3760_v47 = vld [vmem:[%s6837_s1 + $0x1f0] sm:$0xff] }
 0x272   : > { %4646 = vmatmul.mubr.f32.gmra.mrb[26].mxu0 %v3723_v6  ;;  %v4678_v16 = vpop.f32.mrb[60].mxu1  ;;  %5326 = vmatprep.subr.bf16.mxu0 %v5325_v7 }
 0x273   : > { %v1461_v48 = vpop.f32.mrb[61].mxu1  ;;  %5328 = vmatpush3.bf16.msra.mxu0 %v5325_v7  ;;  %4648 = vmatprep.mubr.f32.mxu0 %v3724_v12  ;;  %v3761_v12 = vld [vmem:[%s6837_s1 + $0x1f8] sm:$0xff] }
 0x274   : > { %v5329_v23 = vpack.c.bf16 %v4678_v16, %v1461_v48  ;;  %v3780_v48 = vld [vmem:[%s6837_s1 + $0x200] sm:$0xff] }
 0x276   : > { %4649 = vmatmul.mubr.f32.gmra.mrb[28].mxu0 %v3725_v21  ;;  %v4681_v50 = vpop.f32.mrb[62].mxu1  ;;  %5330 = vmatprep.subr.bf16.mxu0 %v5329_v23 }
 0x277   : > { %v1471_v51 = vpop.f32.mrb[63].mxu1  ;;  %5332 = vmatpush3.bf16.msra.mxu0 %v5329_v23  ;;  %4651 = vmatprep.mubr.f32.mxu0 %v3726_v49  ;;  %v3781_v49 = vld [vmem:[%s6837_s1 + $0x208] sm:$0xff] }
 0x278   : > { %v5333_v52 = vpack.c.bf16 %v4681_v50, %v1471_v51  ;;  %v3782_v51 = vld [vmem:[%s6837_s1 + $0x210] sm:$0xff] }
 0x27a   : > { %4652 = vmatmul.mubr.f32.gmra.mrb[30].mxu0 %v3727_v24  ;;  %5334 = vmatprep.subr.bf16.mxu0 %v5333_v52  ;;  %v4744_v25 = vpop.f32.mrb[64].mxu1 }
 0x27b   : > { %5336 = vmatpush3.bf16.msra.mxu0 %v5333_v52  ;;  %v1727_v54 = vpop.f32.mrb[65].mxu1  ;;  %4714 = vmatprep.mubr.f32.mxu0 %v3746_v53  ;;  %v3783_v53 = vld [vmem:[%s6837_s1 + $0x218] sm:$0xff] }
 0x27c   : > { %v5341_v56 = vpack.c.bf16 %v4744_v25, %v1727_v54  ;;  %v3784_v54 = vld [vmem:[%s6837_s1 + $0x220] sm:$0xff] }
 0x27e   : > { %4715 = vmatmul.mubr.f32.vlgmr.msra.gmra.mrb[16].mxu0 %v3747_v55  ;;  %v4747_v57 = vpop.f32.mrb[66].mxu1  ;;  %5342 = vmatprep.subr.bf16.mxu0 %v5341_v56 }
 0x27f   : > { %v1737_v58 = vpop.f32.mrb[67].mxu1  ;;  %5344 = vmatpush3.bf16.msra.mxu0 %v5341_v56  ;;  %4717 = vmatprep.mubr.f32.mxu0 %v3748_v26  ;;  %v3785_v26 = vld [vmem:[%s6837_s1 + $0x228] sm:$0xff] }
 0x280   : > { %v5345_v60 = vpack.c.bf16 %v4747_v57, %v1737_v58  ;;  %v3786_v58 = vld [vmem:[%s6837_s1 + $0x230] sm:$0xff] }
 0x282   : > { %4718 = vmatmul.mubr.f32.gmra.mrb[18].mxu0 %v3749_v59  ;;  %v4750_v62 = vpop.f32.mrb[68].mxu1  ;;  %5346 = vmatprep.subr.bf16.mxu0 %v5345_v60 }
 0x283   : > { %v1747_v63 = vpop.f32.mrb[69].mxu1  ;;  %5348 = vmatpush3.bf16.msra.mxu0 %v5345_v60  ;;  %4720 = vmatprep.mubr.f32.mxu0 %v3750_v61  ;;  %v3787_v61 = vld [vmem:[%s6837_s1 + $0x238] sm:$0xff] }
 0x284   : > { %v5349_v1 = vpack.c.bf16 %v4750_v62, %v1747_v63  ;;  %v3788_v63 = vld [vmem:[%s6837_s1 + $0x240] sm:$0xff] }
 0x286   : > { %4721 = vmatmul.mubr.f32.gmra.mrb[20].mxu0 %v3751_v0  ;;  %v4753_v8 = vpop.f32.mrb[70].mxu1  ;;  %5350 = vmatprep.subr.bf16.mxu0 %v5349_v1 }
 0x287   : > { %v1757_v9 = vpop.f32.mrb[71].mxu1  ;;  %5352 = vmatpush3.bf16.msra.mxu0 %v5349_v1  ;;  %4723 = vmatprep.mubr.f32.mxu0 %v3752_v2  ;;  %v3789_v2 = vld [vmem:[%s6837_s1 + $0x248] sm:$0xff] }
 0x288   : > { %v5353_v11 = vpack.c.bf16 %v4753_v8, %v1757_v9  ;;  %v3790_v9 = vld [vmem:[%s6837_s1 + $0x250] sm:$0xff] }
 0x28a   : > { %4724 = vmatmul.mubr.f32.gmra.mrb[22].mxu0 %v3753_v10  ;;  %v4756_v14 = vpop.f32.mrb[72].mxu1  ;;  %5354 = vmatprep.subr.bf16.mxu0 %v5353_v11 }
 0x28b   : > { %v1767_v15 = vpop.f32.mrb[73].mxu1  ;;  %5356 = vmatpush3.bf16.msra.mxu0 %v5353_v11  ;;  %4726 = vmatprep.mubr.f32.mxu0 %v3754_v13  ;;  %v3791_v13 = vld [vmem:[%s6837_s1 + $0x258] sm:$0xff] }
 0x28c   : > { %v5357_v27 = vpack.c.bf16 %v4756_v14, %v1767_v15  ;;  %v3792_v15 = vld [vmem:[%s6837_s1 + $0x260] sm:$0xff] }
 0x28e   : > { %4727 = vmatmul.mubr.f32.gmra.mrb[24].mxu0 %v3755_v17  ;;  %v4759_v29 = vpop.f32.mrb[74].mxu1  ;;  %5358 = vmatprep.subr.bf16.mxu0 %v5357_v27 }
 0x28f   : > { %v1777_v30 = vpop.f32.mrb[75].mxu1  ;;  %5360 = vmatpush3.bf16.msra.mxu0 %v5357_v27  ;;  %4729 = vmatprep.mubr.f32.mxu0 %v3756_v28  ;;  %v3793_v28 = vld [vmem:[%s6837_s1 + $0x268] sm:$0xff] }
 0x290   : > { %v5361_v32 = vpack.c.bf16 %v4759_v29, %v1777_v30  ;;  %v3794_v30 = vld [vmem:[%s6837_s1 + $0x270] sm:$0xff] }
 0x292   : > { %4730 = vmatmul.mubr.f32.gmra.mrb[26].mxu0 %v3757_v31  ;;  %v4762_v34 = vpop.f32.mrb[76].mxu1  ;;  %5362 = vmatprep.subr.bf16.mxu0 %v5361_v32 }
 0x293   : > { %v1787_v35 = vpop.f32.mrb[77].mxu1  ;;  %5364 = vmatpush3.bf16.msra.mxu0 %v5361_v32  ;;  %4732 = vmatprep.mubr.f32.mxu0 %v3758_v33  ;;  %v3795_v33 = vld [vmem:[%s6837_s1 + $0x278] sm:$0xff] }
 0x294   : > { %v5365_v5 = vpack.c.bf16 %v4762_v34, %v1787_v35  ;;  %v3814_v35 = vld [vmem:[%s6837_s1 + $0x280] sm:$0xff] }
 0x296   : > { %4733 = vmatmul.mubr.f32.gmra.mrb[28].mxu0 %v3759_v4  ;;  %v4765_v6 = vpop.f32.mrb[78].mxu1  ;;  %5366 = vmatprep.subr.bf16.mxu0 %v5365_v5 }
 0x297   : > { %v1797_v7 = vpop.f32.mrb[79].mxu1  ;;  %5368 = vmatpush3.bf16.msra.mxu0 %v5365_v5  ;;  %4735 = vmatprep.mubr.f32.mxu0 %v3760_v47  ;;  %v3288_v5 = vld [vmem:[%s6838_s2] sm:$0xff]  ;;  %v3290_v47 = vld [vmem:[%s6838_s2 + $0x10] sm:$0xff] }
 0x298   : > { %v5369_v16 = vpack.c.bf16 %v4765_v6, %v1797_v7  ;;  %v3815_v7 = vld [vmem:[%s6837_s1 + $0x288] sm:$0xff] }
 0x29a   : > { %4736 = vmatmul.mubr.f32.gmra.mrb[30].mxu0 %v3761_v12  ;;  %5370 = vmatprep.subr.bf16.mxu0 %v5369_v16  ;;  %v4828_v21 = vpop.f32.mrb[80].mxu1 }
 0x29b   : > { %5372 = vmatpush3.bf16.msra.mxu0 %v5369_v16  ;;  %v2053_v23 = vpop.f32.mrb[81].mxu1  ;;  %4798 = vmatprep.mubr.f32.mxu0 %v3780_v48  ;;  %v3816_v16 = vld [vmem:[%s6837_s1 + $0x290] sm:$0xff]  ;;  %v5695_v48 = vmov 0  }
 0x29c   : > { %v5377_v50 = vpack.c.bf16 %v4828_v21, %v2053_v23  ;;  %5681 = vset.pattern.permute.xlu0 %v5695_v48  ;;  %5682 = vset.pattern.permute.xlu1 %v5695_v48  ;;  %v3289_v23 = vld [vmem:[%s6838_s2 + $0x8] sm:$0xff] }
 0x29d   : > { %3306 = vperm.xlu0 %5681, %v3288_v5   ;;  %3316 = vperm.xlu1 %5682, %v3290_v47   ;;  %v3828_v5 = vld [vmem:[%s6837_s1 + $0x2f0] sm:$0xff] }
 0x29e   : > { %4799 = vmatmul.mubr.f32.vlgmr.msra.gmra.mrb[16].mxu0 %v3781_v49  ;;  %v4831_v24 = vpop.f32.mrb[82].mxu1  ;;  %5378 = vmatprep.subr.bf16.mxu0 %v5377_v50  ;;  %v3291_v49 = vld [vmem:[%s6838_s2 + $0x18] sm:$0xff] }
 0x29f   : > { %v2063_v52 = vpop.f32.mrb[83].mxu1  ;;  %5380 = vmatpush3.bf16.msra.mxu0 %v5377_v50  ;;  %4801 = vmatprep.mubr.f32.mxu0 %v3782_v51  ;;  %v3817_v51 = vld [vmem:[%s6837_s1 + $0x298] sm:$0xff] }
 0x2a0   : > { %v5381_v25 = vpack.c.bf16 %v4831_v24, %v2063_v52  ;;  %v3818_v52 = vld [vmem:[%s6837_s1 + $0x2a0] sm:$0xff] }
 0x2a1   : > { %3311 = vperm.xlu0 %5681, %v3289_v23   ;;  %3321 = vperm.xlu1 %5682, %v3291_v49   ;;  %v3505_v49 = vld [vmem:[%s6841_s5] sm:$0x7] }
 0x2a2   : > { %4802 = vmatmul.mubr.f32.gmra.mrb[18].mxu0 %v3783_v53  ;;  %v4834_v55 = vpop.f32.mrb[84].mxu1  ;;  %5382 = vmatprep.subr.bf16.mxu0 %v5381_v25 }
 0x2a3   : > { %v2073_v56 = vpop.f32.mrb[85].mxu1  ;;  %5384 = vmatpush3.bf16.msra.mxu0 %v5381_v25  ;;  %4804 = vmatprep.mubr.f32.mxu0 %v3784_v54  ;;  %v3292_v25 = vld [vmem:[%s6838_s2 + $0x20] sm:$0xff]  ;;  %v3293_v54 = vld [vmem:[%s6838_s2 + $0x28] sm:$0xff] }
 0x2a4   : > { %v5385_v57 = vpack.c.bf16 %v4834_v55, %v2073_v56  ;;  %v3819_v56 = vld [vmem:[%s6837_s1 + $0x2a8] sm:$0xff] }
 0x2a5   : > { %3326 = vperm.xlu0 %5681, %v3292_v25   ;;  %3331 = vperm.xlu1 %5682, %v3293_v54   ;;  %v3851_v54 = vld [vmem:[%s6837_s1 + $0x318] sm:$0xff] }
 0x2a6   : > { %4805 = vmatmul.mubr.f32.gmra.mrb[20].mxu0 %v3785_v26  ;;  %v4837_v59 = vpop.f32.mrb[86].mxu1  ;;  %5386 = vmatprep.subr.bf16.mxu0 %v5385_v57 }
 0x2a7   : > { %v2083_v60 = vpop.f32.mrb[87].mxu1  ;;  %5388 = vmatpush3.bf16.msra.mxu0 %v5385_v57  ;;  %4807 = vmatprep.mubr.f32.mxu0 %v3786_v58  ;;  %v3820_v57 = vld [vmem:[%s6837_s1 + $0x2b0] sm:$0xff] }
 0x2a8   : > { %v5389_v62 = vpack.c.bf16 %v4837_v59, %v2083_v60  ;;  %v3294_v59 = vld [vmem:[%s6838_s2 + $0x30] sm:$0xff]  ;;  %v3295_v60 = vld [vmem:[%s6838_s2 + $0x38] sm:$0xff] }
 0x2a9   : > { %3336 = vperm.xlu0 %5681, %v3294_v59   ;;  %3341 = vperm.xlu1 %5682, %v3295_v60   ;;  %v3854_v60 = vld [vmem:[%s6837_s1 + $0x330] sm:$0xff] }
 0x2aa   : > { %4808 = vmatmul.mubr.f32.gmra.mrb[22].mxu0 %v3787_v61  ;;  %v4840_v0 = vpop.f32.mrb[88].mxu1  ;;  %5390 = vmatprep.subr.bf16.mxu0 %v5389_v62 }
 0x2ab   : > { %v2093_v1 = vpop.f32.mrb[89].mxu1  ;;  %5392 = vmatpush3.bf16.msra.mxu0 %v5389_v62  ;;  %4810 = vmatprep.mubr.f32.mxu0 %v3788_v63  ;;  %v3821_v62 = vld [vmem:[%s6837_s1 + $0x2b8] sm:$0xff] }
 0x2ac   : > { %v5393_v8 = vpack.c.bf16 %v4840_v0, %v2093_v1  ;;  %v3822_v0 = vld [vmem:[%s6837_s1 + $0x2c0] sm:$0xff] }
 0x2ae   : > { %4811 = vmatmul.mubr.f32.gmra.mrb[24].mxu0 %v3789_v2  ;;  %v4843_v10 = vpop.f32.mrb[90].mxu1  ;;  %5394 = vmatprep.subr.bf16.mxu0 %v5393_v8  ;;  %v3296_v2 = vld [vmem:[%s6838_s2 + $0x40] sm:$0xff] }
 0x2af   : > { %v2103_v11 = vpop.f32.mrb[91].mxu1  ;;  %5396 = vmatpush3.bf16.msra.mxu0 %v5393_v8  ;;  %4813 = vmatprep.mubr.f32.mxu0 %v3790_v9  ;;  %v3297_v8 = vld [vmem:[%s6838_s2 + $0x48] sm:$0xff] }
 0x2b0   : > { %v5397_v14 = vpack.c.bf16 %v4843_v10, %v2103_v11  ;;  %v3823_v10 = vld [vmem:[%s6837_s1 + $0x2c8] sm:$0xff]  ;;  %3346 = vperm.xlu0 %5681, %v3296_v2   ;;  %3351 = vperm.xlu1 %5682, %v3297_v8  }
 0x2b2   : > { %4814 = vmatmul.mubr.f32.gmra.mrb[26].mxu0 %v3791_v13  ;;  %v4846_v17 = vpop.f32.mrb[92].mxu1  ;;  %5398 = vmatprep.subr.bf16.mxu0 %v5397_v14  ;;  %v3824_v13 = vld [vmem:[%s6837_s1 + $0x2d0] sm:$0xff] }
 0x2b3   : > { %v2113_v27 = vpop.f32.mrb[93].mxu1  ;;  %5400 = vmatpush3.bf16.msra.mxu0 %v5397_v14  ;;  %4816 = vmatprep.mubr.f32.mxu0 %v3792_v15  ;;  %v3298_v15 = vld [vmem:[%s6838_s2 + $0x50] sm:$0xff] }
 0x2b4   : > { %v5401_v29 = vpack.c.bf16 %v4846_v17, %v2113_v27  ;;  %v3299_v17 = vld [vmem:[%s6838_s2 + $0x58] sm:$0xff]  ;;  %3356 = vperm.xlu0 %5681, %v3298_v15  }
 0x2b5   : > { %3361 = vperm.xlu1 %5682, %v3299_v17   ;;  %v3859_v15 = vld [vmem:[%s6837_s1 + $0x358] sm:$0xff] }
 0x2b6   : > { %4817 = vmatmul.mubr.f32.gmra.mrb[28].mxu0 %v3793_v28  ;;  %v4849_v31 = vpop.f32.mrb[94].mxu1  ;;  %5402 = vmatprep.subr.bf16.mxu0 %v5401_v29  ;;  %v3825_v28 = vld [vmem:[%s6837_s1 + $0x2d8] sm:$0xff] }
 0x2b7   : > { %v2123_v32 = vpop.f32.mrb[95].mxu1  ;;  %5404 = vmatpush3.bf16.msra.mxu0 %v5401_v29  ;;  %4819 = vmatprep.mubr.f32.mxu0 %v3794_v30  ;;  %v3826_v30 = vld [vmem:[%s6837_s1 + $0x2e0] sm:$0xff] }
 0x2b8   : > { %v5405_v34 = vpack.c.bf16 %v4849_v31, %v2123_v32  ;;  %v3300_v32 = vld [vmem:[%s6838_s2 + $0x60] sm:$0xff] }
 0x2b9   : > { %3366 = vperm.xlu0 %5681, %v3300_v32   ;;  %v3862_v32 = vld [vmem:[%s6837_s1 + $0x370] sm:$0xff] }
 0x2ba   : > { %4820 = vmatmul.mubr.f32.gmra.mrb[30].mxu0 %v3795_v33  ;;  %5406 = vmatprep.subr.bf16.mxu0 %v5405_v34  ;;  %v4912_v4 = vpop.f32.mrb[96].mxu1  ;;  %v3301_v33 = vld [vmem:[%s6838_s2 + $0x68] sm:$0xff] }
 0x2bb   : > { %5408 = vmatpush3.bf16.msra.mxu0 %v5405_v34  ;;  %v2379_v6 = vpop.f32.mrb[97].mxu1  ;;  %4882 = vmatprep.mubr.f32.mxu0 %v3814_v35  ;;  %v3827_v35 = vld [vmem:[%s6837_s1 + $0x2e8] sm:$0xff] }
 0x2bc   : > { %v5413_v12 = vpack.c.bf16 %v4912_v4, %v2379_v6  ;;  %3371 = vperm.xlu1 %5682, %v3301_v33   ;;  %v3302_v6 = vld [vmem:[%s6838_s2 + $0x70] sm:$0xff] }
 0x2bd   : > { %3376 = vperm.xlu0 %5681, %v3302_v6  }
 0x2be   : > { %4883 = vmatmul.mubr.f32.vlgmr.msra.gmra.mrb[16].mxu0 %v3815_v7  ;;  %v4915_v21 = vpop.f32.mrb[98].mxu1  ;;  %5414 = vmatprep.subr.bf16.mxu0 %v5413_v12  ;;  %v3303_v7 = vld [vmem:[%s6838_s2 + $0x78] sm:$0xff] }
 0x2bf   : > { %v2389_v50 = vpop.f32.mrb[99].mxu1  ;;  %5416 = vmatpush3.bf16.msra.mxu0 %v5413_v12  ;;  %4885 = vmatprep.mubr.f32.mxu0 %v3816_v16  ;;  %v3829_v16 = vld [vmem:[%s6837_s1 + $0x2f8] sm:$0xff] }
 0x2c0   : > { %v5417_v24 = vpack.c.bf16 %v4915_v21, %v2389_v50  ;;  %v3848_v21 = vld [vmem:[%s6837_s1 + $0x300] sm:$0xff]  ;;  %3381 = vperm.xlu1 %5682, %v3303_v7   ;;  %v3883_v7 = vld [vmem:[%s6837_s1 + $0x388] sm:$0xff] }
 0x2c1   : > { %3508 = vperm.xlu0 %5681, %v3505_v49  }
 0x2c2   : > { %4886 = vmatmul.mubr.f32.gmra.mrb[18].mxu0 %v3817_v51  ;;  %v4918_v53 = vpop.f32.mrb[100].mxu1  ;;  %5418 = vmatprep.subr.bf16.mxu0 %v5417_v24  ;;  %v3849_v51 = vld [vmem:[%s6837_s1 + $0x308] sm:$0xff] }
 0x2c3   : > { %v2399_v55 = vpop.f32.mrb[101].mxu1  ;;  %5420 = vmatpush3.bf16.msra.mxu0 %v5417_v24  ;;  %4888 = vmatprep.mubr.f32.mxu0 %v3818_v52  ;;  %v3850_v52 = vld [vmem:[%s6837_s1 + $0x310] sm:$0xff] }
 0x2c4   : > { %v5421_v26 = vpack.c.bf16 %v4918_v53, %v2399_v55 }
 0x2c6   : > { %4889 = vmatmul.mubr.f32.gmra.mrb[20].mxu0 %v3819_v56  ;;  %v4921_v58 = vpop.f32.mrb[102].mxu1  ;;  %5422 = vmatprep.subr.bf16.mxu0 %v5421_v26  ;;  %v3852_v56 = vld [vmem:[%s6837_s1 + $0x320] sm:$0xff] }
 0x2c7   : > { %v2409_v61 = vpop.f32.mrb[103].mxu1  ;;  %5424 = vmatpush3.bf16.msra.mxu0 %v5421_v26  ;;  %4891 = vmatprep.mubr.f32.mxu0 %v3820_v57 }
 0x2c8   : > { %v5425_v63 = vpack.c.bf16 %v4921_v58, %v2409_v61  ;;  %v3853_v58 = vld [vmem:[%s6837_s1 + $0x328] sm:$0xff] }
 0x2ca   : > { %4892 = vmatmul.mubr.f32.gmra.mrb[22].mxu0 %v3821_v62  ;;  %v4924_v1 = vpop.f32.mrb[104].mxu1  ;;  %5426 = vmatprep.subr.bf16.mxu0 %v5425_v63 }
 0x2cb   : > { %v2419_v9 = vpop.f32.mrb[105].mxu1  ;;  %5428 = vmatpush3.bf16.msra.mxu0 %v5425_v63  ;;  %4894 = vmatprep.mubr.f32.mxu0 %v3822_v0  ;;  %v3855_v63 = vld [vmem:[%s6837_s1 + $0x338] sm:$0xff] }
 0x2cc   : > { %v5429_v11 = vpack.c.bf16 %v4924_v1, %v2419_v9  ;;  %v3856_v1 = vld [vmem:[%s6837_s1 + $0x340] sm:$0xff]  ;;  %v3857_v9 = vld [vmem:[%s6837_s1 + $0x348] sm:$0xff] }
 0x2ce   : > { %4895 = vmatmul.mubr.f32.gmra.mrb[24].mxu0 %v3823_v10  ;;  %v4927_v14 = vpop.f32.mrb[106].mxu1  ;;  %5430 = vmatprep.subr.bf16.mxu0 %v5429_v11 }
 0x2cf   : > { %v2429_v27 = vpop.f32.mrb[107].mxu1  ;;  %5432 = vmatpush3.bf16.msra.mxu0 %v5429_v11  ;;  %4897 = vmatprep.mubr.f32.mxu0 %v3824_v13  ;;  %v3858_v11 = vld [vmem:[%s6837_s1 + $0x350] sm:$0xff] }
 0x2d0   : > { %v5433_v29 = vpack.c.bf16 %v4927_v14, %v2429_v27  ;;  %v3860_v27 = vld [vmem:[%s6837_s1 + $0x360] sm:$0xff] }
 0x2d2   : > { %4898 = vmatmul.mubr.f32.gmra.mrb[26].mxu0 %v3825_v28  ;;  %v4930_v31 = vpop.f32.mrb[108].mxu1  ;;  %5434 = vmatprep.subr.bf16.mxu0 %v5433_v29 }
 0x2d3   : > { %v2439_v34 = vpop.f32.mrb[109].mxu1  ;;  %5436 = vmatpush3.bf16.msra.mxu0 %v5433_v29  ;;  %4900 = vmatprep.mubr.f32.mxu0 %v3826_v30  ;;  %v3861_v30 = vld [vmem:[%s6837_s1 + $0x368] sm:$0xff] }
 0x2d4   : > { %v5437_v4 = vpack.c.bf16 %v4930_v31, %v2439_v34 }
 0x2d6   : > { %4901 = vmatmul.mubr.f32.gmra.mrb[28].mxu0 %v3827_v35  ;;  %v4933_v47 = vpop.f32.mrb[110].mxu1  ;;  %5438 = vmatprep.subr.bf16.mxu0 %v5437_v4  ;;  %v3863_v35 = vld [vmem:[%s6837_s1 + $0x378] sm:$0xff] }
 0x2d7   : > { %v2449_v12 = vpop.f32.mrb[111].mxu1  ;;  %5440 = vmatpush3.bf16.msra.mxu0 %v5437_v4  ;;  %4903 = vmatprep.mubr.f32.mxu0 %v3828_v5  ;;  %v3882_v5 = vld [vmem:[%s6837_s1 + $0x380] sm:$0xff] }
 0x2d8   : > { %v5441_v48 = vpack.c.bf16 %v4933_v47, %v2449_v12 }
 0x2da   : > { %4904 = vmatmul.mubr.f32.gmra.mrb[30].mxu0 %v3829_v16  ;;  %5442 = vmatprep.subr.bf16.mxu0 %v5441_v48  ;;  %v4996_v23 = vpop.f32.mrb[112].mxu1  ;;  %v3884_v16 = vld [vmem:[%s6837_s1 + $0x390] sm:$0xff] }
 0x2db   : > { %5444 = vmatpush3.bf16.msra.mxu0 %v5441_v48  ;;  %v2705_v50 = vpop.f32.mrb[113].mxu1  ;;  %4966 = vmatprep.mubr.f32.mxu0 %v3848_v21 }
 0x2dc   : > { %v5449_v24 = vpack.c.bf16 %v4996_v23, %v2705_v50  ;;  %v3885_v23 = vld [vmem:[%s6837_s1 + $0x398] sm:$0xff]  ;;  %v3886_v50 = vld [vmem:[%s6837_s1 + $0x3a0] sm:$0xff] }
 0x2de   : > { %4967 = vmatmul.mubr.f32.vlgmr.msra.gmra.mrb[16].mxu0 %v3849_v51  ;;  %v4999_v53 = vpop.f32.mrb[114].mxu1  ;;  %5450 = vmatprep.subr.bf16.mxu0 %v5449_v24 }
 0x2df   : > { %v2715_v25 = vpop.f32.mrb[115].mxu1  ;;  %5452 = vmatpush3.bf16.msra.mxu0 %v5449_v24  ;;  %4969 = vmatprep.mubr.f32.mxu0 %v3850_v52  ;;  %v3887_v52 = vld [vmem:[%s6837_s1 + $0x3a8] sm:$0xff] }
 0x2e0   : > { %v5453_v55 = vpack.c.bf16 %v4999_v53, %v2715_v25  ;;  %v3888_v25 = vld [vmem:[%s6837_s1 + $0x3b0] sm:$0xff] }
 0x2e2   : > { %4970 = vmatmul.mubr.f32.gmra.mrb[18].mxu0 %v3851_v54  ;;  %v5002_v26 = vpop.f32.mrb[116].mxu1  ;;  %5454 = vmatprep.subr.bf16.mxu0 %v5453_v55 }
 0x2e3   : > { %v2725_v57 = vpop.f32.mrb[117].mxu1  ;;  %5456 = vmatpush3.bf16.msra.mxu0 %v5453_v55  ;;  %4972 = vmatprep.mubr.f32.mxu0 %v3852_v56  ;;  %v3889_v56 = vld [vmem:[%s6837_s1 + $0x3b8] sm:$0xff] }
 0x2e4   : > { %v5457_v59 = vpack.c.bf16 %v5002_v26, %v2725_v57  ;;  %v3890_v57 = vld [vmem:[%s6837_s1 + $0x3c0] sm:$0xff] }
 0x2e6   : > { %4973 = vmatmul.mubr.f32.gmra.mrb[20].mxu0 %v3853_v58  ;;  %v5005_v61 = vpop.f32.mrb[118].mxu1  ;;  %5458 = vmatprep.subr.bf16.mxu0 %v5457_v59 }
 0x2e7   : > { %v2735_v62 = vpop.f32.mrb[119].mxu1  ;;  %5460 = vmatpush3.bf16.msra.mxu0 %v5457_v59  ;;  %4975 = vmatprep.mubr.f32.mxu0 %v3854_v60  ;;  %v3891_v60 = vld [vmem:[%s6837_s1 + $0x3c8] sm:$0xff] }
 0x2e8   : > { %v5461_v0 = vpack.c.bf16 %v5005_v61, %v2735_v62  ;;  %v3892_v62 = vld [vmem:[%s6837_s1 + $0x3d0] sm:$0xff] }
 0x2ea   : > { %4976 = vmatmul.mubr.f32.gmra.mrb[22].mxu0 %v3855_v63  ;;  %v5008_v2 = vpop.f32.mrb[120].mxu1  ;;  %5462 = vmatprep.subr.bf16.mxu0 %v5461_v0 }
 0x2eb   : > { %v2745_v8 = vpop.f32.mrb[121].mxu1  ;;  %5464 = vmatpush3.bf16.msra.mxu0 %v5461_v0  ;;  %4978 = vmatprep.mubr.f32.mxu0 %v3856_v1  ;;  %v3893_v1 = vld [vmem:[%s6837_s1 + $0x3d8] sm:$0xff] }
 0x2ec   : > { %v5465_v10 = vpack.c.bf16 %v5008_v2, %v2745_v8  ;;  %v3894_v8 = vld [vmem:[%s6837_s1 + $0x3e0] sm:$0xff] }
 0x2ee   : > { %4979 = vmatmul.mubr.f32.gmra.mrb[24].mxu0 %v3857_v9  ;;  %v5011_v13 = vpop.f32.mrb[122].mxu1  ;;  %5466 = vmatprep.subr.bf16.mxu0 %v5465_v10 }
 0x2ef   : > { %v2755_v14 = vpop.f32.mrb[123].mxu1  ;;  %5468 = vmatpush3.bf16.msra.mxu0 %v5465_v10  ;;  %4981 = vmatprep.mubr.f32.mxu0 %v3858_v11  ;;  %v3895_v11 = vld [vmem:[%s6837_s1 + $0x3e8] sm:$0xff] }
 0x2f0   : > { %v5469_v17 = vpack.c.bf16 %v5011_v13, %v2755_v14  ;;  %v3896_v14 = vld [vmem:[%s6837_s1 + $0x3f0] sm:$0xff] }
 0x2f2   : > { %4982 = vmatmul.mubr.f32.gmra.mrb[26].mxu0 %v3859_v15  ;;  %v5014_v28 = vpop.f32.mrb[124].mxu1  ;;  %5470 = vmatprep.subr.bf16.mxu0 %v5469_v17 }
 0x2f3   : > { %v2765_v29 = vpop.f32.mrb[125].mxu1  ;;  %5472 = vmatpush3.bf16.msra.mxu0 %v5469_v17  ;;  %4984 = vmatprep.mubr.f32.mxu0 %v3860_v27  ;;  %v3897_v27 = vld [vmem:[%s6837_s1 + $0x3f8] sm:$0xff] }
 0x2f4   : > { %v5473_v31 = vpack.c.bf16 %v5014_v28, %v2765_v29  ;;  %v3916_v29 = vld [vmem:[%s6837_s1 + $0x400] sm:$0xff] }
 0x2f6   : > { %4985 = vmatmul.mubr.f32.gmra.mrb[28].mxu0 %v3861_v30  ;;  %v5017_v33 = vpop.f32.mrb[126].mxu1  ;;  %5474 = vmatprep.subr.bf16.mxu0 %v5473_v31  ;;  %v3917_v30 = vld [vmem:[%s6837_s1 + $0x408] sm:$0xff] }
 0x2f7   : > { %v2775_v34 = vpop.f32.mrb[127].mxu1  ;;  %5476 = vmatpush3.bf16.msra.mxu0 %v5473_v31  ;;  %4987 = vmatprep.mubr.f32.mxu0 %v3862_v32  ;;  %v3918_v31 = vld [vmem:[%s6837_s1 + $0x410] sm:$0xff]  ;;  %v3919_v32 = vld [vmem:[%s6837_s1 + $0x418] sm:$0xff] }
 0x2f8   : > { %v5477_v4 = vpack.c.bf16 %v5017_v33, %v2775_v34  ;;  %v3920_v33 = vld [vmem:[%s6837_s1 + $0x420] sm:$0xff]  ;;  %v3921_v34 = vld [vmem:[%s6837_s1 + $0x428] sm:$0xff] }
 0x2fa   : > { %4988 = vmatmul.mubr.f32.gmra.mrb[30].mxu0 %v3863_v35  ;;  %5478 = vmatprep.subr.bf16.mxu0 %v5477_v4  ;;  %v5080_v47 = vpop.f32.mrb[128].mxu1  ;;  %v3922_v35 = vld [vmem:[%s6837_s1 + $0x430] sm:$0xff] }
 0x2fb   : > { %5480 = vmatpush3.bf16.msra.mxu0 %v5477_v4  ;;  %v3031_v6 = vpop.f32.mrb[129].mxu1  ;;  %5050 = vmatprep.mubr.f32.mxu0 %v3882_v5  ;;  %v3923_v4 = vld [vmem:[%s6837_s1 + $0x438] sm:$0xff]  ;;  %v3924_v5 = vld [vmem:[%s6837_s1 + $0x440] sm:$0xff] }
 0x2fc   : > { %v5485_v12 = vpack.c.bf16 %v5080_v47, %v3031_v6  ;;  %v3925_v47 = vld [vmem:[%s6837_s1 + $0x448] sm:$0xff]  ;;  %v3926_v6 = vld [vmem:[%s6837_s1 + $0x450] sm:$0xff] }
 0x2fe   : > { %5051 = vmatmul.mubr.f32.vlgmr.msra.gmra.mrb[16].mxu0 %v3883_v7  ;;  %v5083_v48 = vpop.f32.mrb[130].mxu1  ;;  %5486 = vmatprep.subr.bf16.mxu0 %v5485_v12  ;;  %v3927_v7 = vld [vmem:[%s6837_s1 + $0x458] sm:$0xff] }
 0x2ff   : > { %v3041_v21 = vpop.f32.mrb[131].mxu1  ;;  %5488 = vmatpush3.bf16.msra.mxu0 %v5485_v12  ;;  %5053 = vmatprep.mubr.f32.mxu0 %v3884_v16  ;;  %v3928_v12 = vld [vmem:[%s6837_s1 + $0x460] sm:$0xff]  ;;  %v3929_v16 = vld [vmem:[%s6837_s1 + $0x468] sm:$0xff] }
 0x300   : > { %v5489_v49 = vpack.c.bf16 %v5083_v48, %v3041_v21  ;;  %v3930_v48 = vld [vmem:[%s6837_s1 + $0x470] sm:$0xff]  ;;  %v3931_v21 = vld [vmem:[%s6837_s1 + $0x478] sm:$0xff] }
 0x302   : > { %5054 = vmatmul.mubr.f32.gmra.mrb[18].mxu0 %v3885_v23  ;;  %v5086_v51 = vpop.f32.mrb[132].mxu1  ;;  %5490 = vmatprep.subr.bf16.mxu0 %v5489_v49  ;;  %v5696_v23 = vmov 0.0|0.0  }
 0x303   : > { %v3051_v24 = vpop.f32.mrb[133].mxu1  ;;  %5492 = vmatpush3.bf16.msra.mxu0 %v5489_v49  ;;  %5056 = vmatprep.mubr.f32.mxu0 %v3886_v50  ;;  %v5698_v49 = vmov 0.0  }
 0x304   : > { %v5493_v53 = vpack.c.bf16 %v5086_v51, %v3051_v24  ;;  %5517 = vmatprep.subr.bf16.mxu1 %v5696_v23  ;;  %5190 = vmatprep.mubr.msk.f32.mxu1 %vm5697_vm1, %v5698_v49 }
 0x306   : > { %5057 = vmatmul.mubr.f32.gmra.mrb[20].mxu0 %v3887_v52  ;;  %v5089_v54 = vpop.f32.mrb[134].mxu1  ;;  %5494 = vmatprep.subr.bf16.mxu0 %v5493_v53 }
 0x307   : > { %v3061_v55 = vpop.f32.mrb[135].mxu1  ;;  %5496 = vmatpush3.bf16.msra.mxu0 %v5493_v53  ;;  %5059 = vmatprep.mubr.f32.mxu0 %v3888_v25 }
 0x308   : > { %v5497_v26 = vpack.c.bf16 %v5089_v54, %v3061_v55 }
 0x30a   : > { %5060 = vmatmul.mubr.f32.gmra.mrb[22].mxu0 %v3889_v56  ;;  %v5092_v58 = vpop.f32.mrb[136].mxu1  ;;  %5498 = vmatprep.subr.bf16.mxu0 %v5497_v26 }
 0x30b   : > { %v3071_v59 = vpop.f32.mrb[137].mxu1  ;;  %5500 = vmatpush3.bf16.msra.mxu0 %v5497_v26  ;;  %5062 = vmatprep.mubr.f32.mxu0 %v3890_v57 }
 0x30c   : > { %v5501_v61 = vpack.c.bf16 %v5092_v58, %v3071_v59 }
 0x30e   : > { %5063 = vmatmul.mubr.f32.gmra.mrb[24].mxu0 %v3891_v60  ;;  %v5095_v63 = vpop.f32.mrb[138].mxu1  ;;  %5502 = vmatprep.subr.bf16.mxu0 %v5501_v61 }
 0x30f   : > { %v3081_v0 = vpop.f32.mrb[139].mxu1  ;;  %5504 = vmatpush3.bf16.msra.mxu0 %v5501_v61  ;;  %5065 = vmatprep.mubr.f32.mxu0 %v3892_v62 }
 0x310   : > { %v5505_v2 = vpack.c.bf16 %v5095_v63, %v3081_v0 }
 0x312   : > { %5066 = vmatmul.mubr.f32.gmra.mrb[26].mxu0 %v3893_v1  ;;  %v5098_v9 = vpop.f32.mrb[140].mxu1  ;;  %5506 = vmatprep.subr.bf16.mxu0 %v5505_v2 }
 0x313   : > { %v3091_v10 = vpop.f32.mrb[141].mxu1  ;;  %5508 = vmatpush3.bf16.msra.mxu0 %v5505_v2  ;;  %5068 = vmatprep.mubr.f32.mxu0 %v3894_v8 }
 0x314   : > { %v5509_v13 = vpack.c.bf16 %v5098_v9, %v3091_v10 }
 0x316   : > { %5069 = vmatmul.mubr.f32.gmra.mrb[28].mxu0 %v3895_v11  ;;  %v5101_v15 = vpop.f32.mrb[142].mxu1  ;;  %5510 = vmatprep.subr.bf16.mxu0 %v5509_v13 }
 0x317   : > { %v3101_v17 = vpop.f32.mrb[143].mxu1  ;;  %5512 = vmatpush3.bf16.msra.mxu0 %v5509_v13  ;;  %5071 = vmatprep.mubr.f32.mxu0 %v3896_v14 }
 0x318   : > { %v5513_v28 = vpack.c.bf16 %v5101_v15, %v3101_v17 }
 0x31a   : > { %5072 = vmatmul.mubr.f32.gmra.mrb[30].mxu0 %v3897_v27  ;;  %5514 = vmatprep.subr.bf16.mxu0 %v5513_v28 }
 0x31b   : > { %5516 = vmatpush3.bf16.msra.mxu0 %v5513_v28  ;;  %5134 = vmatprep.mubr.f32.mxu0 %v3916_v29 }
 0x31c   : > { %v3317_v50 = vpop.permute.xlu1 %3316  ;;  %v3307_v51 = vpop.permute.xlu0 %3306 }
 0x31e   : > { %5135 = vmatmul.mubr.f32.vlgmr.msra.gmra.mrb[16].mxu0 %v3917_v30 }
 0x31f   : > { %5137 = vmatprep.mubr.f32.mxu0 %v3918_v31 }
 0x320   : > { %v3322_v24 = vpop.permute.xlu1 %3321  ;;  %v3312_v52 = vpop.permute.xlu0 %3311 }
 0x322   : > { %5138 = vmatmul.mubr.f32.gmra.mrb[18].mxu0 %v3919_v32 }
 0x323   : > { %5140 = vmatprep.mubr.f32.mxu0 %v3920_v33 }
 0x324   : > { %v3332_v53 = vpop.permute.xlu1 %3331  ;;  %v3327_v54 = vpop.permute.xlu0 %3326 }
 0x326   : > { %5141 = vmatmul.mubr.f32.gmra.mrb[20].mxu0 %v3921_v34 }
 0x327   : > { %5143 = vmatprep.mubr.f32.mxu0 %v3922_v35 }
 0x328   : > { %v3342_v63 = vpop.permute.xlu1 %3341  ;;  %v3337_v2 = vpop.permute.xlu0 %3336 }
 0x32a   : > { %5144 = vmatmul.mubr.f32.gmra.mrb[22].mxu0 %v3923_v4 }
 0x32b   : > { %5146 = vmatprep.mubr.f32.mxu0 %v3924_v5 }
 0x32e   : > { %5147 = vmatmul.mubr.f32.gmra.mrb[24].mxu0 %v3925_v47 }
 0x32f   : > { %5149 = vmatprep.mubr.f32.mxu0 %v3926_v6  ;;  %v3352_v30 = vpop.permute.xlu1 %3351 }
 0x332   : > { %5150 = vmatmul.mubr.f32.gmra.mrb[26].mxu0 %v3927_v7 }
 0x333   : > { %5152 = vmatprep.mubr.f32.mxu0 %v3928_v12 }
 0x336   : > { %5153 = vmatmul.mubr.f32.gmra.mrb[28].mxu0 %v3929_v16 }
 0x337   : > { %5155 = vmatprep.mubr.f32.mxu0 %v3930_v48 }
 0x33a   : > { %5156 = vmatmul.mubr.f32.gmra.mrb[30].mxu0 %v3931_v21 }
 0x3f1   : > { %v5136_v25 = vpop.f32.mrb[16].mxu0 }
 0x3f2   : > { %v5541_v55 = vadd.f32 %v5136_v25, %v6268_v36  ;;  %v3193_v56 = vpop.f32.mrb[17].mxu0 }
 0x3f3   : > { %v5542_v26 = vadd.f32 %v3193_v56, %v6270_v37 }
 0x3f4   : > { %v3385_v57 = vadd.f32 %v5541_v55, %v3312_v52 }
 0x3f5   : > { %v3384_v58 = vadd.f32 %v5542_v26, %v3307_v51  ;;  %v5139_v59 = vpop.f32.mrb[18].mxu0 }
 0x3f6   : > { %v3401_v60 = vmul.f32 0.2, %v3385_v57  ;;  %v5543_v61 = vadd.f32 %v5139_v59, %v6276_v38  ;;  %v3203_v62 = vpop.f32.mrb[19].mxu0 }
 0x3f7   : > { %v3400_v0 = vmul.f32 0.2, %v3384_v58  ;;  %v5544_v1 = vadd.f32 %v3203_v62, %v6278_v39 }
 0x3f8   : > { %v6731_v8 = vmax.f32 %v3385_v57, %v3401_v60  ;;  %v3387_v9 = vadd.f32 %v5543_v61, %v3322_v24 }
 0x3f9   : > { %v6733_v10 = vmax.f32 %v3384_v58, %v3400_v0  ;;  %v3386_v36 = vadd.f32 %v5544_v1, %v3317_v50  ;;  %v5142_v11 = vpop.f32.mrb[20].mxu0 }
 0x3fa   : > { %v3433_v37 = vmul.f32 %v6731_v8, %v6731_v8  ;;  %v3403_v13 = vmul.f32 0.2, %v3387_v9  ;;  %v5545_v14 = vadd.f32 %v5142_v11, %v6284_v40  ;;  %v3213_v38 = vpop.f32.mrb[21].mxu0  ;;  %v3347_v40 = vpop.permute.xlu0 %3346 }
 0x3fb   : > { %v3432_v15 = vmul.f32 %v6733_v10, %v6733_v10  ;;  %v3402_v17 = vmul.f32 0.2, %v3386_v36  ;;  %v5546_v39 = vadd.f32 %v3213_v38, %v6286_v41 }
 0x3fc   : > { %v3449_v27 = vsel %vm282_vm0, %v3433_v37, 0.0  ;;  %v6742_v28 = vmax.f32 %v3387_v9, %v3403_v13  ;;  %v3389_v29 = vadd.f32 %v5545_v14, %v3332_v53 }
 0x3fd   : > { %v3448_v31 = vsel %vm282_vm0, %v3432_v15, 0.0  ;;  %v6745_v32 = vmax.f32 %v3386_v36, %v3402_v17  ;;  %v3388_v33 = vadd.f32 %v5546_v39, %v3327_v54  ;;  %v5145_v34 = vpop.f32.mrb[22].mxu0  ;;  %v3362_v54 = vpop.permute.xlu1 %3361 }
 0x3fe   : > { %v3450_v35 = vadd.f32 %v3449_v27, %v3448_v31  ;;  %v3405_v4 = vmul.f32 0.2, %v3389_v29  ;;  %v5547_v5 = vadd.f32 %v5145_v34, %v6292_v42  ;;  %v3223_v47 = vpop.f32.mrb[23].mxu0  ;;  %v3435_v41 = vmul.f32 %v6742_v28, %v6742_v28  ;;  %v3357_v57 = vpop.permute.xlu0 %3356 }
 0x3ff   : > { %v3434_v6 = vmul.f32 %v6745_v32, %v6745_v32  ;;  %v3404_v7 = vmul.f32 0.2, %v3388_v33  ;;  %v5548_v12 = vadd.f32 %v3223_v47, %v6294_v43 }
 0x400   : > { %v6753_v16 = vmax.f32 %v3389_v29, %v3405_v4  ;;  %v3391_v48 = vadd.f32 %v5547_v5, %v3342_v63  ;;  %v3453_v43 = vsel %vm282_vm0, %v3435_v41, 0.0 }
 0x401   : > { %v3451_v21 = vsel %vm282_vm0, %v3434_v6, 0.0  ;;  %v6756_v49 = vmax.f32 %v3388_v33, %v3404_v7  ;;  %v3390_v50 = vadd.f32 %v5548_v12, %v3337_v2  ;;  %v5148_v51 = vpop.f32.mrb[24].mxu0  ;;  %v3372_v17 = vpop.permute.xlu1 %3371 }
 0x402   : > { %v3452_v42 = vadd.f32 %v3451_v21, %v3450_v35  ;;  %v3437_v24 = vmul.f32 %v6753_v16, %v6753_v16  ;;  %v3407_v52 = vmul.f32 0.2, %v3391_v48  ;;  %v5549_v53 = vadd.f32 %v5148_v51, %v6300_v44  ;;  %v3233_v25 = vpop.f32.mrb[25].mxu0 }
 0x403   : > { %v3436_v55 = vmul.f32 %v6756_v49, %v6756_v49  ;;  %v3406_v56 = vmul.f32 0.2, %v3390_v50  ;;  %v5550_v26 = vadd.f32 %v3233_v25, %v6302_v45 }
 0x404   : > { %v3454_v58 = vadd.f32 %v3453_v43, %v3452_v42  ;;  %v6765_v59 = vmax.f32 %v3391_v48, %v3407_v52  ;;  %v3393_v60 = vadd.f32 %v5549_v53, %v3352_v30  ;;  %v3457_v0 = vsel %vm282_vm0, %v3437_v24, 0.0  ;;  %v3367_v30 = vpop.permute.xlu0 %3366 }
 0x405   : > { %v3455_v61 = vsel %vm282_vm0, %v3436_v55, 0.0  ;;  %v6768_v62 = vmax.f32 %v3390_v50, %v3406_v56  ;;  %v3392_v44 = vadd.f32 %v5550_v26, %v3347_v40  ;;  %v5151_v63 = vpop.f32.mrb[26].mxu0  ;;  %v3382_v53 = vpop.permute.xlu1 %3381 }
 0x406   : > { %v3456_v1 = vadd.f32 %v3455_v61, %v3454_v58  ;;  %v3409_v2 = vmul.f32 0.2, %v3393_v60  ;;  %v5551_v9 = vadd.f32 %v5151_v63, %v6308_v18  ;;  %v3243_v36 = vpop.f32.mrb[27].mxu0  ;;  %v3439_v45 = vmul.f32 %v6765_v59, %v6765_v59 }
 0x407   : > { %v3438_v11 = vmul.f32 %v6768_v62, %v6768_v62  ;;  %v3408_v37 = vmul.f32 0.2, %v3392_v44  ;;  %v5552_v13 = vadd.f32 %v3243_v36, %v6310_v46 }
 0x408   : > { %v3458_v14 = vadd.f32 %v3457_v0, %v3456_v1  ;;  %v6777_v38 = vmax.f32 %v3393_v60, %v3409_v2  ;;  %v3395_v15 = vadd.f32 %v5551_v9, %v3362_v54  ;;  %v3461_v35 = vsel %vm282_vm0, %v3439_v45, 0.0  ;;  %v3377_v55 = vpop.permute.xlu0 %3376 }
 0x409   : > { %v3459_v39 = vsel %vm282_vm0, %v3438_v11, 0.0  ;;  %v6780_v27 = vmax.f32 %v3392_v44, %v3408_v37  ;;  %v3394_v18 = vadd.f32 %v5552_v13, %v3357_v57  ;;  %v5154_v29 = vpop.f32.mrb[28].mxu0 }
 0x40a   : > { %v3460_v31 = vadd.f32 %v3459_v39, %v3458_v14  ;;  %v3441_v33 = vmul.f32 %v6777_v38, %v6777_v38  ;;  %v3411_v34 = vmul.f32 0.2, %v3395_v15  ;;  %v5553_v40 = vadd.f32 %v5154_v29, %v6316_v19  ;;  %v3253_v46 = vpop.f32.mrb[29].mxu0 }
 0x40b   : > { %v3440_v4 = vmul.f32 %v6780_v27, %v6780_v27  ;;  %v3410_v5 = vmul.f32 0.2, %v3394_v18  ;;  %v5554_v47 = vadd.f32 %v3253_v46, %v6318_v20 }
 0x40c   : > { %v3462_v41 = vadd.f32 %v3461_v35, %v3460_v31  ;;  %v6789_v6 = vmax.f32 %v3395_v15, %v3411_v34  ;;  %v3397_v7 = vadd.f32 %v5553_v40, %v3372_v17  ;;  %v3465_v19 = vsel %vm282_vm0, %v3441_v33, 0.0 }
 0x40d   : > { %v3463_v12 = vsel %vm282_vm0, %v3440_v4, 0.0  ;;  %v6792_v48 = vmax.f32 %v3394_v18, %v3410_v5  ;;  %v3396_v21 = vadd.f32 %v5554_v47, %v3367_v30  ;;  %v5157_v50 = vpop.f32.mrb[30].mxu0 }
 0x40e   : > { %v3464_v51 = vadd.f32 %v3463_v12, %v3462_v41  ;;  %v3413_v42 = vmul.f32 0.2, %v3397_v7  ;;  %v5555_v24 = vadd.f32 %v5157_v50, %v6324_v22  ;;  %v3263_v52 = vpop.f32.mrb[31].mxu0  ;;  %v3443_v20 = vmul.f32 %v6789_v6, %v6789_v6 }
 0x40f   : > { %v3442_v25 = vmul.f32 %v6792_v48, %v6792_v48  ;;  %v3412_v54 = vmul.f32 0.2, %v3396_v21  ;;  %v5556_v43 = vadd.f32 %v3263_v52, %v6326_v3 }
 0x410   : > { %v3466_v56 = vadd.f32 %v3465_v19, %v3464_v51  ;;  %v3429_v26 = vmax.f32 %v3397_v7, %v3413_v42  ;;  %v3399_v57 = vadd.f32 %v5555_v24, %v3382_v53  ;;  %v3469_v63 = vsel %vm282_vm0, %v3443_v20, 0.0 }
 0x411   : > { %v3467_v58 = vsel %vm282_vm0, %v3442_v25, 0.0  ;;  %v3428_v60 = vmax.f32 %v3396_v21, %v3412_v54  ;;  %v3398_v61 = vadd.f32 %v5556_v43, %v3377_v55 }
 0x412   : > { %v3468_v22 = vadd.f32 %v3467_v58, %v3466_v56  ;;  %v3415_v44 = vmul.f32 0.2, %v3399_v57  ;;  %v3445_v0 = vmul.f32 %v3429_v26, %v3429_v26 }
 0x413   : > { %v3444_v1 = vmul.f32 %v3428_v60, %v3428_v60  ;;  %v3414_v2 = vmul.f32 0.2, %v3398_v61 }
 0x414   : > { %v3470_v9 = vadd.f32 %v3469_v63, %v3468_v22  ;;  %v3431_v36 = vmax.f32 %v3399_v57, %v3415_v44  ;;  %v3473_v37 = vsel %vm282_vm0, %v3445_v0, 0.0 }
 0x415   : > { %v3471_v45 = vsel %vm282_vm0, %v3444_v1, 0.0  ;;  %v3430_v3 = vmax.f32 %v3398_v61, %v3414_v2 }
 0x416   : > { %v3472_v11 = vadd.f32 %v3471_v45, %v3470_v9  ;;  %v3447_v13 = vmul.f32 %v3431_v36, %v3431_v36 }
 0x417   : > { %v3446_v14 = vmul.f32 %v3430_v3, %v3430_v3 }
 0x418   : > { %v3474_v15 = vadd.f32 %v3473_v37, %v3472_v11  ;;  %v3477_v18 = vsel %vm282_vm0, %v3447_v13, 0.0 }
 0x419   : > { %v3475_v17 = vsel %vm282_vm0, %v3446_v14, 0.0 }
 0x41a   : > { %v3476_v39 = vadd.f32 %v3475_v17, %v3474_v15 }
 0x41c   : > { %v3478_v29 = vadd.f32 %v3477_v18, %v3476_v39 }
 0x41e   : > { %v3479_v30 = vrot.slane %v3478_v29, 4 }
 0x420   : > { %v3480_v31 = vadd.f32 %v3479_v30, %v3478_v29 }
 0x422   : > { %v3481_v33 = vrot.slane %v3480_v31, 2 }
 0x424   : > { %v3482_v34 = vadd.f32 %v3481_v33, %v3480_v31 }
 0x426   : > { %v3483_v40 = vrot.slane %v3482_v34, 1 }
 0x428   : > { %v3484_v46 = vadd.f32 %v3483_v40, %v3482_v34 }
 0x42a   : > { %v3485_v35 = vmul.f32 0.0078125, %v3484_v46 }
 0x42c   : > { %v3486_v4 = vadd.f32 1e-08, %v3485_v35 }
 0x42e   : > { %5685 = vrsqrt.f32 %v3486_v4 }
 0x438   : > { %v5686_v5 = vpop.eup %5685 }
 0x439   : > { %v3502_v47 = vmul.f32 %v5686_v5, %v3430_v3  ;;  %v3488_v41 = vmul.f32 %v5686_v5, %v6733_v10  ;;  %v3489_v7 = vmul.f32 %v5686_v5, %v6731_v8  ;;  %v3490_v12 = vmul.f32 %v5686_v5, %v6745_v32 }
 0x43a   : > { %v3491_v21 = vmul.f32 %v5686_v5, %v6742_v28  ;;  %v3492_v50 = vmul.f32 %v5686_v5, %v6756_v49  ;;  %v3493_v19 = vmul.f32 %v5686_v5, %v6753_v16  ;;  %v3494_v51 = vmul.f32 %v5686_v5, %v6768_v62 }
 0x43b   : > { %v5518_v42 = vpack.c.bf16 %v3489_v7, %v3488_v41  ;;  %v3495_v24 = vmul.f32 %v5686_v5, %v6765_v59  ;;  %v3496_v52 = vmul.f32 %v5686_v5, %v6780_v27  ;;  %v3497_v53 = vmul.f32 %v5686_v5, %v6777_v38  ;;  %v3504_v38 = vld [vmem:[%s6840_s4] sm:$0x7]  ;;  %v3509_v27 = vpop.permute.xlu0 %3508 }
 0x43c   : > { %v5521_v10 = vpack.c.bf16 %v3491_v21, %v3490_v12  ;;  %v5524_v20 = vpack.c.bf16 %v3493_v19, %v3492_v50  ;;  %v3498_v8 = vmul.f32 %v5686_v5, %v6792_v48  ;;  %v3499_v32 = vmul.f32 %v5686_v5, %v6789_v6 }
 0x43d   : > { %5519 = vmatpush3.bf16.msra.mxu1 %v5518_v42  ;;  %v5527_v28 = vpack.c.bf16 %v3495_v24, %v3494_v51  ;;  %v5530_v49 = vpack.c.bf16 %v3497_v53, %v3496_v52  ;;  %v3500_v25 = vmul.f32 %v5686_v5, %v3428_v60  ;;  %v3501_v16 = vmul.f32 %v5686_v5, %v3429_v26 }
 0x43e   : > { %5520 = vmatprep.subr.bf16.mxu1 %v5696_v23  ;;  %v5533_v62 = vpack.c.bf16 %v3499_v32, %v3498_v8  ;;  %v3503_v54 = vmul.f32 %v5686_v5, %v3431_v36 }
 0x43f   : > { %v5536_v59 = vpack.c.bf16 %v3501_v16, %v3500_v25 }
 0x440   : > { %v5539_v43 = vpack.c.bf16 %v3503_v54, %v3502_v47 }
 0x441   : > { %5522 = vmatpush3.bf16.msra.mxu1 %v5521_v10 }
 0x442   : > { %5523 = vmatprep.subr.bf16.mxu1 %v5696_v23 }
 0x445   : > { %5525 = vmatpush3.bf16.msra.mxu1 %v5524_v20 }
 0x446   : > { %5526 = vmatprep.subr.bf16.mxu1 %v5696_v23 }
 0x449   : > { %5528 = vmatpush3.bf16.msra.mxu1 %v5527_v28 }
 0x44a   : > { %5529 = vmatprep.subr.bf16.mxu1 %v5696_v23 }
 0x44d   : > { %5531 = vmatpush3.bf16.msra.mxu1 %v5530_v49 }
 0x44e   : > { %5532 = vmatprep.subr.bf16.mxu1 %v5696_v23 }
 0x451   : > { %5534 = vmatpush3.bf16.msra.mxu1 %v5533_v62 }
 0x452   : > { %5535 = vmatprep.subr.bf16.mxu1 %v5696_v23 }
 0x455   : > { %5537 = vmatpush3.bf16.msra.mxu1 %v5536_v59 }
 0x456   : > { %5538 = vmatprep.subr.bf16.mxu1 %v5696_v23 }
 0x459   : > { %5540 = vmatpush3.bf16.msra.mxu1 %v5539_v43 }
 0x45c   : > { %5191 = vmatmul.mubr.f32.vlgmr.msra.gmra.mrb[144].mxu1 %v3504_v38 }
 0x52f   : > { %v3577_v6 = vpop.f32.mrb[144].mxu1 }
 0x530   : > { %v3578_v48 = vadd.f32 %v3577_v6, %v3509_v27  ;;  %v5192_v55 = vpop.f32.mrb[145].mxu1 }
 0x532   : > { %3582 = vst.msk [vmem:[%s249_s14] sm:$0x7] %vm3581_vm2, %v3578_v48 }
 0x533 PF: > { %s16_s21 = sadd.s32 1, %s5693_s21  }
 0x534   : > { %p13_p4 = scmp.ge.s32.totalorder %s16_s21, 4  }
 0x536   :  { %15 = sbr.rel (!%p13_p4) target bundleno = 1 (0x1), region = 90 }

</bundles_post_ra>
